<compile_context>
chip_gen: v5e
topology: v5e:2x2
jax: 0.10.0
libtpu: 0.0.40
codegen_flags: <defaults>
</compile_context>

<pallas_src>
import math
import functools

import jax
import jax.numpy as jnp
from jax.experimental import pallas as pl
from jax.experimental.pallas import tpu as pltpu


def _pick_matmul_dtype():
    # bf16 MXU operands on v6e/v7x (halves weight DMA bytes, native MXU fmt);
    # keep f32 elsewhere. Accumulation is always f32.
    try:
        kind = jax.devices()[0].device_kind.lower()
    except Exception:
        return jnp.float32
    if "v6" in kind or "v7" in kind:
        return jnp.bfloat16
    return jnp.float32


MATMUL_DTYPE = _pick_matmul_dtype()


# ----------------------------------------------------------------------------
# In-kernel helpers (operate on VMEM-resident values)
# ----------------------------------------------------------------------------

def _mm(x, w):
    """MXU matmul with f32 accumulation; operands cast to MATMUL_DTYPE."""
    return jnp.dot(x.astype(MATMUL_DTYPE), w.astype(MATMUL_DTYPE),
                   preferred_element_type=jnp.float32)


def _layernorm(y, gamma, beta, eps=1e-5):
    """LayerNorm over last dim; statistics in f32 (PyTorch eps=1e-5)."""
    mu = jnp.mean(y, axis=-1, keepdims=True)
    yc = y - mu
    var = jnp.mean(yc * yc, axis=-1, keepdims=True)
    return yc * jax.lax.rsqrt(var + eps) * gamma + beta


def _softmax_rows(s):
    s = s - jnp.max(s, axis=-1, keepdims=True)
    p = jnp.exp(s)
    inv = pl.reciprocal(jnp.sum(p, axis=-1, keepdims=True), approx=True)
    return p * inv


def _attend_heads(q, k_all, v_all, wo, bo, nhead, mask=None):
    """All heads of scaled-dot-product attention + output projection.

    q: (Sq, D) f32, k_all/v_all: (Sk, D) f32, wo: (D, D), bo: (1, D),
    mask: optional additive (Sq, Sk) f32 (omitted entirely when None).
    The per-head context is folded directly into the output projection
    (sum_h ctx_h @ wo[h*Dh:(h+1)*Dh, :]) so no in-kernel concat is needed.
    """
    D = q.shape[-1]
    Dh = D // nhead
    scale = 1.0 / math.sqrt(Dh)

    out = jnp.broadcast_to(bo, (q.shape[0], D)).astype(jnp.float32)
    for h in range(nhead):
        qh = q[:, h * Dh:(h + 1) * Dh]
        kh = k_all[:, h * Dh:(h + 1) * Dh]
        vh = v_all[:, h * Dh:(h + 1) * Dh]
        # Contract last dims of q and k directly (MXU transposed operand,
        # no explicit XLU transpose).
        s = jax.lax.dot_general(
            qh.astype(MATMUL_DTYPE), kh.astype(MATMUL_DTYPE),
            (((1,), (1,)), ((), ())),
            preferred_element_type=jnp.float32) * scale
        if mask is not None:
            s = s + mask
        p = _softmax_rows(s)                       # f32
        ctx_h = _mm(p, vh)                          # (Sq, Dh)
        out = out + _mm(ctx_h, wo[h * Dh:(h + 1) * Dh, :])
    return out


def _self_attention(x, wqkv, bqkv, wo, bo, nhead, mask=None):
    D = x.shape[-1]
    qkv = _mm(x, wqkv) + bqkv                       # fused QKV: (S, 3D)
    return _attend_heads(qkv[:, :D], qkv[:, D:2 * D], qkv[:, 2 * D:],
                         wo, bo, nhead, mask)


def _cross_attention(x_q, x_kv, wq, bq, wkv, bkv, wo, bo, nhead):
    D = x_q.shape[-1]
    q = _mm(x_q, wq) + bq                           # (Sq, D)
    kv = _mm(x_kv, wkv) + bkv                       # fused KV: (Sk, 2D)
    return _attend_heads(q, kv[:, :D], kv[:, D:], wo, bo, nhead, None)


def _ffn(x, w1, b1, w2, b2):
    h = jnp.maximum(_mm(x, w1) + b1, 0.0)
    return _mm(h, w2) + b2


# ----------------------------------------------------------------------------
# Fused per-layer Pallas kernels
# ----------------------------------------------------------------------------

def _encoder_layer_kernel(x_ref, wqkv_ref, bqkv_ref, wo_ref, bo_ref,
                          ln1_g_ref, ln1_b_ref,
                          w1_ref, b1_ref, w2_ref, b2_ref,
                          ln2_g_ref, ln2_b_ref,
                          o_ref, *, nhead):
    x = x_ref[0].astype(jnp.float32)                # (S, D)
    attn = _self_attention(x, wqkv_ref[...], bqkv_ref[...],
                           wo_ref[...], bo_ref[...], nhead, mask=None)
    y = _layernorm(x + attn, ln1_g_ref[...], ln1_b_ref[...])
    ff = _ffn(y, w1_ref[...], b1_ref[...], w2_ref[...], b2_ref[...])
    out = _layernorm(y + ff, ln2_g_ref[...], ln2_b_ref[...])
    o_ref[0] = out.astype(o_ref.dtype)


def encoder_layer(x, p, nhead):
    B, S, D = x.shape
    F = p["w1"].shape[1]

    def rep(shape):
        return pl.BlockSpec(shape, lambda b: (0,) * len(shape))

    kernel = functools.partial(_encoder_layer_kernel, nhead=nhead)
    return pl.pallas_call(
        kernel,
        grid=(B,),
        in_specs=[
            pl.BlockSpec((1, S, D), lambda b: (b, 0, 0)),
            rep((D, 3 * D)), rep((1, 3 * D)),
            rep((D, D)), rep((1, D)),
            rep((1, D)), rep((1, D)),
            rep((D, F)), rep((1, F)),
            rep((F, D)), rep((1, D)),
            rep((1, D)), rep((1, D)),
        ],
        out_specs=pl.BlockSpec((1, S, D), lambda b: (b, 0, 0)),
        out_shape=jax.ShapeDtypeStruct((B, S, D), x.dtype),
        compiler_params=pltpu.CompilerParams(
            dimension_semantics=("parallel",)),
    )(x, p["wqkv"], p["bqkv"], p["wo"], p["bo"],
      p["ln1_g"], p["ln1_b"],
      p["w1"], p["b1"], p["w2"], p["b2"],
      p["ln2_g"], p["ln2_b"])


def _decoder_layer_kernel(x_ref, mem_ref, mask_ref,
                          s_wqkv_ref, s_bqkv_ref, s_wo_ref, s_bo_ref,
                          ln1_g_ref, ln1_b_ref,
                          c_wq_ref, c_bq_ref, c_wkv_ref, c_bkv_ref,
                          c_wo_ref, c_bo_ref,
                          ln2_g_ref, ln2_b_ref,
                          w1_ref, b1_ref, w2_ref, b2_ref,
                          ln3_g_ref, ln3_b_ref,
                          o_ref, *, nhead):
    x = x_ref[0].astype(jnp.float32)                # (S_tgt, D)
    mem = mem_ref[0].astype(jnp.float32)            # (S_src, D)
    mask = mask_ref[...]                            # causal additive (S, S)

    sa = _self_attention(x, s_wqkv_ref[...], s_bqkv_ref[...],
                         s_wo_ref[...], s_bo_ref[...], nhead, mask)
    x1 = _layernorm(x + sa, ln1_g_ref[...], ln1_b_ref[...])

    ca = _cross_attention(x1, mem, c_wq_ref[...], c_bq_ref[...],
                          c_wkv_ref[...], c_bkv_ref[...],
                          c_wo_ref[...], c_bo_ref[...], nhead)
    x2 = _layernorm(x1 + ca, ln2_g_ref[...], ln2_b_ref[...])

    ff = _ffn(x2, w1_ref[...], b1_ref[...], w2_ref[...], b2_ref[...])
    out = _layernorm(x2 + ff, ln3_g_ref[...], ln3_b_ref[...])
    o_ref[0] = out.astype(o_ref.dtype)


def decoder_layer(x, memory, p, nhead, tgt_mask):
    B, S, D = x.shape
    S_src = memory.shape[1]
    F = p["w1"].shape[1]

    def rep(shape):
        return pl.BlockSpec(shape, lambda b: (0,) * len(shape))

    kernel = functools.partial(_decoder_layer_kernel, nhead=nhead)
    return pl.pallas_call(
        kernel,
        grid=(B,),
        in_specs=[
            pl.BlockSpec((1, S, D), lambda b: (b, 0, 0)),
            pl.BlockSpec((1, S_src, D), lambda b: (b, 0, 0)),
            rep((S, S)),
            rep((D, 3 * D)), rep((1, 3 * D)), rep((D, D)), rep((1, D)),
            rep((1, D)), rep((1, D)),
            rep((D, D)), rep((1, D)), rep((D, 2 * D)), rep((1, 2 * D)),
            rep((D, D)), rep((1, D)),
            rep((1, D)), rep((1, D)),
            rep((D, F)), rep((1, F)), rep((F, D)), rep((1, D)),
            rep((1, D)), rep((1, D)),
        ],
        out_specs=pl.BlockSpec((1, S, D), lambda b: (b, 0, 0)),
        out_shape=jax.ShapeDtypeStruct((B, S, D), x.dtype),
        compiler_params=pltpu.CompilerParams(
            dimension_semantics=("parallel",)),
    )(x, memory, tgt_mask,
      p["s_wqkv"], p["s_bqkv"], p["s_wo"], p["s_bo"],
      p["ln1_g"], p["ln1_b"],
      p["c_wq"], p["c_bq"], p["c_wkv"], p["c_bkv"], p["c_wo"], p["c_bo"],
      p["ln2_g"], p["ln2_b"],
      p["w1"], p["b1"], p["w2"], p["b2"],
      p["ln3_g"], p["ln3_b"])


def _heads_kernel(x_ref, w_ref, b_ref, o_ref):
    x = x_ref[0].astype(jnp.float32)                # (S, D)
    acc = _mm(x, w_ref[...]) + b_ref[...]           # lane-dense padded N
    o_ref[0] = acc.astype(o_ref.dtype)


def output_heads(x, w_pad, b_pad):
    """Fused pitch+duration head: (B,S,D) @ (D, N_pad) with N_pad % 128 == 0."""
    B, S, D = x.shape
    Np = w_pad.shape[1]
    return pl.pallas_call(
        _heads_kernel,
        grid=(B,),
        in_specs=[
            pl.BlockSpec((1, S, D), lambda b: (b, 0, 0)),
            pl.BlockSpec((D, Np), lambda b: (0, 0)),
            pl.BlockSpec((1, Np), lambda b: (0, 0)),
        ],
        out_specs=pl.BlockSpec((1, S, Np), lambda b: (b, 0, 0)),
        out_shape=jax.ShapeDtypeStruct((B, S, Np), x.dtype),
        compiler_params=pltpu.CompilerParams(
            dimension_semantics=("parallel",)),
    )(x, w_pad, b_pad)


# ----------------------------------------------------------------------------
# Plain-JAX glue (embeddings, positional encoding, mask)
# ----------------------------------------------------------------------------

def positional_encoding(seq_len, d_model):
    position = jnp.arange(seq_len, dtype=jnp.float32)[:, None]
    div_term = jnp.exp(jnp.arange(0, d_model, 2, dtype=jnp.float32)
                       * (-math.log(10000.0) / d_model))
    pe = jnp.zeros((seq_len, d_model), jnp.float32)
    pe = pe.at[:, 0::2].set(jnp.sin(position * div_term))
    pe = pe.at[:, 1::2].set(jnp.cos(position * div_term))
    return pe  # (S, D)


def causal_mask(size):
    # Additive mask: 0 on/below diagonal, large-negative above.
    upper = jnp.triu(jnp.ones((size, size), jnp.float32), k=1)
    return upper * jnp.float32(-1e9)


def chord_melody_transformer_v3_forward(params, chord_seq, pitch_input,
                                        duration_input, nhead):
    d_model = params["chord_embedding"].shape[1]
    pitch_vocab = params["pitch_embedding"].shape[0]
    duration_vocab = params["duration_embedding"].shape[0]

    chord_emb = jnp.take(params["chord_embedding"], chord_seq, axis=0)
    pitch_emb = jnp.take(params["pitch_embedding"], pitch_input, axis=0)
    dur_emb = jnp.take(params["duration_embedding"], duration_input, axis=0)

    src_len = chord_seq.shape[1]
    tgt_len = pitch_input.shape[1]

    src = chord_emb + positional_encoding(src_len, d_model)[None]
    tgt = (pitch_emb + dur_emb) + positional_encoding(tgt_len, d_model)[None]

    tgt_mask = causal_mask(tgt_len)

    memory = src
    for lp in params["encoder_layers"]:
        memory = encoder_layer(memory, lp, nhead)

    out = tgt
    for lp in params["decoder_layers"]:
        out = decoder_layer(out, memory, lp, nhead, tgt_mask)

    logits = output_heads(out, params["heads_w"], params["heads_b"])
    pitch_logits = logits[..., :pitch_vocab]
    duration_logits = logits[..., pitch_vocab:pitch_vocab + duration_vocab]
    return pitch_logits, duration_logits


# ----------------------------------------------------------------------------
# Deterministic parameter construction (fused / padded weights)
# ----------------------------------------------------------------------------

def _init_linear(key, in_dim, out_dim, scale=0.02):
    k1, k2 = jax.random.split(key)
    w = jax.random.normal(k1, (in_dim, out_dim), jnp.float32) * scale
    b = jax.random.normal(k2, (1, out_dim), jnp.float32) * scale
    return w, b


def _init_encoder_layer(key, d_model, dim_ff):
    k1, k2, k3, k4 = jax.random.split(key, 4)
    wqkv, bqkv = _init_linear(k1, d_model, 3 * d_model)   # fused QKV
    wo, bo = _init_linear(k2, d_model, d_model)
    w1, b1 = _init_linear(k3, d_model, dim_ff)
    w2, b2 = _init_linear(k4, dim_ff, d_model)
    ones = jnp.ones((1, d_model), jnp.float32)
    zeros = jnp.zeros((1, d_model), jnp.float32)
    return dict(wqkv=wqkv, bqkv=bqkv, wo=wo, bo=bo,
                ln1_g=ones, ln1_b=zeros,
                w1=w1, b1=b1, w2=w2, b2=b2,
                ln2_g=ones, ln2_b=zeros)


def _init_decoder_layer(key, d_model, dim_ff):
    ks = jax.random.split(key, 7)
    s_wqkv, s_bqkv = _init_linear(ks[0], d_model, 3 * d_model)   # fused QKV
    s_wo, s_bo = _init_linear(ks[1], d_model, d_model)
    c_wq, c_bq = _init_linear(ks[2], d_model, d_model)
    c_wkv, c_bkv = _init_linear(ks[3], d_model, 2 * d_model)     # fused KV
    c_wo, c_bo = _init_linear(ks[4], d_model, d_model)
    w1, b1 = _init_linear(ks[5], d_model, dim_ff)
    w2, b2 = _init_linear(ks[6], dim_ff, d_model)
    ones = jnp.ones((1, d_model), jnp.float32)
    zeros = jnp.zeros((1, d_model), jnp.float32)
    return dict(s_wqkv=s_wqkv, s_bqkv=s_bqkv, s_wo=s_wo, s_bo=s_bo,
                ln1_g=ones, ln1_b=zeros,
                c_wq=c_wq, c_bq=c_bq, c_wkv=c_wkv, c_bkv=c_bkv,
                c_wo=c_wo, c_bo=c_bo,
                ln2_g=ones, ln2_b=zeros,
                w1=w1, b1=b1, w2=w2, b2=b2,
                ln3_g=ones, ln3_b=zeros)


def init_params(key, pitch_vocab, duration_vocab, chord_vocab, d_model,
                num_encoder_layers, num_decoder_layers, dim_ff):
    keys = jax.random.split(key, 4 + num_encoder_layers + num_decoder_layers)
    ki = iter(keys)

    params = {}
    params["chord_embedding"] = jax.random.normal(
        next(ki), (chord_vocab, d_model), jnp.float32) * 0.02
    params["pitch_embedding"] = jax.random.normal(
        next(ki), (pitch_vocab, d_model), jnp.float32) * 0.02
    params["duration_embedding"] = jax.random.normal(
        next(ki), (duration_vocab, d_model), jnp.float32) * 0.02

    params["encoder_layers"] = [
        _init_encoder_layer(next(ki), d_model, dim_ff)
        for _ in range(num_encoder_layers)]
    params["decoder_layers"] = [
        _init_decoder_layer(next(ki), d_model, dim_ff)
        for _ in range(num_decoder_layers)]

    # Fused + lane-dense-padded output heads: [pitch | duration | zero pad].
    n_logits = pitch_vocab + duration_vocab
    n_pad = ((n_logits + 127) // 128) * 128
    hw, hb = _init_linear(next(ki), d_model, n_logits)
    params["heads_w"] = jnp.zeros((d_model, n_pad), jnp.float32
                                  ).at[:, :n_logits].set(hw)
    params["heads_b"] = jnp.zeros((1, n_pad), jnp.float32
                                  ).at[:, :n_logits].set(hb)
    return params


# ----------------------------------------------------------------------------
# Main
# ----------------------------------------------------------------------------

if __name__ == "__main__":
    # Small but structurally faithful config.
    PITCH_VOCAB = 129
    DURATION_VOCAB = 10
    CHORD_VOCAB = 128
    D_MODEL = 32
    NHEAD = 4
    NUM_ENC = 2
    NUM_DEC = 2
    DIM_FF = 64

    B = 2
    SRC_LEN = 8   # chord sequence length
    TGT_LEN = 8   # melody (pitch/duration) sequence length

    root = jax.random.PRNGKey(0)
    kp, kc, kpi, kd = jax.random.split(root, 4)

    params = init_params(kp, PITCH_VOCAB, DURATION_VOCAB, CHORD_VOCAB,
                         D_MODEL, NUM_ENC, NUM_DEC, DIM_FF)

    chord_seq = jax.random.randint(kc, (B, SRC_LEN), 0, CHORD_VOCAB, jnp.int32)
    pitch_input = jax.random.randint(kpi, (B, TGT_LEN), 0, PITCH_VOCAB,
                                     jnp.int32)
    duration_input = jax.random.randint(kd, (B, TGT_LEN), 0, DURATION_VOCAB,
                                        jnp.int32)

    forward = jax.jit(chord_melody_transformer_v3_forward,
                      static_argnums=(4,))
    pitch_logits, duration_logits = forward(
        params, chord_seq, pitch_input, duration_input, NHEAD)

    jax.block_until_ready((pitch_logits, duration_logits))

    assert pitch_logits.shape == (B, TGT_LEN, PITCH_VOCAB)
    assert duration_logits.shape == (B, TGT_LEN, DURATION_VOCAB)
    assert bool(jnp.all(jnp.isfinite(pitch_logits)))
    assert bool(jnp.all(jnp.isfinite(duration_logits)))

    print("KERNEL_OK")
</pallas_src>

<mosaic_0001>
module attributes {stable_mosaic.version = 11 : i64} {
  func.func @_encoder_layer_kernel(%arg0: i32, %arg1: memref<1x8x32xf32, #tpu.memory_space<vmem>>, %arg2: memref<32x96xf32, #tpu.memory_space<vmem>>, %arg3: memref<1x96xf32, #tpu.memory_space<vmem>>, %arg4: memref<32x32xf32, #tpu.memory_space<vmem>>, %arg5: memref<1x32xf32, #tpu.memory_space<vmem>>, %arg6: memref<1x32xf32, #tpu.memory_space<vmem>>, %arg7: memref<1x32xf32, #tpu.memory_space<vmem>>, %arg8: memref<32x64xf32, #tpu.memory_space<vmem>>, %arg9: memref<1x64xf32, #tpu.memory_space<vmem>>, %arg10: memref<64x32xf32, #tpu.memory_space<vmem>>, %arg11: memref<1x32xf32, #tpu.memory_space<vmem>>, %arg12: memref<1x32xf32, #tpu.memory_space<vmem>>, %arg13: memref<1x32xf32, #tpu.memory_space<vmem>>, %arg14: memref<1x8x32xf32, #tpu.memory_space<vmem>>) attributes {dimension_semantics = [#tpu.dimension_semantics<parallel>], iteration_bounds = array<i64: 2>, scalar_prefetch = 0 : i64, scratch_operands = 0 : i64, tpu.core_type = #tpu.core_type<tc>, window_params = [{transform_indices = @transform_0, window_bounds = array<i64: 1, 8, 32>}, {pipeline_mode = #tpu.pipeline_mode<synchronous>, transform_indices = @transform_1, window_bounds = array<i64: 32, 96>}, {pipeline_mode = #tpu.pipeline_mode<synchronous>, transform_indices = @transform_2, window_bounds = array<i64: 1, 96>}, {pipeline_mode = #tpu.pipeline_mode<synchronous>, transform_indices = @transform_3, window_bounds = array<i64: 32, 32>}, {pipeline_mode = #tpu.pipeline_mode<synchronous>, transform_indices = @transform_4, window_bounds = array<i64: 1, 32>}, {pipeline_mode = #tpu.pipeline_mode<synchronous>, transform_indices = @transform_5, window_bounds = array<i64: 1, 32>}, {pipeline_mode = #tpu.pipeline_mode<synchronous>, transform_indices = @transform_6, window_bounds = array<i64: 1, 32>}, {pipeline_mode = #tpu.pipeline_mode<synchronous>, transform_indices = @transform_7, window_bounds = array<i64: 32, 64>}, {pipeline_mode = #tpu.pipeline_mode<synchronous>, transform_indices = @transform_8, window_bounds = array<i64: 1, 64>}, {pipeline_mode = #tpu.pipeline_mode<synchronous>, transform_indices = @transform_9, window_bounds = array<i64: 64, 32>}, {pipeline_mode = #tpu.pipeline_mode<synchronous>, transform_indices = @transform_10, window_bounds = array<i64: 1, 32>}, {pipeline_mode = #tpu.pipeline_mode<synchronous>, transform_indices = @transform_11, window_bounds = array<i64: 1, 32>}, {pipeline_mode = #tpu.pipeline_mode<synchronous>, transform_indices = @transform_12, window_bounds = array<i64: 1, 32>}, {transform_indices = @transform_13, window_bounds = array<i64: 1, 8, 32>}]} {
    %c0 = arith.constant 0 : index
    %c0_0 = arith.constant 0 : index
    %c0_1 = arith.constant 0 : index
    %0 = vector.load %arg1[%c0, %c0_0, %c0_1] : memref<1x8x32xf32, #tpu.memory_space<vmem>>, vector<1x8x32xf32>
    %1 = vector.shape_cast %0 : vector<1x8x32xf32> to vector<8x32xf32>
    %c0_2 = arith.constant 0 : index
    %c0_3 = arith.constant 0 : index
    %2 = vector.load %arg2[%c0_2, %c0_3] : memref<32x96xf32, #tpu.memory_space<vmem>>, vector<32x96xf32>
    %c0_4 = arith.constant 0 : index
    %c0_5 = arith.constant 0 : index
    %3 = vector.load %arg3[%c0_4, %c0_5] : memref<1x96xf32, #tpu.memory_space<vmem>>, vector<1x96xf32>
    %c0_6 = arith.constant 0 : index
    %c0_7 = arith.constant 0 : index
    %4 = vector.load %arg4[%c0_6, %c0_7] : memref<32x32xf32, #tpu.memory_space<vmem>>, vector<32x32xf32>
    %c0_8 = arith.constant 0 : index
    %c0_9 = arith.constant 0 : index
    %5 = vector.load %arg5[%c0_8, %c0_9] : memref<1x32xf32, #tpu.memory_space<vmem>>, vector<1x32xf32>
    %cst = arith.constant dense<0.000000e+00> : vector<8x96xf32>
    %6 = tpu.matmul %1, %2, %cst {dimension_numbers = #tpu.dot_dimension_numbers<[1], [0], [0], [1], [0, 0, 1, 1], [], []>} : vector<8x32xf32>, vector<32x96xf32>, vector<8x96xf32> -> vector<8x96xf32>
    %7 = vector.broadcast %3 : vector<1x96xf32> to vector<8x96xf32>
    %8 = arith.addf %6, %7 : vector<8x96xf32>
    %9 = vector.extract_strided_slice %8 {offsets = [0, 0], sizes = [8, 32], strides = [1, 1]} : vector<8x96xf32> to vector<8x32xf32>
    %10 = vector.extract_strided_slice %8 {offsets = [0, 32], sizes = [8, 32], strides = [1, 1]} : vector<8x96xf32> to vector<8x32xf32>
    %11 = vector.extract_strided_slice %8 {offsets = [0, 64], sizes = [8, 32], strides = [1, 1]} : vector<8x96xf32> to vector<8x32xf32>
    %12 = vector.shape_cast %5 : vector<1x32xf32> to vector<1x32xf32>
    %13 = vector.broadcast %12 : vector<1x32xf32> to vector<8x32xf32>
    %14 = vector.extract_strided_slice %9 {offsets = [0, 0], sizes = [8, 8], strides = [1, 1]} : vector<8x32xf32> to vector<8x8xf32>
    %15 = vector.extract_strided_slice %10 {offsets = [0, 0], sizes = [8, 8], strides = [1, 1]} : vector<8x32xf32> to vector<8x8xf32>
    %16 = vector.extract_strided_slice %11 {offsets = [0, 0], sizes = [8, 8], strides = [1, 1]} : vector<8x32xf32> to vector<8x8xf32>
    %cst_10 = arith.constant dense<0.000000e+00> : vector<8x8xf32>
    %17 = tpu.matmul %14, %15, %cst_10 {dimension_numbers = #tpu.dot_dimension_numbers<[1], [1], [0], [0], [0, 0, 1, 0], [], []>} : vector<8x8xf32>, vector<8x8xf32>, vector<8x8xf32> -> vector<8x8xf32>
    %cst_11 = arith.constant 0.353553385 : f32
    %18 = vector.broadcast %cst_11 : f32 to vector<8x8xf32>
    %19 = arith.mulf %17, %18 : vector<8x8xf32>
    %cst_12 = arith.constant dense<0xFF800000> : vector<8xf32>
    %20 = vector.multi_reduction <maximumf>, %19, %cst_12 [1] : vector<8x8xf32> to vector<8xf32>
    %21 = vector.shape_cast %20 : vector<8xf32> to vector<8x1xf32>
    %22 = vector.broadcast %21 : vector<8x1xf32> to vector<8x8xf32>
    %23 = arith.subf %19, %22 : vector<8x8xf32>
    %24 = math.exp %23 : vector<8x8xf32>
    %cst_13 = arith.constant dense<0.000000e+00> : vector<8xf32>
    %25 = vector.multi_reduction <add>, %24, %cst_13 [1] : vector<8x8xf32> to vector<8xf32>
    %26 = vector.shape_cast %25 : vector<8xf32> to vector<8x1xf32>
    %27 = tpu.reciprocal %26 {approx = true} : vector<8x1xf32> -> vector<8x1xf32>
    %28 = vector.broadcast %27 : vector<8x1xf32> to vector<8x8xf32>
    %29 = arith.mulf %24, %28 : vector<8x8xf32>
    %cst_14 = arith.constant dense<0.000000e+00> : vector<8x8xf32>
    %30 = tpu.matmul %29, %16, %cst_14 {dimension_numbers = #tpu.dot_dimension_numbers<[1], [0], [0], [1], [0, 0, 1, 1], [], []>} : vector<8x8xf32>, vector<8x8xf32>, vector<8x8xf32> -> vector<8x8xf32>
    %31 = vector.extract_strided_slice %4 {offsets = [0, 0], sizes = [8, 32], strides = [1, 1]} : vector<32x32xf32> to vector<8x32xf32>
    %cst_15 = arith.constant dense<0.000000e+00> : vector<8x32xf32>
    %32 = tpu.matmul %30, %31, %cst_15 {dimension_numbers = #tpu.dot_dimension_numbers<[1], [0], [0], [1], [0, 0, 1, 1], [], []>} : vector<8x8xf32>, vector<8x32xf32>, vector<8x32xf32> -> vector<8x32xf32>
    %33 = arith.addf %13, %32 : vector<8x32xf32>
    %34 = vector.extract_strided_slice %9 {offsets = [0, 8], sizes = [8, 8], strides = [1, 1]} : vector<8x32xf32> to vector<8x8xf32>
    %35 = vector.extract_strided_slice %10 {offsets = [0, 8], sizes = [8, 8], strides = [1, 1]} : vector<8x32xf32> to vector<8x8xf32>
    %36 = vector.extract_strided_slice %11 {offsets = [0, 8], sizes = [8, 8], strides = [1, 1]} : vector<8x32xf32> to vector<8x8xf32>
    %cst_16 = arith.constant dense<0.000000e+00> : vector<8x8xf32>
    %37 = tpu.matmul %34, %35, %cst_16 {dimension_numbers = #tpu.dot_dimension_numbers<[1], [1], [0], [0], [0, 0, 1, 0], [], []>} : vector<8x8xf32>, vector<8x8xf32>, vector<8x8xf32> -> vector<8x8xf32>
    %cst_17 = arith.constant 0.353553385 : f32
    %38 = vector.broadcast %cst_17 : f32 to vector<8x8xf32>
    %39 = arith.mulf %37, %38 : vector<8x8xf32>
    %cst_18 = arith.constant dense<0xFF800000> : vector<8xf32>
    %40 = vector.multi_reduction <maximumf>, %39, %cst_18 [1] : vector<8x8xf32> to vector<8xf32>
    %41 = vector.shape_cast %40 : vector<8xf32> to vector<8x1xf32>
    %42 = vector.broadcast %41 : vector<8x1xf32> to vector<8x8xf32>
    %43 = arith.subf %39, %42 : vector<8x8xf32>
    %44 = math.exp %43 : vector<8x8xf32>
    %cst_19 = arith.constant dense<0.000000e+00> : vector<8xf32>
    %45 = vector.multi_reduction <add>, %44, %cst_19 [1] : vector<8x8xf32> to vector<8xf32>
    %46 = vector.shape_cast %45 : vector<8xf32> to vector<8x1xf32>
    %47 = tpu.reciprocal %46 {approx = true} : vector<8x1xf32> -> vector<8x1xf32>
    %48 = vector.broadcast %47 : vector<8x1xf32> to vector<8x8xf32>
    %49 = arith.mulf %44, %48 : vector<8x8xf32>
    %cst_20 = arith.constant dense<0.000000e+00> : vector<8x8xf32>
    %50 = tpu.matmul %49, %36, %cst_20 {dimension_numbers = #tpu.dot_dimension_numbers<[1], [0], [0], [1], [0, 0, 1, 1], [], []>} : vector<8x8xf32>, vector<8x8xf32>, vector<8x8xf32> -> vector<8x8xf32>
    %51 = vector.extract_strided_slice %4 {offsets = [8, 0], sizes = [8, 32], strides = [1, 1]} : vector<32x32xf32> to vector<8x32xf32>
    %cst_21 = arith.constant dense<0.000000e+00> : vector<8x32xf32>
    %52 = tpu.matmul %50, %51, %cst_21 {dimension_numbers = #tpu.dot_dimension_numbers<[1], [0], [0], [1], [0, 0, 1, 1], [], []>} : vector<8x8xf32>, vector<8x32xf32>, vector<8x32xf32> -> vector<8x32xf32>
    %53 = arith.addf %33, %52 : vector<8x32xf32>
    %54 = vector.extract_strided_slice %9 {offsets = [0, 16], sizes = [8, 8], strides = [1, 1]} : vector<8x32xf32> to vector<8x8xf32>
    %55 = vector.extract_strided_slice %10 {offsets = [0, 16], sizes = [8, 8], strides = [1, 1]} : vector<8x32xf32> to vector<8x8xf32>
    %56 = vector.extract_strided_slice %11 {offsets = [0, 16], sizes = [8, 8], strides = [1, 1]} : vector<8x32xf32> to vector<8x8xf32>
    %cst_22 = arith.constant dense<0.000000e+00> : vector<8x8xf32>
    %57 = tpu.matmul %54, %55, %cst_22 {dimension_numbers = #tpu.dot_dimension_numbers<[1], [1], [0], [0], [0, 0, 1, 0], [], []>} : vector<8x8xf32>, vector<8x8xf32>, vector<8x8xf32> -> vector<8x8xf32>
    %cst_23 = arith.constant 0.353553385 : f32
    %58 = vector.broadcast %cst_23 : f32 to vector<8x8xf32>
    %59 = arith.mulf %57, %58 : vector<8x8xf32>
    %cst_24 = arith.constant dense<0xFF800000> : vector<8xf32>
    %60 = vector.multi_reduction <maximumf>, %59, %cst_24 [1] : vector<8x8xf32> to vector<8xf32>
    %61 = vector.shape_cast %60 : vector<8xf32> to vector<8x1xf32>
    %62 = vector.broadcast %61 : vector<8x1xf32> to vector<8x8xf32>
    %63 = arith.subf %59, %62 : vector<8x8xf32>
    %64 = math.exp %63 : vector<8x8xf32>
    %cst_25 = arith.constant dense<0.000000e+00> : vector<8xf32>
    %65 = vector.multi_reduction <add>, %64, %cst_25 [1] : vector<8x8xf32> to vector<8xf32>
    %66 = vector.shape_cast %65 : vector<8xf32> to vector<8x1xf32>
    %67 = tpu.reciprocal %66 {approx = true} : vector<8x1xf32> -> vector<8x1xf32>
    %68 = vector.broadcast %67 : vector<8x1xf32> to vector<8x8xf32>
    %69 = arith.mulf %64, %68 : vector<8x8xf32>
    %cst_26 = arith.constant dense<0.000000e+00> : vector<8x8xf32>
    %70 = tpu.matmul %69, %56, %cst_26 {dimension_numbers = #tpu.dot_dimension_numbers<[1], [0], [0], [1], [0, 0, 1, 1], [], []>} : vector<8x8xf32>, vector<8x8xf32>, vector<8x8xf32> -> vector<8x8xf32>
    %71 = vector.extract_strided_slice %4 {offsets = [16, 0], sizes = [8, 32], strides = [1, 1]} : vector<32x32xf32> to vector<8x32xf32>
    %cst_27 = arith.constant dense<0.000000e+00> : vector<8x32xf32>
    %72 = tpu.matmul %70, %71, %cst_27 {dimension_numbers = #tpu.dot_dimension_numbers<[1], [0], [0], [1], [0, 0, 1, 1], [], []>} : vector<8x8xf32>, vector<8x32xf32>, vector<8x32xf32> -> vector<8x32xf32>
    %73 = arith.addf %53, %72 : vector<8x32xf32>
    %74 = vector.extract_strided_slice %9 {offsets = [0, 24], sizes = [8, 8], strides = [1, 1]} : vector<8x32xf32> to vector<8x8xf32>
    %75 = vector.extract_strided_slice %10 {offsets = [0, 24], sizes = [8, 8], strides = [1, 1]} : vector<8x32xf32> to vector<8x8xf32>
    %76 = vector.extract_strided_slice %11 {offsets = [0, 24], sizes = [8, 8], strides = [1, 1]} : vector<8x32xf32> to vector<8x8xf32>
    %cst_28 = arith.constant dense<0.000000e+00> : vector<8x8xf32>
    %77 = tpu.matmul %74, %75, %cst_28 {dimension_numbers = #tpu.dot_dimension_numbers<[1], [1], [0], [0], [0, 0, 1, 0], [], []>} : vector<8x8xf32>, vector<8x8xf32>, vector<8x8xf32> -> vector<8x8xf32>
    %cst_29 = arith.constant 0.353553385 : f32
    %78 = vector.broadcast %cst_29 : f32 to vector<8x8xf32>
    %79 = arith.mulf %77, %78 : vector<8x8xf32>
    %cst_30 = arith.constant dense<0xFF800000> : vector<8xf32>
    %80 = vector.multi_reduction <maximumf>, %79, %cst_30 [1] : vector<8x8xf32> to vector<8xf32>
    %81 = vector.shape_cast %80 : vector<8xf32> to vector<8x1xf32>
    %82 = vector.broadcast %81 : vector<8x1xf32> to vector<8x8xf32>
    %83 = arith.subf %79, %82 : vector<8x8xf32>
    %84 = math.exp %83 : vector<8x8xf32>
    %cst_31 = arith.constant dense<0.000000e+00> : vector<8xf32>
    %85 = vector.multi_reduction <add>, %84, %cst_31 [1] : vector<8x8xf32> to vector<8xf32>
    %86 = vector.shape_cast %85 : vector<8xf32> to vector<8x1xf32>
    %87 = tpu.reciprocal %86 {approx = true} : vector<8x1xf32> -> vector<8x1xf32>
    %88 = vector.broadcast %87 : vector<8x1xf32> to vector<8x8xf32>
    %89 = arith.mulf %84, %88 : vector<8x8xf32>
    %cst_32 = arith.constant dense<0.000000e+00> : vector<8x8xf32>
    %90 = tpu.matmul %89, %76, %cst_32 {dimension_numbers = #tpu.dot_dimension_numbers<[1], [0], [0], [1], [0, 0, 1, 1], [], []>} : vector<8x8xf32>, vector<8x8xf32>, vector<8x8xf32> -> vector<8x8xf32>
    %91 = vector.extract_strided_slice %4 {offsets = [24, 0], sizes = [8, 32], strides = [1, 1]} : vector<32x32xf32> to vector<8x32xf32>
    %cst_33 = arith.constant dense<0.000000e+00> : vector<8x32xf32>
    %92 = tpu.matmul %90, %91, %cst_33 {dimension_numbers = #tpu.dot_dimension_numbers<[1], [0], [0], [1], [0, 0, 1, 1], [], []>} : vector<8x8xf32>, vector<8x32xf32>, vector<8x32xf32> -> vector<8x32xf32>
    %93 = arith.addf %73, %92 : vector<8x32xf32>
    %94 = arith.addf %1, %93 : vector<8x32xf32>
    %c0_34 = arith.constant 0 : index
    %c0_35 = arith.constant 0 : index
    %95 = vector.load %arg6[%c0_34, %c0_35] : memref<1x32xf32, #tpu.memory_space<vmem>>, vector<1x32xf32>
    %c0_36 = arith.constant 0 : index
    %c0_37 = arith.constant 0 : index
    %96 = vector.load %arg7[%c0_36, %c0_37] : memref<1x32xf32, #tpu.memory_space<vmem>>, vector<1x32xf32>
    %cst_38 = arith.constant dense<0.000000e+00> : vector<8xf32>
    %97 = vector.multi_reduction <add>, %94, %cst_38 [1] : vector<8x32xf32> to vector<8xf32>
    %98 = vector.shape_cast %97 : vector<8xf32> to vector<8x1xf32>
    %cst_39 = arith.constant 3.200000e+01 : f32
    %99 = vector.broadcast %cst_39 : f32 to vector<8x1xf32>
    %100 = arith.divf %98, %99 : vector<8x1xf32>
    %101 = vector.broadcast %100 : vector<8x1xf32> to vector<8x32xf32>
    %102 = arith.subf %94, %101 : vector<8x32xf32>
    %103 = arith.mulf %102, %102 : vector<8x32xf32>
    %cst_40 = arith.constant dense<0.000000e+00> : vector<8xf32>
    %104 = vector.multi_reduction <add>, %103, %cst_40 [1] : vector<8x32xf32> to vector<8xf32>
    %105 = vector.shape_cast %104 : vector<8xf32> to vector<8x1xf32>
    %cst_41 = arith.constant 3.200000e+01 : f32
    %106 = vector.broadcast %cst_41 : f32 to vector<8x1xf32>
    %107 = arith.divf %105, %106 : vector<8x1xf32>
    %cst_42 = arith.constant 9.99999974E-6 : f32
    %108 = vector.broadcast %cst_42 : f32 to vector<8x1xf32>
    %109 = arith.addf %107, %108 : vector<8x1xf32>
    %110 = math.rsqrt %109 : vector<8x1xf32>
    %111 = vector.broadcast %110 : vector<8x1xf32> to vector<8x32xf32>
    %112 = arith.mulf %102, %111 : vector<8x32xf32>
    %113 = vector.broadcast %95 : vector<1x32xf32> to vector<8x32xf32>
    %114 = arith.mulf %112, %113 : vector<8x32xf32>
    %115 = vector.broadcast %96 : vector<1x32xf32> to vector<8x32xf32>
    %116 = arith.addf %114, %115 : vector<8x32xf32>
    %c0_43 = arith.constant 0 : index
    %c0_44 = arith.constant 0 : index
    %117 = vector.load %arg8[%c0_43, %c0_44] : memref<32x64xf32, #tpu.memory_space<vmem>>, vector<32x64xf32>
    %c0_45 = arith.constant 0 : index
    %c0_46 = arith.constant 0 : index
    %118 = vector.load %arg9[%c0_45, %c0_46] : memref<1x64xf32, #tpu.memory_space<vmem>>, vector<1x64xf32>
    %c0_47 = arith.constant 0 : index
    %c0_48 = arith.constant 0 : index
    %119 = vector.load %arg10[%c0_47, %c0_48] : memref<64x32xf32, #tpu.memory_space<vmem>>, vector<64x32xf32>
    %c0_49 = arith.constant 0 : index
    %c0_50 = arith.constant 0 : index
    %120 = vector.load %arg11[%c0_49, %c0_50] : memref<1x32xf32, #tpu.memory_space<vmem>>, vector<1x32xf32>
    %cst_51 = arith.constant dense<0.000000e+00> : vector<8x64xf32>
    %121 = tpu.matmul %116, %117, %cst_51 {dimension_numbers = #tpu.dot_dimension_numbers<[1], [0], [0], [1], [0, 0, 1, 1], [], []>} : vector<8x32xf32>, vector<32x64xf32>, vector<8x64xf32> -> vector<8x64xf32>
    %122 = vector.broadcast %118 : vector<1x64xf32> to vector<8x64xf32>
    %123 = arith.addf %121, %122 : vector<8x64xf32>
    %cst_52 = arith.constant 0.000000e+00 : f32
    %124 = vector.broadcast %cst_52 : f32 to vector<8x64xf32>
    %125 = arith.maximumf %123, %124 : vector<8x64xf32>
    %cst_53 = arith.constant dense<0.000000e+00> : vector<8x32xf32>
    %126 = tpu.matmul %125, %119, %cst_53 {dimension_numbers = #tpu.dot_dimension_numbers<[1], [0], [0], [1], [0, 0, 1, 1], [], []>} : vector<8x64xf32>, vector<64x32xf32>, vector<8x32xf32> -> vector<8x32xf32>
    %127 = vector.broadcast %120 : vector<1x32xf32> to vector<8x32xf32>
    %128 = arith.addf %126, %127 : vector<8x32xf32>
    %129 = arith.addf %116, %128 : vector<8x32xf32>
    %c0_54 = arith.constant 0 : index
    %c0_55 = arith.constant 0 : index
    %130 = vector.load %arg12[%c0_54, %c0_55] : memref<1x32xf32, #tpu.memory_space<vmem>>, vector<1x32xf32>
    %c0_56 = arith.constant 0 : index
    %c0_57 = arith.constant 0 : index
    %131 = vector.load %arg13[%c0_56, %c0_57] : memref<1x32xf32, #tpu.memory_space<vmem>>, vector<1x32xf32>
    %cst_58 = arith.constant dense<0.000000e+00> : vector<8xf32>
    %132 = vector.multi_reduction <add>, %129, %cst_58 [1] : vector<8x32xf32> to vector<8xf32>
    %133 = vector.shape_cast %132 : vector<8xf32> to vector<8x1xf32>
    %cst_59 = arith.constant 3.200000e+01 : f32
    %134 = vector.broadcast %cst_59 : f32 to vector<8x1xf32>
    %135 = arith.divf %133, %134 : vector<8x1xf32>
    %136 = vector.broadcast %135 : vector<8x1xf32> to vector<8x32xf32>
    %137 = arith.subf %129, %136 : vector<8x32xf32>
    %138 = arith.mulf %137, %137 : vector<8x32xf32>
    %cst_60 = arith.constant dense<0.000000e+00> : vector<8xf32>
    %139 = vector.multi_reduction <add>, %138, %cst_60 [1] : vector<8x32xf32> to vector<8xf32>
    %140 = vector.shape_cast %139 : vector<8xf32> to vector<8x1xf32>
    %cst_61 = arith.constant 3.200000e+01 : f32
    %141 = vector.broadcast %cst_61 : f32 to vector<8x1xf32>
    %142 = arith.divf %140, %141 : vector<8x1xf32>
    %cst_62 = arith.constant 9.99999974E-6 : f32
    %143 = vector.broadcast %cst_62 : f32 to vector<8x1xf32>
    %144 = arith.addf %142, %143 : vector<8x1xf32>
    %145 = math.rsqrt %144 : vector<8x1xf32>
    %146 = vector.broadcast %145 : vector<8x1xf32> to vector<8x32xf32>
    %147 = arith.mulf %137, %146 : vector<8x32xf32>
    %148 = vector.broadcast %130 : vector<1x32xf32> to vector<8x32xf32>
    %149 = arith.mulf %147, %148 : vector<8x32xf32>
    %150 = vector.broadcast %131 : vector<1x32xf32> to vector<8x32xf32>
    %151 = arith.addf %149, %150 : vector<8x32xf32>
    %c0_63 = arith.constant 0 : index
    %c0_64 = arith.constant 0 : index
    %c0_65 = arith.constant 0 : index
    %152 = vector.load %arg14[%c0_63, %c0_64, %c0_65] : memref<1x8x32xf32, #tpu.memory_space<vmem>>, vector<1x8x32xf32>
    %153 = vector.shape_cast %152 : vector<1x8x32xf32> to vector<8x32xf32>
    %154 = vector.shape_cast %151 : vector<8x32xf32> to vector<1x8x32xf32>
    tpu.vector_store %arg14[%c0_63, %c0_64, %c0_65], %154 {strides = array<i32>} : memref<1x8x32xf32, #tpu.memory_space<vmem>>, vector<1x8x32xf32>,
    return
  }
  func.func @transform_0(%arg0: i32) -> (i32, i32, i32) {
    %c0_i32 = arith.constant 0 : i32
    %c0_i32_0 = arith.constant 0 : i32
    %c0_i32_1 = arith.constant 0 : i32
    return %arg0, %c0_i32, %c0_i32_0 : i32, i32, i32
  }
  func.func @transform_1(%arg0: i32) -> (i32, i32) {
    %c0_i32 = arith.constant 0 : i32
    %c0_i32_0 = arith.constant 0 : i32
    %c0_i32_1 = arith.constant 0 : i32
    return %c0_i32, %c0_i32_0 : i32, i32
  }
  func.func @transform_2(%arg0: i32) -> (i32, i32) {
    %c0_i32 = arith.constant 0 : i32
    %c0_i32_0 = arith.constant 0 : i32
    %c0_i32_1 = arith.constant 0 : i32
    return %c0_i32, %c0_i32_0 : i32, i32
  }
  func.func @transform_3(%arg0: i32) -> (i32, i32) {
    %c0_i32 = arith.constant 0 : i32
    %c0_i32_0 = arith.constant 0 : i32
    %c0_i32_1 = arith.constant 0 : i32
    return %c0_i32, %c0_i32_0 : i32, i32
  }
  func.func @transform_4(%arg0: i32) -> (i32, i32) {
    %c0_i32 = arith.constant 0 : i32
    %c0_i32_0 = arith.constant 0 : i32
    %c0_i32_1 = arith.constant 0 : i32
    return %c0_i32, %c0_i32_0 : i32, i32
  }
  func.func @transform_5(%arg0: i32) -> (i32, i32) {
    %c0_i32 = arith.constant 0 : i32
    %c0_i32_0 = arith.constant 0 : i32
    %c0_i32_1 = arith.constant 0 : i32
    return %c0_i32, %c0_i32_0 : i32, i32
  }
  func.func @transform_6(%arg0: i32) -> (i32, i32) {
    %c0_i32 = arith.constant 0 : i32
    %c0_i32_0 = arith.constant 0 : i32
    %c0_i32_1 = arith.constant 0 : i32
    return %c0_i32, %c0_i32_0 : i32, i32
  }
  func.func @transform_7(%arg0: i32) -> (i32, i32) {
    %c0_i32 = arith.constant 0 : i32
    %c0_i32_0 = arith.constant 0 : i32
    %c0_i32_1 = arith.constant 0 : i32
    return %c0_i32, %c0_i32_0 : i32, i32
  }
  func.func @transform_8(%arg0: i32) -> (i32, i32) {
    %c0_i32 = arith.constant 0 : i32
    %c0_i32_0 = arith.constant 0 : i32
    %c0_i32_1 = arith.constant 0 : i32
    return %c0_i32, %c0_i32_0 : i32, i32
  }
  func.func @transform_9(%arg0: i32) -> (i32, i32) {
    %c0_i32 = arith.constant 0 : i32
    %c0_i32_0 = arith.constant 0 : i32
    %c0_i32_1 = arith.constant 0 : i32
    return %c0_i32, %c0_i32_0 : i32, i32
  }
  func.func @transform_10(%arg0: i32) -> (i32, i32) {
    %c0_i32 = arith.constant 0 : i32
    %c0_i32_0 = arith.constant 0 : i32
    %c0_i32_1 = arith.constant 0 : i32
    return %c0_i32, %c0_i32_0 : i32, i32
  }
  func.func @transform_11(%arg0: i32) -> (i32, i32) {
    %c0_i32 = arith.constant 0 : i32
    %c0_i32_0 = arith.constant 0 : i32
    %c0_i32_1 = arith.constant 0 : i32
    return %c0_i32, %c0_i32_0 : i32, i32
  }
  func.func @transform_12(%arg0: i32) -> (i32, i32) {
    %c0_i32 = arith.constant 0 : i32
    %c0_i32_0 = arith.constant 0 : i32
    %c0_i32_1 = arith.constant 0 : i32
    return %c0_i32, %c0_i32_0 : i32, i32
  }
  func.func @transform_13(%arg0: i32) -> (i32, i32, i32) {
    %c0_i32 = arith.constant 0 : i32
    %c0_i32_0 = arith.constant 0 : i32
    %c0_i32_1 = arith.constant 0 : i32
    return %arg0, %c0_i32, %c0_i32_0 : i32, i32, i32
  }
}

module attributes {stable_mosaic.version = 11 : i64} {
  func.func @_decoder_layer_kernel(%arg0: i32, %arg1: memref<1x8x32xf32, #tpu.memory_space<vmem>>, %arg2: memref<1x8x32xf32, #tpu.memory_space<vmem>>, %arg3: memref<8x8xf32, #tpu.memory_space<vmem>>, %arg4: memref<32x96xf32, #tpu.memory_space<vmem>>, %arg5: memref<1x96xf32, #tpu.memory_space<vmem>>, %arg6: memref<32x32xf32, #tpu.memory_space<vmem>>, %arg7: memref<1x32xf32, #tpu.memory_space<vmem>>, %arg8: memref<1x32xf32, #tpu.memory_space<vmem>>, %arg9: memref<1x32xf32, #tpu.memory_space<vmem>>, %arg10: memref<32x32xf32, #tpu.memory_space<vmem>>, %arg11: memref<1x32xf32, #tpu.memory_space<vmem>>, %arg12: memref<32x64xf32, #tpu.memory_space<vmem>>, %arg13: memref<1x64xf32, #tpu.memory_space<vmem>>, %arg14: memref<32x32xf32, #tpu.memory_space<vmem>>, %arg15: memref<1x32xf32, #tpu.memory_space<vmem>>, %arg16: memref<1x32xf32, #tpu.memory_space<vmem>>, %arg17: memref<1x32xf32, #tpu.memory_space<vmem>>, %arg18: memref<32x64xf32, #tpu.memory_space<vmem>>, %arg19: memref<1x64xf32, #tpu.memory_space<vmem>>, %arg20: memref<64x32xf32, #tpu.memory_space<vmem>>, %arg21: memref<1x32xf32, #tpu.memory_space<vmem>>, %arg22: memref<1x32xf32, #tpu.memory_space<vmem>>, %arg23: memref<1x32xf32, #tpu.memory_space<vmem>>, %arg24: memref<1x8x32xf32, #tpu.memory_space<vmem>>) attributes {dimension_semantics = [#tpu.dimension_semantics<parallel>], iteration_bounds = array<i64: 2>, scalar_prefetch = 0 : i64, scratch_operands = 0 : i64, tpu.core_type = #tpu.core_type<tc>, window_params = [{transform_indices = @transform_0, window_bounds = array<i64: 1, 8, 32>}, {transform_indices = @transform_1, window_bounds = array<i64: 1, 8, 32>}, {pipeline_mode = #tpu.pipeline_mode<synchronous>, transform_indices = @transform_2, window_bounds = array<i64: 8, 8>}, {pipeline_mode = #tpu.pipeline_mode<synchronous>, transform_indices = @transform_3, window_bounds = array<i64: 32, 96>}, {pipeline_mode = #tpu.pipeline_mode<synchronous>, transform_indices = @transform_4, window_bounds = array<i64: 1, 96>}, {pipeline_mode = #tpu.pipeline_mode<synchronous>, transform_indices = @transform_5, window_bounds = array<i64: 32, 32>}, {pipeline_mode = #tpu.pipeline_mode<synchronous>, transform_indices = @transform_6, window_bounds = array<i64: 1, 32>}, {pipeline_mode = #tpu.pipeline_mode<synchronous>, transform_indices = @transform_7, window_bounds = array<i64: 1, 32>}, {pipeline_mode = #tpu.pipeline_mode<synchronous>, transform_indices = @transform_8, window_bounds = array<i64: 1, 32>}, {pipeline_mode = #tpu.pipeline_mode<synchronous>, transform_indices = @transform_9, window_bounds = array<i64: 32, 32>}, {pipeline_mode = #tpu.pipeline_mode<synchronous>, transform_indices = @transform_10, window_bounds = array<i64: 1, 32>}, {pipeline_mode = #tpu.pipeline_mode<synchronous>, transform_indices = @transform_11, window_bounds = array<i64: 32, 64>}, {pipeline_mode = #tpu.pipeline_mode<synchronous>, transform_indices = @transform_12, window_bounds = array<i64: 1, 64>}, {pipeline_mode = #tpu.pipeline_mode<synchronous>, transform_indices = @transform_13, window_bounds = array<i64: 32, 32>}, {pipeline_mode = #tpu.pipeline_mode<synchronous>, transform_indices = @transform_14, window_bounds = array<i64: 1, 32>}, {pipeline_mode = #tpu.pipeline_mode<synchronous>, transform_indices = @transform_15, window_bounds = array<i64: 1, 32>}, {pipeline_mode = #tpu.pipeline_mode<synchronous>, transform_indices = @transform_16, window_bounds = array<i64: 1, 32>}, {pipeline_mode = #tpu.pipeline_mode<synchronous>, transform_indices = @transform_17, window_bounds = array<i64: 32, 64>}, {pipeline_mode = #tpu.pipeline_mode<synchronous>, transform_indices = @transform_18, window_bounds = array<i64: 1, 64>}, {pipeline_mode = #tpu.pipeline_mode<synchronous>, transform_indices = @transform_19, window_bounds = array<i64: 64, 32>}, {pipeline_mode = #tpu.pipeline_mode<synchronous>, transform_indices = @transform_20, window_bounds = array<i64: 1, 32>}, {pipeline_mode = #tpu.pipeline_mode<synchronous>, transform_indices = @transform_21, window_bounds = array<i64: 1, 32>}, {pipeline_mode = #tpu.pipeline_mode<synchronous>, transform_indices = @transform_22, window_bounds = array<i64: 1, 32>}, {transform_indices = @transform_23, window_bounds = array<i64: 1, 8, 32>}]} {
    %c0 = arith.constant 0 : index
    %c0_0 = arith.constant 0 : index
    %c0_1 = arith.constant 0 : index
    %0 = vector.load %arg1[%c0, %c0_0, %c0_1] : memref<1x8x32xf32, #tpu.memory_space<vmem>>, vector<1x8x32xf32>
    %1 = vector.shape_cast %0 : vector<1x8x32xf32> to vector<8x32xf32>
    %c0_2 = arith.constant 0 : index
    %c0_3 = arith.constant 0 : index
    %c0_4 = arith.constant 0 : index
    %2 = vector.load %arg2[%c0_2, %c0_3, %c0_4] : memref<1x8x32xf32, #tpu.memory_space<vmem>>, vector<1x8x32xf32>
    %3 = vector.shape_cast %2 : vector<1x8x32xf32> to vector<8x32xf32>
    %c0_5 = arith.constant 0 : index
    %c0_6 = arith.constant 0 : index
    %4 = vector.load %arg3[%c0_5, %c0_6] : memref<8x8xf32, #tpu.memory_space<vmem>>, vector<8x8xf32>
    %c0_7 = arith.constant 0 : index
    %c0_8 = arith.constant 0 : index
    %5 = vector.load %arg4[%c0_7, %c0_8] : memref<32x96xf32, #tpu.memory_space<vmem>>, vector<32x96xf32>
    %c0_9 = arith.constant 0 : index
    %c0_10 = arith.constant 0 : index
    %6 = vector.load %arg5[%c0_9, %c0_10] : memref<1x96xf32, #tpu.memory_space<vmem>>, vector<1x96xf32>
    %c0_11 = arith.constant 0 : index
    %c0_12 = arith.constant 0 : index
    %7 = vector.load %arg6[%c0_11, %c0_12] : memref<32x32xf32, #tpu.memory_space<vmem>>, vector<32x32xf32>
    %c0_13 = arith.constant 0 : index
    %c0_14 = arith.constant 0 : index
    %8 = vector.load %arg7[%c0_13, %c0_14] : memref<1x32xf32, #tpu.memory_space<vmem>>, vector<1x32xf32>
    %cst = arith.constant dense<0.000000e+00> : vector<8x96xf32>
    %9 = tpu.matmul %1, %5, %cst {dimension_numbers = #tpu.dot_dimension_numbers<[1], [0], [0], [1], [0, 0, 1, 1], [], []>} : vector<8x32xf32>, vector<32x96xf32>, vector<8x96xf32> -> vector<8x96xf32>
    %10 = vector.broadcast %6 : vector<1x96xf32> to vector<8x96xf32>
    %11 = arith.addf %9, %10 : vector<8x96xf32>
    %12 = vector.extract_strided_slice %11 {offsets = [0, 0], sizes = [8, 32], strides = [1, 1]} : vector<8x96xf32> to vector<8x32xf32>
    %13 = vector.extract_strided_slice %11 {offsets = [0, 32], sizes = [8, 32], strides = [1, 1]} : vector<8x96xf32> to vector<8x32xf32>
    %14 = vector.extract_strided_slice %11 {offsets = [0, 64], sizes = [8, 32], strides = [1, 1]} : vector<8x96xf32> to vector<8x32xf32>
    %15 = vector.shape_cast %8 : vector<1x32xf32> to vector<1x32xf32>
    %16 = vector.broadcast %15 : vector<1x32xf32> to vector<8x32xf32>
    %17 = vector.extract_strided_slice %12 {offsets = [0, 0], sizes = [8, 8], strides = [1, 1]} : vector<8x32xf32> to vector<8x8xf32>
    %18 = vector.extract_strided_slice %13 {offsets = [0, 0], sizes = [8, 8], strides = [1, 1]} : vector<8x32xf32> to vector<8x8xf32>
    %19 = vector.extract_strided_slice %14 {offsets = [0, 0], sizes = [8, 8], strides = [1, 1]} : vector<8x32xf32> to vector<8x8xf32>
    %cst_15 = arith.constant dense<0.000000e+00> : vector<8x8xf32>
    %20 = tpu.matmul %17, %18, %cst_15 {dimension_numbers = #tpu.dot_dimension_numbers<[1], [1], [0], [0], [0, 0, 1, 0], [], []>} : vector<8x8xf32>, vector<8x8xf32>, vector<8x8xf32> -> vector<8x8xf32>
    %cst_16 = arith.constant 0.353553385 : f32
    %21 = vector.broadcast %cst_16 : f32 to vector<8x8xf32>
    %22 = arith.mulf %20, %21 : vector<8x8xf32>
    %23 = arith.addf %22, %4 : vector<8x8xf32>
    %cst_17 = arith.constant dense<0xFF800000> : vector<8xf32>
    %24 = vector.multi_reduction <maximumf>, %23, %cst_17 [1] : vector<8x8xf32> to vector<8xf32>
    %25 = vector.shape_cast %24 : vector<8xf32> to vector<8x1xf32>
    %26 = vector.broadcast %25 : vector<8x1xf32> to vector<8x8xf32>
    %27 = arith.subf %23, %26 : vector<8x8xf32>
    %28 = math.exp %27 : vector<8x8xf32>
    %cst_18 = arith.constant dense<0.000000e+00> : vector<8xf32>
    %29 = vector.multi_reduction <add>, %28, %cst_18 [1] : vector<8x8xf32> to vector<8xf32>
    %30 = vector.shape_cast %29 : vector<8xf32> to vector<8x1xf32>
    %31 = tpu.reciprocal %30 {approx = true} : vector<8x1xf32> -> vector<8x1xf32>
    %32 = vector.broadcast %31 : vector<8x1xf32> to vector<8x8xf32>
    %33 = arith.mulf %28, %32 : vector<8x8xf32>
    %cst_19 = arith.constant dense<0.000000e+00> : vector<8x8xf32>
    %34 = tpu.matmul %33, %19, %cst_19 {dimension_numbers = #tpu.dot_dimension_numbers<[1], [0], [0], [1], [0, 0, 1, 1], [], []>} : vector<8x8xf32>, vector<8x8xf32>, vector<8x8xf32> -> vector<8x8xf32>
    %35 = vector.extract_strided_slice %7 {offsets = [0, 0], sizes = [8, 32], strides = [1, 1]} : vector<32x32xf32> to vector<8x32xf32>
    %cst_20 = arith.constant dense<0.000000e+00> : vector<8x32xf32>
    %36 = tpu.matmul %34, %35, %cst_20 {dimension_numbers = #tpu.dot_dimension_numbers<[1], [0], [0], [1], [0, 0, 1, 1], [], []>} : vector<8x8xf32>, vector<8x32xf32>, vector<8x32xf32> -> vector<8x32xf32>
    %37 = arith.addf %16, %36 : vector<8x32xf32>
    %38 = vector.extract_strided_slice %12 {offsets = [0, 8], sizes = [8, 8], strides = [1, 1]} : vector<8x32xf32> to vector<8x8xf32>
    %39 = vector.extract_strided_slice %13 {offsets = [0, 8], sizes = [8, 8], strides = [1, 1]} : vector<8x32xf32> to vector<8x8xf32>
    %40 = vector.extract_strided_slice %14 {offsets = [0, 8], sizes = [8, 8], strides = [1, 1]} : vector<8x32xf32> to vector<8x8xf32>
    %cst_21 = arith.constant dense<0.000000e+00> : vector<8x8xf32>
    %41 = tpu.matmul %38, %39, %cst_21 {dimension_numbers = #tpu.dot_dimension_numbers<[1], [1], [0], [0], [0, 0, 1, 0], [], []>} : vector<8x8xf32>, vector<8x8xf32>, vector<8x8xf32> -> vector<8x8xf32>
    %cst_22 = arith.constant 0.353553385 : f32
    %42 = vector.broadcast %cst_22 : f32 to vector<8x8xf32>
    %43 = arith.mulf %41, %42 : vector<8x8xf32>
    %44 = arith.addf %43, %4 : vector<8x8xf32>
    %cst_23 = arith.constant dense<0xFF800000> : vector<8xf32>
    %45 = vector.multi_reduction <maximumf>, %44, %cst_23 [1] : vector<8x8xf32> to vector<8xf32>
    %46 = vector.shape_cast %45 : vector<8xf32> to vector<8x1xf32>
    %47 = vector.broadcast %46 : vector<8x1xf32> to vector<8x8xf32>
    %48 = arith.subf %44, %47 : vector<8x8xf32>
    %49 = math.exp %48 : vector<8x8xf32>
    %cst_24 = arith.constant dense<0.000000e+00> : vector<8xf32>
    %50 = vector.multi_reduction <add>, %49, %cst_24 [1] : vector<8x8xf32> to vector<8xf32>
    %51 = vector.shape_cast %50 : vector<8xf32> to vector<8x1xf32>
    %52 = tpu.reciprocal %51 {approx = true} : vector<8x1xf32> -> vector<8x1xf32>
    %53 = vector.broadcast %52 : vector<8x1xf32> to vector<8x8xf32>
    %54 = arith.mulf %49, %53 : vector<8x8xf32>
    %cst_25 = arith.constant dense<0.000000e+00> : vector<8x8xf32>
    %55 = tpu.matmul %54, %40, %cst_25 {dimension_numbers = #tpu.dot_dimension_numbers<[1], [0], [0], [1], [0, 0, 1, 1], [], []>} : vector<8x8xf32>, vector<8x8xf32>, vector<8x8xf32> -> vector<8x8xf32>
    %56 = vector.extract_strided_slice %7 {offsets = [8, 0], sizes = [8, 32], strides = [1, 1]} : vector<32x32xf32> to vector<8x32xf32>
    %cst_26 = arith.constant dense<0.000000e+00> : vector<8x32xf32>
    %57 = tpu.matmul %55, %56, %cst_26 {dimension_numbers = #tpu.dot_dimension_numbers<[1], [0], [0], [1], [0, 0, 1, 1], [], []>} : vector<8x8xf32>, vector<8x32xf32>, vector<8x32xf32> -> vector<8x32xf32>
    %58 = arith.addf %37, %57 : vector<8x32xf32>
    %59 = vector.extract_strided_slice %12 {offsets = [0, 16], sizes = [8, 8], strides = [1, 1]} : vector<8x32xf32> to vector<8x8xf32>
    %60 = vector.extract_strided_slice %13 {offsets = [0, 16], sizes = [8, 8], strides = [1, 1]} : vector<8x32xf32> to vector<8x8xf32>
    %61 = vector.extract_strided_slice %14 {offsets = [0, 16], sizes = [8, 8], strides = [1, 1]} : vector<8x32xf32> to vector<8x8xf32>
    %cst_27 = arith.constant dense<0.000000e+00> : vector<8x8xf32>
    %62 = tpu.matmul %59, %60, %cst_27 {dimension_numbers = #tpu.dot_dimension_numbers<[1], [1], [0], [0], [0, 0, 1, 0], [], []>} : vector<8x8xf32>, vector<8x8xf32>, vector<8x8xf32> -> vector<8x8xf32>
    %cst_28 = arith.constant 0.353553385 : f32
    %63 = vector.broadcast %cst_28 : f32 to vector<8x8xf32>
    %64 = arith.mulf %62, %63 : vector<8x8xf32>
    %65 = arith.addf %64, %4 : vector<8x8xf32>
    %cst_29 = arith.constant dense<0xFF800000> : vector<8xf32>
    %66 = vector.multi_reduction <maximumf>, %65, %cst_29 [1] : vector<8x8xf32> to vector<8xf32>
    %67 = vector.shape_cast %66 : vector<8xf32> to vector<8x1xf32>
    %68 = vector.broadcast %67 : vector<8x1xf32> to vector<8x8xf32>
    %69 = arith.subf %65, %68 : vector<8x8xf32>
    %70 = math.exp %69 : vector<8x8xf32>
    %cst_30 = arith.constant dense<0.000000e+00> : vector<8xf32>
    %71 = vector.multi_reduction <add>, %70, %cst_30 [1] : vector<8x8xf32> to vector<8xf32>
    %72 = vector.shape_cast %71 : vector<8xf32> to vector<8x1xf32>
    %73 = tpu.reciprocal %72 {approx = true} : vector<8x1xf32> -> vector<8x1xf32>
    %74 = vector.broadcast %73 : vector<8x1xf32> to vector<8x8xf32>
    %75 = arith.mulf %70, %74 : vector<8x8xf32>
    %cst_31 = arith.constant dense<0.000000e+00> : vector<8x8xf32>
    %76 = tpu.matmul %75, %61, %cst_31 {dimension_numbers = #tpu.dot_dimension_numbers<[1], [0], [0], [1], [0, 0, 1, 1], [], []>} : vector<8x8xf32>, vector<8x8xf32>, vector<8x8xf32> -> vector<8x8xf32>
    %77 = vector.extract_strided_slice %7 {offsets = [16, 0], sizes = [8, 32], strides = [1, 1]} : vector<32x32xf32> to vector<8x32xf32>
    %cst_32 = arith.constant dense<0.000000e+00> : vector<8x32xf32>
    %78 = tpu.matmul %76, %77, %cst_32 {dimension_numbers = #tpu.dot_dimension_numbers<[1], [0], [0], [1], [0, 0, 1, 1], [], []>} : vector<8x8xf32>, vector<8x32xf32>, vector<8x32xf32> -> vector<8x32xf32>
    %79 = arith.addf %58, %78 : vector<8x32xf32>
    %80 = vector.extract_strided_slice %12 {offsets = [0, 24], sizes = [8, 8], strides = [1, 1]} : vector<8x32xf32> to vector<8x8xf32>
    %81 = vector.extract_strided_slice %13 {offsets = [0, 24], sizes = [8, 8], strides = [1, 1]} : vector<8x32xf32> to vector<8x8xf32>
    %82 = vector.extract_strided_slice %14 {offsets = [0, 24], sizes = [8, 8], strides = [1, 1]} : vector<8x32xf32> to vector<8x8xf32>
    %cst_33 = arith.constant dense<0.000000e+00> : vector<8x8xf32>
    %83 = tpu.matmul %80, %81, %cst_33 {dimension_numbers = #tpu.dot_dimension_numbers<[1], [1], [0], [0], [0, 0, 1, 0], [], []>} : vector<8x8xf32>, vector<8x8xf32>, vector<8x8xf32> -> vector<8x8xf32>
    %cst_34 = arith.constant 0.353553385 : f32
    %84 = vector.broadcast %cst_34 : f32 to vector<8x8xf32>
    %85 = arith.mulf %83, %84 : vector<8x8xf32>
    %86 = arith.addf %85, %4 : vector<8x8xf32>
    %cst_35 = arith.constant dense<0xFF800000> : vector<8xf32>
    %87 = vector.multi_reduction <maximumf>, %86, %cst_35 [1] : vector<8x8xf32> to vector<8xf32>
    %88 = vector.shape_cast %87 : vector<8xf32> to vector<8x1xf32>
    %89 = vector.broadcast %88 : vector<8x1xf32> to vector<8x8xf32>
    %90 = arith.subf %86, %89 : vector<8x8xf32>
    %91 = math.exp %90 : vector<8x8xf32>
    %cst_36 = arith.constant dense<0.000000e+00> : vector<8xf32>
    %92 = vector.multi_reduction <add>, %91, %cst_36 [1] : vector<8x8xf32> to vector<8xf32>
    %93 = vector.shape_cast %92 : vector<8xf32> to vector<8x1xf32>
    %94 = tpu.reciprocal %93 {approx = true} : vector<8x1xf32> -> vector<8x1xf32>
    %95 = vector.broadcast %94 : vector<8x1xf32> to vector<8x8xf32>
    %96 = arith.mulf %91, %95 : vector<8x8xf32>
    %cst_37 = arith.constant dense<0.000000e+00> : vector<8x8xf32>
    %97 = tpu.matmul %96, %82, %cst_37 {dimension_numbers = #tpu.dot_dimension_numbers<[1], [0], [0], [1], [0, 0, 1, 1], [], []>} : vector<8x8xf32>, vector<8x8xf32>, vector<8x8xf32> -> vector<8x8xf32>
    %98 = vector.extract_strided_slice %7 {offsets = [24, 0], sizes = [8, 32], strides = [1, 1]} : vector<32x32xf32> to vector<8x32xf32>
    %cst_38 = arith.constant dense<0.000000e+00> : vector<8x32xf32>
    %99 = tpu.matmul %97, %98, %cst_38 {dimension_numbers = #tpu.dot_dimension_numbers<[1], [0], [0], [1], [0, 0, 1, 1], [], []>} : vector<8x8xf32>, vector<8x32xf32>, vector<8x32xf32> -> vector<8x32xf32>
    %100 = arith.addf %79, %99 : vector<8x32xf32>
    %101 = arith.addf %1, %100 : vector<8x32xf32>
    %c0_39 = arith.constant 0 : index
    %c0_40 = arith.constant 0 : index
    %102 = vector.load %arg8[%c0_39, %c0_40] : memref<1x32xf32, #tpu.memory_space<vmem>>, vector<1x32xf32>
    %c0_41 = arith.constant 0 : index
    %c0_42 = arith.constant 0 : index
    %103 = vector.load %arg9[%c0_41, %c0_42] : memref<1x32xf32, #tpu.memory_space<vmem>>, vector<1x32xf32>
    %cst_43 = arith.constant dense<0.000000e+00> : vector<8xf32>
    %104 = vector.multi_reduction <add>, %101, %cst_43 [1] : vector<8x32xf32> to vector<8xf32>
    %105 = vector.shape_cast %104 : vector<8xf32> to vector<8x1xf32>
    %cst_44 = arith.constant 3.200000e+01 : f32
    %106 = vector.broadcast %cst_44 : f32 to vector<8x1xf32>
    %107 = arith.divf %105, %106 : vector<8x1xf32>
    %108 = vector.broadcast %107 : vector<8x1xf32> to vector<8x32xf32>
    %109 = arith.subf %101, %108 : vector<8x32xf32>
    %110 = arith.mulf %109, %109 : vector<8x32xf32>
    %cst_45 = arith.constant dense<0.000000e+00> : vector<8xf32>
    %111 = vector.multi_reduction <add>, %110, %cst_45 [1] : vector<8x32xf32> to vector<8xf32>
    %112 = vector.shape_cast %111 : vector<8xf32> to vector<8x1xf32>
    %cst_46 = arith.constant 3.200000e+01 : f32
    %113 = vector.broadcast %cst_46 : f32 to vector<8x1xf32>
    %114 = arith.divf %112, %113 : vector<8x1xf32>
    %cst_47 = arith.constant 9.99999974E-6 : f32
    %115 = vector.broadcast %cst_47 : f32 to vector<8x1xf32>
    %116 = arith.addf %114, %115 : vector<8x1xf32>
    %117 = math.rsqrt %116 : vector<8x1xf32>
    %118 = vector.broadcast %117 : vector<8x1xf32> to vector<8x32xf32>
    %119 = arith.mulf %109, %118 : vector<8x32xf32>
    %120 = vector.broadcast %102 : vector<1x32xf32> to vector<8x32xf32>
    %121 = arith.mulf %119, %120 : vector<8x32xf32>
    %122 = vector.broadcast %103 : vector<1x32xf32> to vector<8x32xf32>
    %123 = arith.addf %121, %122 : vector<8x32xf32>
    %c0_48 = arith.constant 0 : index
    %c0_49 = arith.constant 0 : index
    %124 = vector.load %arg10[%c0_48, %c0_49] : memref<32x32xf32, #tpu.memory_space<vmem>>, vector<32x32xf32>
    %c0_50 = arith.constant 0 : index
    %c0_51 = arith.constant 0 : index
    %125 = vector.load %arg11[%c0_50, %c0_51] : memref<1x32xf32, #tpu.memory_space<vmem>>, vector<1x32xf32>
    %c0_52 = arith.constant 0 : index
    %c0_53 = arith.constant 0 : index
    %126 = vector.load %arg12[%c0_52, %c0_53] : memref<32x64xf32, #tpu.memory_space<vmem>>, vector<32x64xf32>
    %c0_54 = arith.constant 0 : index
    %c0_55 = arith.constant 0 : index
    %127 = vector.load %arg13[%c0_54, %c0_55] : memref<1x64xf32, #tpu.memory_space<vmem>>, vector<1x64xf32>
    %c0_56 = arith.constant 0 : index
    %c0_57 = arith.constant 0 : index
    %128 = vector.load %arg14[%c0_56, %c0_57] : memref<32x32xf32, #tpu.memory_space<vmem>>, vector<32x32xf32>
    %c0_58 = arith.constant 0 : index
    %c0_59 = arith.constant 0 : index
    %129 = vector.load %arg15[%c0_58, %c0_59] : memref<1x32xf32, #tpu.memory_space<vmem>>, vector<1x32xf32>
    %cst_60 = arith.constant dense<0.000000e+00> : vector<8x32xf32>
    %130 = tpu.matmul %123, %124, %cst_60 {dimension_numbers = #tpu.dot_dimension_numbers<[1], [0], [0], [1], [0, 0, 1, 1], [], []>} : vector<8x32xf32>, vector<32x32xf32>, vector<8x32xf32> -> vector<8x32xf32>
    %131 = vector.broadcast %125 : vector<1x32xf32> to vector<8x32xf32>
    %132 = arith.addf %130, %131 : vector<8x32xf32>
    %cst_61 = arith.constant dense<0.000000e+00> : vector<8x64xf32>
    %133 = tpu.matmul %3, %126, %cst_61 {dimension_numbers = #tpu.dot_dimension_numbers<[1], [0], [0], [1], [0, 0, 1, 1], [], []>} : vector<8x32xf32>, vector<32x64xf32>, vector<8x64xf32> -> vector<8x64xf32>
    %134 = vector.broadcast %127 : vector<1x64xf32> to vector<8x64xf32>
    %135 = arith.addf %133, %134 : vector<8x64xf32>
    %136 = vector.extract_strided_slice %135 {offsets = [0, 0], sizes = [8, 32], strides = [1, 1]} : vector<8x64xf32> to vector<8x32xf32>
    %137 = vector.extract_strided_slice %135 {offsets = [0, 32], sizes = [8, 32], strides = [1, 1]} : vector<8x64xf32> to vector<8x32xf32>
    %138 = vector.shape_cast %129 : vector<1x32xf32> to vector<1x32xf32>
    %139 = vector.broadcast %138 : vector<1x32xf32> to vector<8x32xf32>
    %140 = vector.extract_strided_slice %132 {offsets = [0, 0], sizes = [8, 8], strides = [1, 1]} : vector<8x32xf32> to vector<8x8xf32>
    %141 = vector.extract_strided_slice %136 {offsets = [0, 0], sizes = [8, 8], strides = [1, 1]} : vector<8x32xf32> to vector<8x8xf32>
    %142 = vector.extract_strided_slice %137 {offsets = [0, 0], sizes = [8, 8], strides = [1, 1]} : vector<8x32xf32> to vector<8x8xf32>
    %cst_62 = arith.constant dense<0.000000e+00> : vector<8x8xf32>
    %143 = tpu.matmul %140, %141, %cst_62 {dimension_numbers = #tpu.dot_dimension_numbers<[1], [1], [0], [0], [0, 0, 1, 0], [], []>} : vector<8x8xf32>, vector<8x8xf32>, vector<8x8xf32> -> vector<8x8xf32>
    %cst_63 = arith.constant 0.353553385 : f32
    %144 = vector.broadcast %cst_63 : f32 to vector<8x8xf32>
    %145 = arith.mulf %143, %144 : vector<8x8xf32>
    %cst_64 = arith.constant dense<0xFF800000> : vector<8xf32>
    %146 = vector.multi_reduction <maximumf>, %145, %cst_64 [1] : vector<8x8xf32> to vector<8xf32>
    %147 = vector.shape_cast %146 : vector<8xf32> to vector<8x1xf32>
    %148 = vector.broadcast %147 : vector<8x1xf32> to vector<8x8xf32>
    %149 = arith.subf %145, %148 : vector<8x8xf32>
    %150 = math.exp %149 : vector<8x8xf32>
    %cst_65 = arith.constant dense<0.000000e+00> : vector<8xf32>
    %151 = vector.multi_reduction <add>, %150, %cst_65 [1] : vector<8x8xf32> to vector<8xf32>
    %152 = vector.shape_cast %151 : vector<8xf32> to vector<8x1xf32>
    %153 = tpu.reciprocal %152 {approx = true} : vector<8x1xf32> -> vector<8x1xf32>
    %154 = vector.broadcast %153 : vector<8x1xf32> to vector<8x8xf32>
    %155 = arith.mulf %150, %154 : vector<8x8xf32>
    %cst_66 = arith.constant dense<0.000000e+00> : vector<8x8xf32>
    %156 = tpu.matmul %155, %142, %cst_66 {dimension_numbers = #tpu.dot_dimension_numbers<[1], [0], [0], [1], [0, 0, 1, 1], [], []>} : vector<8x8xf32>, vector<8x8xf32>, vector<8x8xf32> -> vector<8x8xf32>
    %157 = vector.extract_strided_slice %128 {offsets = [0, 0], sizes = [8, 32], strides = [1, 1]} : vector<32x32xf32> to vector<8x32xf32>
    %cst_67 = arith.constant dense<0.000000e+00> : vector<8x32xf32>
    %158 = tpu.matmul %156, %157, %cst_67 {dimension_numbers = #tpu.dot_dimension_numbers<[1], [0], [0], [1], [0, 0, 1, 1], [], []>} : vector<8x8xf32>, vector<8x32xf32>, vector<8x32xf32> -> vector<8x32xf32>
    %159 = arith.addf %139, %158 : vector<8x32xf32>
    %160 = vector.extract_strided_slice %132 {offsets = [0, 8], sizes = [8, 8], strides = [1, 1]} : vector<8x32xf32> to vector<8x8xf32>
    %161 = vector.extract_strided_slice %136 {offsets = [0, 8], sizes = [8, 8], strides = [1, 1]} : vector<8x32xf32> to vector<8x8xf32>
    %162 = vector.extract_strided_slice %137 {offsets = [0, 8], sizes = [8, 8], strides = [1, 1]} : vector<8x32xf32> to vector<8x8xf32>
    %cst_68 = arith.constant dense<0.000000e+00> : vector<8x8xf32>
    %163 = tpu.matmul %160, %161, %cst_68 {dimension_numbers = #tpu.dot_dimension_numbers<[1], [1], [0], [0], [0, 0, 1, 0], [], []>} : vector<8x8xf32>, vector<8x8xf32>, vector<8x8xf32> -> vector<8x8xf32>
    %cst_69 = arith.constant 0.353553385 : f32
    %164 = vector.broadcast %cst_69 : f32 to vector<8x8xf32>
    %165 = arith.mulf %163, %164 : vector<8x8xf32>
    %cst_70 = arith.constant dense<0xFF800000> : vector<8xf32>
    %166 = vector.multi_reduction <maximumf>, %165, %cst_70 [1] : vector<8x8xf32> to vector<8xf32>
    %167 = vector.shape_cast %166 : vector<8xf32> to vector<8x1xf32>
    %168 = vector.broadcast %167 : vector<8x1xf32> to vector<8x8xf32>
    %169 = arith.subf %165, %168 : vector<8x8xf32>
    %170 = math.exp %169 : vector<8x8xf32>
    %cst_71 = arith.constant dense<0.000000e+00> : vector<8xf32>
    %171 = vector.multi_reduction <add>, %170, %cst_71 [1] : vector<8x8xf32> to vector<8xf32>
    %172 = vector.shape_cast %171 : vector<8xf32> to vector<8x1xf32>
    %173 = tpu.reciprocal %172 {approx = true} : vector<8x1xf32> -> vector<8x1xf32>
    %174 = vector.broadcast %173 : vector<8x1xf32> to vector<8x8xf32>
    %175 = arith.mulf %170, %174 : vector<8x8xf32>
    %cst_72 = arith.constant dense<0.000000e+00> : vector<8x8xf32>
    %176 = tpu.matmul %175, %162, %cst_72 {dimension_numbers = #tpu.dot_dimension_numbers<[1], [0], [0], [1], [0, 0, 1, 1], [], []>} : vector<8x8xf32>, vector<8x8xf32>, vector<8x8xf32> -> vector<8x8xf32>
    %177 = vector.extract_strided_slice %128 {offsets = [8, 0], sizes = [8, 32], strides = [1, 1]} : vector<32x32xf32> to vector<8x32xf32>
    %cst_73 = arith.constant dense<0.000000e+00> : vector<8x32xf32>
    %178 = tpu.matmul %176, %177, %cst_73 {dimension_numbers = #tpu.dot_dimension_numbers<[1], [0], [0], [1], [0, 0, 1, 1], [], []>} : vector<8x8xf32>, vector<8x32xf32>, vector<8x32xf32> -> vector<8x32xf32>
    %179 = arith.addf %159, %178 : vector<8x32xf32>
    %180 = vector.extract_strided_slice %132 {offsets = [0, 16], sizes = [8, 8], strides = [1, 1]} : vector<8x32xf32> to vector<8x8xf32>
    %181 = vector.extract_strided_slice %136 {offsets = [0, 16], sizes = [8, 8], strides = [1, 1]} : vector<8x32xf32> to vector<8x8xf32>
    %182 = vector.extract_strided_slice %137 {offsets = [0, 16], sizes = [8, 8], strides = [1, 1]} : vector<8x32xf32> to vector<8x8xf32>
    %cst_74 = arith.constant dense<0.000000e+00> : vector<8x8xf32>
    %183 = tpu.matmul %180, %181, %cst_74 {dimension_numbers = #tpu.dot_dimension_numbers<[1], [1], [0], [0], [0, 0, 1, 0], [], []>} : vector<8x8xf32>, vector<8x8xf32>, vector<8x8xf32> -> vector<8x8xf32>
    %cst_75 = arith.constant 0.353553385 : f32
    %184 = vector.broadcast %cst_75 : f32 to vector<8x8xf32>
    %185 = arith.mulf %183, %184 : vector<8x8xf32>
    %cst_76 = arith.constant dense<0xFF800000> : vector<8xf32>
    %186 = vector.multi_reduction <maximumf>, %185, %cst_76 [1] : vector<8x8xf32> to vector<8xf32>
    %187 = vector.shape_cast %186 : vector<8xf32> to vector<8x1xf32>
    %188 = vector.broadcast %187 : vector<8x1xf32> to vector<8x8xf32>
    %189 = arith.subf %185, %188 : vector<8x8xf32>
    %190 = math.exp %189 : vector<8x8xf32>
    %cst_77 = arith.constant dense<0.000000e+00> : vector<8xf32>
    %191 = vector.multi_reduction <add>, %190, %cst_77 [1] : vector<8x8xf32> to vector<8xf32>
    %192 = vector.shape_cast %191 : vector<8xf32> to vector<8x1xf32>
    %193 = tpu.reciprocal %192 {approx = true} : vector<8x1xf32> -> vector<8x1xf32>
    %194 = vector.broadcast %193 : vector<8x1xf32> to vector<8x8xf32>
    %195 = arith.mulf %190, %194 : vector<8x8xf32>
    %cst_78 = arith.constant dense<0.000000e+00> : vector<8x8xf32>
    %196 = tpu.matmul %195, %182, %cst_78 {dimension_numbers = #tpu.dot_dimension_numbers<[1], [0], [0], [1], [0, 0, 1, 1], [], []>} : vector<8x8xf32>, vector<8x8xf32>, vector<8x8xf32> -> vector<8x8xf32>
    %197 = vector.extract_strided_slice %128 {offsets = [16, 0], sizes = [8, 32], strides = [1, 1]} : vector<32x32xf32> to vector<8x32xf32>
    %cst_79 = arith.constant dense<0.000000e+00> : vector<8x32xf32>
    %198 = tpu.matmul %196, %197, %cst_79 {dimension_numbers = #tpu.dot_dimension_numbers<[1], [0], [0], [1], [0, 0, 1, 1], [], []>} : vector<8x8xf32>, vector<8x32xf32>, vector<8x32xf32> -> vector<8x32xf32>
    %199 = arith.addf %179, %198 : vector<8x32xf32>
    %200 = vector.extract_strided_slice %132 {offsets = [0, 24], sizes = [8, 8], strides = [1, 1]} : vector<8x32xf32> to vector<8x8xf32>
    %201 = vector.extract_strided_slice %136 {offsets = [0, 24], sizes = [8, 8], strides = [1, 1]} : vector<8x32xf32> to vector<8x8xf32>
    %202 = vector.extract_strided_slice %137 {offsets = [0, 24], sizes = [8, 8], strides = [1, 1]} : vector<8x32xf32> to vector<8x8xf32>
    %cst_80 = arith.constant dense<0.000000e+00> : vector<8x8xf32>
    %203 = tpu.matmul %200, %201, %cst_80 {dimension_numbers = #tpu.dot_dimension_numbers<[1], [1], [0], [0], [0, 0, 1, 0], [], []>} : vector<8x8xf32>, vector<8x8xf32>, vector<8x8xf32> -> vector<8x8xf32>
    %cst_81 = arith.constant 0.353553385 : f32
    %204 = vector.broadcast %cst_81 : f32 to vector<8x8xf32>
    %205 = arith.mulf %203, %204 : vector<8x8xf32>
    %cst_82 = arith.constant dense<0xFF800000> : vector<8xf32>
    %206 = vector.multi_reduction <maximumf>, %205, %cst_82 [1] : vector<8x8xf32> to vector<8xf32>
    %207 = vector.shape_cast %206 : vector<8xf32> to vector<8x1xf32>
    %208 = vector.broadcast %207 : vector<8x1xf32> to vector<8x8xf32>
    %209 = arith.subf %205, %208 : vector<8x8xf32>
    %210 = math.exp %209 : vector<8x8xf32>
    %cst_83 = arith.constant dense<0.000000e+00> : vector<8xf32>
    %211 = vector.multi_reduction <add>, %210, %cst_83 [1] : vector<8x8xf32> to vector<8xf32>
    %212 = vector.shape_cast %211 : vector<8xf32> to vector<8x1xf32>
    %213 = tpu.reciprocal %212 {approx = true} : vector<8x1xf32> -> vector<8x1xf32>
    %214 = vector.broadcast %213 : vector<8x1xf32> to vector<8x8xf32>
    %215 = arith.mulf %210, %214 : vector<8x8xf32>
    %cst_84 = arith.constant dense<0.000000e+00> : vector<8x8xf32>
    %216 = tpu.matmul %215, %202, %cst_84 {dimension_numbers = #tpu.dot_dimension_numbers<[1], [0], [0], [1], [0, 0, 1, 1], [], []>} : vector<8x8xf32>, vector<8x8xf32>, vector<8x8xf32> -> vector<8x8xf32>
    %217 = vector.extract_strided_slice %128 {offsets = [24, 0], sizes = [8, 32], strides = [1, 1]} : vector<32x32xf32> to vector<8x32xf32>
    %cst_85 = arith.constant dense<0.000000e+00> : vector<8x32xf32>
    %218 = tpu.matmul %216, %217, %cst_85 {dimension_numbers = #tpu.dot_dimension_numbers<[1], [0], [0], [1], [0, 0, 1, 1], [], []>} : vector<8x8xf32>, vector<8x32xf32>, vector<8x32xf32> -> vector<8x32xf32>
    %219 = arith.addf %199, %218 : vector<8x32xf32>
    %220 = arith.addf %123, %219 : vector<8x32xf32>
    %c0_86 = arith.constant 0 : index
    %c0_87 = arith.constant 0 : index
    %221 = vector.load %arg16[%c0_86, %c0_87] : memref<1x32xf32, #tpu.memory_space<vmem>>, vector<1x32xf32>
    %c0_88 = arith.constant 0 : index
    %c0_89 = arith.constant 0 : index
    %222 = vector.load %arg17[%c0_88, %c0_89] : memref<1x32xf32, #tpu.memory_space<vmem>>, vector<1x32xf32>
    %cst_90 = arith.constant dense<0.000000e+00> : vector<8xf32>
    %223 = vector.multi_reduction <add>, %220, %cst_90 [1] : vector<8x32xf32> to vector<8xf32>
    %224 = vector.shape_cast %223 : vector<8xf32> to vector<8x1xf32>
    %cst_91 = arith.constant 3.200000e+01 : f32
    %225 = vector.broadcast %cst_91 : f32 to vector<8x1xf32>
    %226 = arith.divf %224, %225 : vector<8x1xf32>
    %227 = vector.broadcast %226 : vector<8x1xf32> to vector<8x32xf32>
    %228 = arith.subf %220, %227 : vector<8x32xf32>
    %229 = arith.mulf %228, %228 : vector<8x32xf32>
    %cst_92 = arith.constant dense<0.000000e+00> : vector<8xf32>
    %230 = vector.multi_reduction <add>, %229, %cst_92 [1] : vector<8x32xf32> to vector<8xf32>
    %231 = vector.shape_cast %230 : vector<8xf32> to vector<8x1xf32>
    %cst_93 = arith.constant 3.200000e+01 : f32
    %232 = vector.broadcast %cst_93 : f32 to vector<8x1xf32>
    %233 = arith.divf %231, %232 : vector<8x1xf32>
    %cst_94 = arith.constant 9.99999974E-6 : f32
    %234 = vector.broadcast %cst_94 : f32 to vector<8x1xf32>
    %235 = arith.addf %233, %234 : vector<8x1xf32>
    %236 = math.rsqrt %235 : vector<8x1xf32>
    %237 = vector.broadcast %236 : vector<8x1xf32> to vector<8x32xf32>
    %238 = arith.mulf %228, %237 : vector<8x32xf32>
    %239 = vector.broadcast %221 : vector<1x32xf32> to vector<8x32xf32>
    %240 = arith.mulf %238, %239 : vector<8x32xf32>
    %241 = vector.broadcast %222 : vector<1x32xf32> to vector<8x32xf32>
    %242 = arith.addf %240, %241 : vector<8x32xf32>
    %c0_95 = arith.constant 0 : index
    %c0_96 = arith.constant 0 : index
    %243 = vector.load %arg18[%c0_95, %c0_96] : memref<32x64xf32, #tpu.memory_space<vmem>>, vector<32x64xf32>
    %c0_97 = arith.constant 0 : index
    %c0_98 = arith.constant 0 : index
    %244 = vector.load %arg19[%c0_97, %c0_98] : memref<1x64xf32, #tpu.memory_space<vmem>>, vector<1x64xf32>
    %c0_99 = arith.constant 0 : index
    %c0_100 = arith.constant 0 : index
    %245 = vector.load %arg20[%c0_99, %c0_100] : memref<64x32xf32, #tpu.memory_space<vmem>>, vector<64x32xf32>
    %c0_101 = arith.constant 0 : index
    %c0_102 = arith.constant 0 : index
    %246 = vector.load %arg21[%c0_101, %c0_102] : memref<1x32xf32, #tpu.memory_space<vmem>>, vector<1x32xf32>
    %cst_103 = arith.constant dense<0.000000e+00> : vector<8x64xf32>
    %247 = tpu.matmul %242, %243, %cst_103 {dimension_numbers = #tpu.dot_dimension_numbers<[1], [0], [0], [1], [0, 0, 1, 1], [], []>} : vector<8x32xf32>, vector<32x64xf32>, vector<8x64xf32> -> vector<8x64xf32>
    %248 = vector.broadcast %244 : vector<1x64xf32> to vector<8x64xf32>
    %249 = arith.addf %247, %248 : vector<8x64xf32>
    %cst_104 = arith.constant 0.000000e+00 : f32
    %250 = vector.broadcast %cst_104 : f32 to vector<8x64xf32>
    %251 = arith.maximumf %249, %250 : vector<8x64xf32>
    %cst_105 = arith.constant dense<0.000000e+00> : vector<8x32xf32>
    %252 = tpu.matmul %251, %245, %cst_105 {dimension_numbers = #tpu.dot_dimension_numbers<[1], [0], [0], [1], [0, 0, 1, 1], [], []>} : vector<8x64xf32>, vector<64x32xf32>, vector<8x32xf32> -> vector<8x32xf32>
    %253 = vector.broadcast %246 : vector<1x32xf32> to vector<8x32xf32>
    %254 = arith.addf %252, %253 : vector<8x32xf32>
    %255 = arith.addf %242, %254 : vector<8x32xf32>
    %c0_106 = arith.constant 0 : index
    %c0_107 = arith.constant 0 : index
    %256 = vector.load %arg22[%c0_106, %c0_107] : memref<1x32xf32, #tpu.memory_space<vmem>>, vector<1x32xf32>
    %c0_108 = arith.constant 0 : index
    %c0_109 = arith.constant 0 : index
    %257 = vector.load %arg23[%c0_108, %c0_109] : memref<1x32xf32, #tpu.memory_space<vmem>>, vector<1x32xf32>
    %cst_110 = arith.constant dense<0.000000e+00> : vector<8xf32>
    %258 = vector.multi_reduction <add>, %255, %cst_110 [1] : vector<8x32xf32> to vector<8xf32>
    %259 = vector.shape_cast %258 : vector<8xf32> to vector<8x1xf32>
    %cst_111 = arith.constant 3.200000e+01 : f32
    %260 = vector.broadcast %cst_111 : f32 to vector<8x1xf32>
    %261 = arith.divf %259, %260 : vector<8x1xf32>
    %262 = vector.broadcast %261 : vector<8x1xf32> to vector<8x32xf32>
    %263 = arith.subf %255, %262 : vector<8x32xf32>
    %264 = arith.mulf %263, %263 : vector<8x32xf32>
    %cst_112 = arith.constant dense<0.000000e+00> : vector<8xf32>
    %265 = vector.multi_reduction <add>, %264, %cst_112 [1] : vector<8x32xf32> to vector<8xf32>
    %266 = vector.shape_cast %265 : vector<8xf32> to vector<8x1xf32>
    %cst_113 = arith.constant 3.200000e+01 : f32
    %267 = vector.broadcast %cst_113 : f32 to vector<8x1xf32>
    %268 = arith.divf %266, %267 : vector<8x1xf32>
    %cst_114 = arith.constant 9.99999974E-6 : f32
    %269 = vector.broadcast %cst_114 : f32 to vector<8x1xf32>
    %270 = arith.addf %268, %269 : vector<8x1xf32>
    %271 = math.rsqrt %270 : vector<8x1xf32>
    %272 = vector.broadcast %271 : vector<8x1xf32> to vector<8x32xf32>
    %273 = arith.mulf %263, %272 : vector<8x32xf32>
    %274 = vector.broadcast %256 : vector<1x32xf32> to vector<8x32xf32>
    %275 = arith.mulf %273, %274 : vector<8x32xf32>
    %276 = vector.broadcast %257 : vector<1x32xf32> to vector<8x32xf32>
    %277 = arith.addf %275, %276 : vector<8x32xf32>
    %c0_115 = arith.constant 0 : index
    %c0_116 = arith.constant 0 : index
    %c0_117 = arith.constant 0 : index
    %278 = vector.load %arg24[%c0_115, %c0_116, %c0_117] : memref<1x8x32xf32, #tpu.memory_space<vmem>>, vector<1x8x32xf32>
    %279 = vector.shape_cast %278 : vector<1x8x32xf32> to vector<8x32xf32>
    %280 = vector.shape_cast %277 : vector<8x32xf32> to vector<1x8x32xf32>
    tpu.vector_store %arg24[%c0_115, %c0_116, %c0_117], %280 {strides = array<i32>} : memref<1x8x32xf32, #tpu.memory_space<vmem>>, vector<1x8x32xf32>,
    return
  }
  func.func @transform_0(%arg0: i32) -> (i32, i32, i32) {
    %c0_i32 = arith.constant 0 : i32
    %c0_i32_0 = arith.constant 0 : i32
    %c0_i32_1 = arith.constant 0 : i32
    return %arg0, %c0_i32, %c0_i32_0 : i32, i32, i32
  }
  func.func @transform_1(%arg0: i32) -> (i32, i32, i32) {
    %c0_i32 = arith.constant 0 : i32
    %c0_i32_0 = arith.constant 0 : i32
    %c0_i32_1 = arith.constant 0 : i32
    return %arg0, %c0_i32, %c0_i32_0 : i32, i32, i32
  }
  func.func @transform_2(%arg0: i32) -> (i32, i32) {
    %c0_i32 = arith.constant 0 : i32
    %c0_i32_0 = arith.constant 0 : i32
    %c0_i32_1 = arith.constant 0 : i32
    return %c0_i32, %c0_i32_0 : i32, i32
  }
  func.func @transform_3(%arg0: i32) -> (i32, i32) {
    %c0_i32 = arith.constant 0 : i32
    %c0_i32_0 = arith.constant 0 : i32
    %c0_i32_1 = arith.constant 0 : i32
    return %c0_i32, %c0_i32_0 : i32, i32
  }
  func.func @transform_4(%arg0: i32) -> (i32, i32) {
    %c0_i32 = arith.constant 0 : i32
    %c0_i32_0 = arith.constant 0 : i32
    %c0_i32_1 = arith.constant 0 : i32
    return %c0_i32, %c0_i32_0 : i32, i32
  }
  func.func @transform_5(%arg0: i32) -> (i32, i32) {
    %c0_i32 = arith.constant 0 : i32
    %c0_i32_0 = arith.constant 0 : i32
    %c0_i32_1 = arith.constant 0 : i32
    return %c0_i32, %c0_i32_0 : i32, i32
  }
  func.func @transform_6(%arg0: i32) -> (i32, i32) {
    %c0_i32 = arith.constant 0 : i32
    %c0_i32_0 = arith.constant 0 : i32
    %c0_i32_1 = arith.constant 0 : i32
    return %c0_i32, %c0_i32_0 : i32, i32
  }
  func.func @transform_7(%arg0: i32) -> (i32, i32) {
    %c0_i32 = arith.constant 0 : i32
    %c0_i32_0 = arith.constant 0 : i32
    %c0_i32_1 = arith.constant 0 : i32
    return %c0_i32, %c0_i32_0 : i32, i32
  }
  func.func @transform_8(%arg0: i32) -> (i32, i32) {
    %c0_i32 = arith.constant 0 : i32
    %c0_i32_0 = arith.constant 0 : i32
    %c0_i32_1 = arith.constant 0 : i32
    return %c0_i32, %c0_i32_0 : i32, i32
  }
  func.func @transform_9(%arg0: i32) -> (i32, i32) {
    %c0_i32 = arith.constant 0 : i32
    %c0_i32_0 = arith.constant 0 : i32
    %c0_i32_1 = arith.constant 0 : i32
    return %c0_i32, %c0_i32_0 : i32, i32
  }
  func.func @transform_10(%arg0: i32) -> (i32, i32) {
    %c0_i32 = arith.constant 0 : i32
    %c0_i32_0 = arith.constant 0 : i32
    %c0_i32_1 = arith.constant 0 : i32
    return %c0_i32, %c0_i32_0 : i32, i32
  }
  func.func @transform_11(%arg0: i32) -> (i32, i32) {
    %c0_i32 = arith.constant 0 : i32
    %c0_i32_0 = arith.constant 0 : i32
    %c0_i32_1 = arith.constant 0 : i32
    return %c0_i32, %c0_i32_0 : i32, i32
  }
  func.func @transform_12(%arg0: i32) -> (i32, i32) {
    %c0_i32 = arith.constant 0 : i32
    %c0_i32_0 = arith.constant 0 : i32
    %c0_i32_1 = arith.constant 0 : i32
    return %c0_i32, %c0_i32_0 : i32, i32
  }
  func.func @transform_13(%arg0: i32) -> (i32, i32) {
    %c0_i32 = arith.constant 0 : i32
    %c0_i32_0 = arith.constant 0 : i32
    %c0_i32_1 = arith.constant 0 : i32
    return %c0_i32, %c0_i32_0 : i32, i32
  }
  func.func @transform_14(%arg0: i32) -> (i32, i32) {
    %c0_i32 = arith.constant 0 : i32
    %c0_i32_0 = arith.constant 0 : i32
    %c0_i32_1 = arith.constant 0 : i32
    return %c0_i32, %c0_i32_0 : i32, i32
  }
  func.func @transform_15(%arg0: i32) -> (i32, i32) {
    %c0_i32 = arith.constant 0 : i32
    %c0_i32_0 = arith.constant 0 : i32
    %c0_i32_1 = arith.constant 0 : i32
    return %c0_i32, %c0_i32_0 : i32, i32
  }
  func.func @transform_16(%arg0: i32) -> (i32, i32) {
    %c0_i32 = arith.constant 0 : i32
    %c0_i32_0 = arith.constant 0 : i32
    %c0_i32_1 = arith.constant 0 : i32
    return %c0_i32, %c0_i32_0 : i32, i32
  }
  func.func @transform_17(%arg0: i32) -> (i32, i32) {
    %c0_i32 = arith.constant 0 : i32
    %c0_i32_0 = arith.constant 0 : i32
    %c0_i32_1 = arith.constant 0 : i32
    return %c0_i32, %c0_i32_0 : i32, i32
  }
  func.func @transform_18(%arg0: i32) -> (i32, i32) {
    %c0_i32 = arith.constant 0 : i32
    %c0_i32_0 = arith.constant 0 : i32
    %c0_i32_1 = arith.constant 0 : i32
    return %c0_i32, %c0_i32_0 : i32, i32
  }
  func.func @transform_19(%arg0: i32) -> (i32, i32) {
    %c0_i32 = arith.constant 0 : i32
    %c0_i32_0 = arith.constant 0 : i32
    %c0_i32_1 = arith.constant 0 : i32
    return %c0_i32, %c0_i32_0 : i32, i32
  }
  func.func @transform_20(%arg0: i32) -> (i32, i32) {
    %c0_i32 = arith.constant 0 : i32
    %c0_i32_0 = arith.constant 0 : i32
    %c0_i32_1 = arith.constant 0 : i32
    return %c0_i32, %c0_i32_0 : i32, i32
  }
  func.func @transform_21(%arg0: i32) -> (i32, i32) {
    %c0_i32 = arith.constant 0 : i32
    %c0_i32_0 = arith.constant 0 : i32
    %c0_i32_1 = arith.constant 0 : i32
    return %c0_i32, %c0_i32_0 : i32, i32
  }
  func.func @transform_22(%arg0: i32) -> (i32, i32) {
    %c0_i32 = arith.constant 0 : i32
    %c0_i32_0 = arith.constant 0 : i32
    %c0_i32_1 = arith.constant 0 : i32
    return %c0_i32, %c0_i32_0 : i32, i32
  }
  func.func @transform_23(%arg0: i32) -> (i32, i32, i32) {
    %c0_i32 = arith.constant 0 : i32
    %c0_i32_0 = arith.constant 0 : i32
    %c0_i32_1 = arith.constant 0 : i32
    return %arg0, %c0_i32, %c0_i32_0 : i32, i32, i32
  }
}

module attributes {stable_mosaic.version = 11 : i64} {
  func.func @_heads_kernel(%arg0: i32, %arg1: memref<1x8x32xf32, #tpu.memory_space<vmem>>, %arg2: memref<32x256xf32, #tpu.memory_space<vmem>>, %arg3: memref<1x256xf32, #tpu.memory_space<vmem>>, %arg4: memref<1x8x256xf32, #tpu.memory_space<vmem>>) attributes {dimension_semantics = [#tpu.dimension_semantics<parallel>], iteration_bounds = array<i64: 2>, scalar_prefetch = 0 : i64, scratch_operands = 0 : i64, tpu.core_type = #tpu.core_type<tc>, window_params = [{transform_indices = @transform_0, window_bounds = array<i64: 1, 8, 32>}, {pipeline_mode = #tpu.pipeline_mode<synchronous>, transform_indices = @transform_1, window_bounds = array<i64: 32, 256>}, {pipeline_mode = #tpu.pipeline_mode<synchronous>, transform_indices = @transform_2, window_bounds = array<i64: 1, 256>}, {transform_indices = @transform_3, window_bounds = array<i64: 1, 8, 256>}]} {
    %c0 = arith.constant 0 : index
    %c0_0 = arith.constant 0 : index
    %c0_1 = arith.constant 0 : index
    %0 = vector.load %arg1[%c0, %c0_0, %c0_1] : memref<1x8x32xf32, #tpu.memory_space<vmem>>, vector<1x8x32xf32>
    %1 = vector.shape_cast %0 : vector<1x8x32xf32> to vector<8x32xf32>
    %c0_2 = arith.constant 0 : index
    %c0_3 = arith.constant 0 : index
    %2 = vector.load %arg2[%c0_2, %c0_3] : memref<32x256xf32, #tpu.memory_space<vmem>>, vector<32x256xf32>
    %cst = arith.constant dense<0.000000e+00> : vector<8x256xf32>
    %3 = tpu.matmul %1, %2, %cst {dimension_numbers = #tpu.dot_dimension_numbers<[1], [0], [0], [1], [0, 0, 1, 1], [], []>} : vector<8x32xf32>, vector<32x256xf32>, vector<8x256xf32> -> vector<8x256xf32>
    %c0_4 = arith.constant 0 : index
    %c0_5 = arith.constant 0 : index
    %4 = vector.load %arg3[%c0_4, %c0_5] : memref<1x256xf32, #tpu.memory_space<vmem>>, vector<1x256xf32>
    %5 = vector.broadcast %4 : vector<1x256xf32> to vector<8x256xf32>
    %6 = arith.addf %3, %5 : vector<8x256xf32>
    %c0_6 = arith.constant 0 : index
    %c0_7 = arith.constant 0 : index
    %c0_8 = arith.constant 0 : index
    %7 = vector.load %arg4[%c0_6, %c0_7, %c0_8] : memref<1x8x256xf32, #tpu.memory_space<vmem>>, vector<1x8x256xf32>
    %8 = vector.shape_cast %7 : vector<1x8x256xf32> to vector<8x256xf32>
    %9 = vector.shape_cast %6 : vector<8x256xf32> to vector<1x8x256xf32>
    tpu.vector_store %arg4[%c0_6, %c0_7, %c0_8], %9 {strides = array<i32>} : memref<1x8x256xf32, #tpu.memory_space<vmem>>, vector<1x8x256xf32>,
    return
  }
  func.func @transform_0(%arg0: i32) -> (i32, i32, i32) {
    %c0_i32 = arith.constant 0 : i32
    %c0_i32_0 = arith.constant 0 : i32
    %c0_i32_1 = arith.constant 0 : i32
    return %arg0, %c0_i32, %c0_i32_0 : i32, i32, i32
  }
  func.func @transform_1(%arg0: i32) -> (i32, i32) {
    %c0_i32 = arith.constant 0 : i32
    %c0_i32_0 = arith.constant 0 : i32
    %c0_i32_1 = arith.constant 0 : i32
    return %c0_i32, %c0_i32_0 : i32, i32
  }
  func.func @transform_2(%arg0: i32) -> (i32, i32) {
    %c0_i32 = arith.constant 0 : i32
    %c0_i32_0 = arith.constant 0 : i32
    %c0_i32_1 = arith.constant 0 : i32
    return %c0_i32, %c0_i32_0 : i32, i32
  }
  func.func @transform_3(%arg0: i32) -> (i32, i32, i32) {
    %c0_i32 = arith.constant 0 : i32
    %c0_i32_0 = arith.constant 0 : i32
    %c0_i32_1 = arith.constant 0 : i32
    return %arg0, %c0_i32, %c0_i32_0 : i32, i32, i32
  }
}

module attributes {stable_mosaic.version = 11 : i64} {
  func.func @_decoder_layer_kernel(%arg0: i32, %arg1: memref<1x8x32xf32, #tpu.memory_space<vmem>>, %arg2: memref<1x8x32xf32, #tpu.memory_space<vmem>>, %arg3: memref<8x8xf32, #tpu.memory_space<vmem>>, %arg4: memref<32x96xf32, #tpu.memory_space<vmem>>, %arg5: memref<1x96xf32, #tpu.memory_space<vmem>>, %arg6: memref<32x32xf32, #tpu.memory_space<vmem>>, %arg7: memref<1x32xf32, #tpu.memory_space<vmem>>, %arg8: memref<1x32xf32, #tpu.memory_space<vmem>>, %arg9: memref<1x32xf32, #tpu.memory_space<vmem>>, %arg10: memref<32x32xf32, #tpu.memory_space<vmem>>, %arg11: memref<1x32xf32, #tpu.memory_space<vmem>>, %arg12: memref<32x64xf32, #tpu.memory_space<vmem>>, %arg13: memref<1x64xf32, #tpu.memory_space<vmem>>, %arg14: memref<32x32xf32, #tpu.memory_space<vmem>>, %arg15: memref<1x32xf32, #tpu.memory_space<vmem>>, %arg16: memref<1x32xf32, #tpu.memory_space<vmem>>, %arg17: memref<1x32xf32, #tpu.memory_space<vmem>>, %arg18: memref<32x64xf32, #tpu.memory_space<vmem>>, %arg19: memref<1x64xf32, #tpu.memory_space<vmem>>, %arg20: memref<64x32xf32, #tpu.memory_space<vmem>>, %arg21: memref<1x32xf32, #tpu.memory_space<vmem>>, %arg22: memref<1x32xf32, #tpu.memory_space<vmem>>, %arg23: memref<1x32xf32, #tpu.memory_space<vmem>>, %arg24: memref<1x8x32xf32, #tpu.memory_space<vmem>>) attributes {dimension_semantics = [#tpu.dimension_semantics<parallel>], iteration_bounds = array<i64: 2>, scalar_prefetch = 0 : i64, scratch_operands = 0 : i64, tpu.core_type = #tpu.core_type<tc>, window_params = [{transform_indices = @transform_0, window_bounds = array<i64: 1, 8, 32>}, {transform_indices = @transform_1, window_bounds = array<i64: 1, 8, 32>}, {pipeline_mode = #tpu.pipeline_mode<synchronous>, transform_indices = @transform_2, window_bounds = array<i64: 8, 8>}, {pipeline_mode = #tpu.pipeline_mode<synchronous>, transform_indices = @transform_3, window_bounds = array<i64: 32, 96>}, {pipeline_mode = #tpu.pipeline_mode<synchronous>, transform_indices = @transform_4, window_bounds = array<i64: 1, 96>}, {pipeline_mode = #tpu.pipeline_mode<synchronous>, transform_indices = @transform_5, window_bounds = array<i64: 32, 32>}, {pipeline_mode = #tpu.pipeline_mode<synchronous>, transform_indices = @transform_6, window_bounds = array<i64: 1, 32>}, {pipeline_mode = #tpu.pipeline_mode<synchronous>, transform_indices = @transform_7, window_bounds = array<i64: 1, 32>}, {pipeline_mode = #tpu.pipeline_mode<synchronous>, transform_indices = @transform_8, window_bounds = array<i64: 1, 32>}, {pipeline_mode = #tpu.pipeline_mode<synchronous>, transform_indices = @transform_9, window_bounds = array<i64: 32, 32>}, {pipeline_mode = #tpu.pipeline_mode<synchronous>, transform_indices = @transform_10, window_bounds = array<i64: 1, 32>}, {pipeline_mode = #tpu.pipeline_mode<synchronous>, transform_indices = @transform_11, window_bounds = array<i64: 32, 64>}, {pipeline_mode = #tpu.pipeline_mode<synchronous>, transform_indices = @transform_12, window_bounds = array<i64: 1, 64>}, {pipeline_mode = #tpu.pipeline_mode<synchronous>, transform_indices = @transform_13, window_bounds = array<i64: 32, 32>}, {pipeline_mode = #tpu.pipeline_mode<synchronous>, transform_indices = @transform_14, window_bounds = array<i64: 1, 32>}, {pipeline_mode = #tpu.pipeline_mode<synchronous>, transform_indices = @transform_15, window_bounds = array<i64: 1, 32>}, {pipeline_mode = #tpu.pipeline_mode<synchronous>, transform_indices = @transform_16, window_bounds = array<i64: 1, 32>}, {pipeline_mode = #tpu.pipeline_mode<synchronous>, transform_indices = @transform_17, window_bounds = array<i64: 32, 64>}, {pipeline_mode = #tpu.pipeline_mode<synchronous>, transform_indices = @transform_18, window_bounds = array<i64: 1, 64>}, {pipeline_mode = #tpu.pipeline_mode<synchronous>, transform_indices = @transform_19, window_bounds = array<i64: 64, 32>}, {pipeline_mode = #tpu.pipeline_mode<synchronous>, transform_indices = @transform_20, window_bounds = array<i64: 1, 32>}, {pipeline_mode = #tpu.pipeline_mode<synchronous>, transform_indices = @transform_21, window_bounds = array<i64: 1, 32>}, {pipeline_mode = #tpu.pipeline_mode<synchronous>, transform_indices = @transform_22, window_bounds = array<i64: 1, 32>}, {transform_indices = @transform_23, window_bounds = array<i64: 1, 8, 32>}]} {
    %c0 = arith.constant 0 : index
    %c0_0 = arith.constant 0 : index
    %c0_1 = arith.constant 0 : index
    %0 = vector.load %arg1[%c0, %c0_0, %c0_1] : memref<1x8x32xf32, #tpu.memory_space<vmem>>, vector<1x8x32xf32>
    %1 = vector.shape_cast %0 : vector<1x8x32xf32> to vector<8x32xf32>
    %c0_2 = arith.constant 0 : index
    %c0_3 = arith.constant 0 : index
    %c0_4 = arith.constant 0 : index
    %2 = vector.load %arg2[%c0_2, %c0_3, %c0_4] : memref<1x8x32xf32, #tpu.memory_space<vmem>>, vector<1x8x32xf32>
    %3 = vector.shape_cast %2 : vector<1x8x32xf32> to vector<8x32xf32>
    %c0_5 = arith.constant 0 : index
    %c0_6 = arith.constant 0 : index
    %4 = vector.load %arg3[%c0_5, %c0_6] : memref<8x8xf32, #tpu.memory_space<vmem>>, vector<8x8xf32>
    %c0_7 = arith.constant 0 : index
    %c0_8 = arith.constant 0 : index
    %5 = vector.load %arg4[%c0_7, %c0_8] : memref<32x96xf32, #tpu.memory_space<vmem>>, vector<32x96xf32>
    %c0_9 = arith.constant 0 : index
    %c0_10 = arith.constant 0 : index
    %6 = vector.load %arg5[%c0_9, %c0_10] : memref<1x96xf32, #tpu.memory_space<vmem>>, vector<1x96xf32>
    %c0_11 = arith.constant 0 : index
    %c0_12 = arith.constant 0 : index
    %7 = vector.load %arg6[%c0_11, %c0_12] : memref<32x32xf32, #tpu.memory_space<vmem>>, vector<32x32xf32>
    %c0_13 = arith.constant 0 : index
    %c0_14 = arith.constant 0 : index
    %8 = vector.load %arg7[%c0_13, %c0_14] : memref<1x32xf32, #tpu.memory_space<vmem>>, vector<1x32xf32>
    %cst = arith.constant dense<0.000000e+00> : vector<8x96xf32>
    %9 = tpu.matmul %1, %5, %cst {dimension_numbers = #tpu.dot_dimension_numbers<[1], [0], [0], [1], [0, 0, 1, 1], [], []>} : vector<8x32xf32>, vector<32x96xf32>, vector<8x96xf32> -> vector<8x96xf32>
    %10 = vector.broadcast %6 : vector<1x96xf32> to vector<8x96xf32>
    %11 = arith.addf %9, %10 : vector<8x96xf32>
    %12 = vector.extract_strided_slice %11 {offsets = [0, 0], sizes = [8, 32], strides = [1, 1]} : vector<8x96xf32> to vector<8x32xf32>
    %13 = vector.extract_strided_slice %11 {offsets = [0, 32], sizes = [8, 32], strides = [1, 1]} : vector<8x96xf32> to vector<8x32xf32>
    %14 = vector.extract_strided_slice %11 {offsets = [0, 64], sizes = [8, 32], strides = [1, 1]} : vector<8x96xf32> to vector<8x32xf32>
    %15 = vector.shape_cast %8 : vector<1x32xf32> to vector<1x32xf32>
    %16 = vector.broadcast %15 : vector<1x32xf32> to vector<8x32xf32>
    %17 = vector.extract_strided_slice %12 {offsets = [0, 0], sizes = [8, 8], strides = [1, 1]} : vector<8x32xf32> to vector<8x8xf32>
    %18 = vector.extract_strided_slice %13 {offsets = [0, 0], sizes = [8, 8], strides = [1, 1]} : vector<8x32xf32> to vector<8x8xf32>
    %19 = vector.extract_strided_slice %14 {offsets = [0, 0], sizes = [8, 8], strides = [1, 1]} : vector<8x32xf32> to vector<8x8xf32>
    %cst_15 = arith.constant dense<0.000000e+00> : vector<8x8xf32>
    %20 = tpu.matmul %17, %18, %cst_15 {dimension_numbers = #tpu.dot_dimension_numbers<[1], [1], [0], [0], [0, 0, 1, 0], [], []>} : vector<8x8xf32>, vector<8x8xf32>, vector<8x8xf32> -> vector<8x8xf32>
    %cst_16 = arith.constant 0.353553385 : f32
    %21 = vector.broadcast %cst_16 : f32 to vector<8x8xf32>
    %22 = arith.mulf %20, %21 : vector<8x8xf32>
    %23 = arith.addf %22, %4 : vector<8x8xf32>
    %cst_17 = arith.constant dense<0xFF800000> : vector<8xf32>
    %24 = vector.multi_reduction <maximumf>, %23, %cst_17 [1] : vector<8x8xf32> to vector<8xf32>
    %25 = vector.shape_cast %24 : vector<8xf32> to vector<8x1xf32>
    %26 = vector.broadcast %25 : vector<8x1xf32> to vector<8x8xf32>
    %27 = arith.subf %23, %26 : vector<8x8xf32>
    %28 = math.exp %27 : vector<8x8xf32>
    %cst_18 = arith.constant dense<0.000000e+00> : vector<8xf32>
    %29 = vector.multi_reduction <add>, %28, %cst_18 [1] : vector<8x8xf32> to vector<8xf32>
    %30 = vector.shape_cast %29 : vector<8xf32> to vector<8x1xf32>
    %31 = tpu.reciprocal %30 {approx = true} : vector<8x1xf32> -> vector<8x1xf32>
    %32 = vector.broadcast %31 : vector<8x1xf32> to vector<8x8xf32>
    %33 = arith.mulf %28, %32 : vector<8x8xf32>
    %cst_19 = arith.constant dense<0.000000e+00> : vector<8x8xf32>
    %34 = tpu.matmul %33, %19, %cst_19 {dimension_numbers = #tpu.dot_dimension_numbers<[1], [0], [0], [1], [0, 0, 1, 1], [], []>} : vector<8x8xf32>, vector<8x8xf32>, vector<8x8xf32> -> vector<8x8xf32>
    %35 = vector.extract_strided_slice %7 {offsets = [0, 0], sizes = [8, 32], strides = [1, 1]} : vector<32x32xf32> to vector<8x32xf32>
    %cst_20 = arith.constant dense<0.000000e+00> : vector<8x32xf32>
    %36 = tpu.matmul %34, %35, %cst_20 {dimension_numbers = #tpu.dot_dimension_numbers<[1], [0], [0], [1], [0, 0, 1, 1], [], []>} : vector<8x8xf32>, vector<8x32xf32>, vector<8x32xf32> -> vector<8x32xf32>
    %37 = arith.addf %16, %36 : vector<8x32xf32>
    %38 = vector.extract_strided_slice %12 {offsets = [0, 8], sizes = [8, 8], strides = [1, 1]} : vector<8x32xf32> to vector<8x8xf32>
    %39 = vector.extract_strided_slice %13 {offsets = [0, 8], sizes = [8, 8], strides = [1, 1]} : vector<8x32xf32> to vector<8x8xf32>
    %40 = vector.extract_strided_slice %14 {offsets = [0, 8], sizes = [8, 8], strides = [1, 1]} : vector<8x32xf32> to vector<8x8xf32>
    %cst_21 = arith.constant dense<0.000000e+00> : vector<8x8xf32>
    %41 = tpu.matmul %38, %39, %cst_21 {dimension_numbers = #tpu.dot_dimension_numbers<[1], [1], [0], [0], [0, 0, 1, 0], [], []>} : vector<8x8xf32>, vector<8x8xf32>, vector<8x8xf32> -> vector<8x8xf32>
    %cst_22 = arith.constant 0.353553385 : f32
    %42 = vector.broadcast %cst_22 : f32 to vector<8x8xf32>
    %43 = arith.mulf %41, %42 : vector<8x8xf32>
    %44 = arith.addf %43, %4 : vector<8x8xf32>
    %cst_23 = arith.constant dense<0xFF800000> : vector<8xf32>
    %45 = vector.multi_reduction <maximumf>, %44, %cst_23 [1] : vector<8x8xf32> to vector<8xf32>
    %46 = vector.shape_cast %45 : vector<8xf32> to vector<8x1xf32>
    %47 = vector.broadcast %46 : vector<8x1xf32> to vector<8x8xf32>
    %48 = arith.subf %44, %47 : vector<8x8xf32>
    %49 = math.exp %48 : vector<8x8xf32>
    %cst_24 = arith.constant dense<0.000000e+00> : vector<8xf32>
    %50 = vector.multi_reduction <add>, %49, %cst_24 [1] : vector<8x8xf32> to vector<8xf32>
    %51 = vector.shape_cast %50 : vector<8xf32> to vector<8x1xf32>
    %52 = tpu.reciprocal %51 {approx = true} : vector<8x1xf32> -> vector<8x1xf32>
    %53 = vector.broadcast %52 : vector<8x1xf32> to vector<8x8xf32>
    %54 = arith.mulf %49, %53 : vector<8x8xf32>
    %cst_25 = arith.constant dense<0.000000e+00> : vector<8x8xf32>
    %55 = tpu.matmul %54, %40, %cst_25 {dimension_numbers = #tpu.dot_dimension_numbers<[1], [0], [0], [1], [0, 0, 1, 1], [], []>} : vector<8x8xf32>, vector<8x8xf32>, vector<8x8xf32> -> vector<8x8xf32>
    %56 = vector.extract_strided_slice %7 {offsets = [8, 0], sizes = [8, 32], strides = [1, 1]} : vector<32x32xf32> to vector<8x32xf32>
    %cst_26 = arith.constant dense<0.000000e+00> : vector<8x32xf32>
    %57 = tpu.matmul %55, %56, %cst_26 {dimension_numbers = #tpu.dot_dimension_numbers<[1], [0], [0], [1], [0, 0, 1, 1], [], []>} : vector<8x8xf32>, vector<8x32xf32>, vector<8x32xf32> -> vector<8x32xf32>
    %58 = arith.addf %37, %57 : vector<8x32xf32>
    %59 = vector.extract_strided_slice %12 {offsets = [0, 16], sizes = [8, 8], strides = [1, 1]} : vector<8x32xf32> to vector<8x8xf32>
    %60 = vector.extract_strided_slice %13 {offsets = [0, 16], sizes = [8, 8], strides = [1, 1]} : vector<8x32xf32> to vector<8x8xf32>
    %61 = vector.extract_strided_slice %14 {offsets = [0, 16], sizes = [8, 8], strides = [1, 1]} : vector<8x32xf32> to vector<8x8xf32>
    %cst_27 = arith.constant dense<0.000000e+00> : vector<8x8xf32>
    %62 = tpu.matmul %59, %60, %cst_27 {dimension_numbers = #tpu.dot_dimension_numbers<[1], [1], [0], [0], [0, 0, 1, 0], [], []>} : vector<8x8xf32>, vector<8x8xf32>, vector<8x8xf32> -> vector<8x8xf32>
    %cst_28 = arith.constant 0.353553385 : f32
    %63 = vector.broadcast %cst_28 : f32 to vector<8x8xf32>
    %64 = arith.mulf %62, %63 : vector<8x8xf32>
    %65 = arith.addf %64, %4 : vector<8x8xf32>
    %cst_29 = arith.constant dense<0xFF800000> : vector<8xf32>
    %66 = vector.multi_reduction <maximumf>, %65, %cst_29 [1] : vector<8x8xf32> to vector<8xf32>
    %67 = vector.shape_cast %66 : vector<8xf32> to vector<8x1xf32>
    %68 = vector.broadcast %67 : vector<8x1xf32> to vector<8x8xf32>
    %69 = arith.subf %65, %68 : vector<8x8xf32>
    %70 = math.exp %69 : vector<8x8xf32>
    %cst_30 = arith.constant dense<0.000000e+00> : vector<8xf32>
    %71 = vector.multi_reduction <add>, %70, %cst_30 [1] : vector<8x8xf32> to vector<8xf32>
    %72 = vector.shape_cast %71 : vector<8xf32> to vector<8x1xf32>
    %73 = tpu.reciprocal %72 {approx = true} : vector<8x1xf32> -> vector<8x1xf32>
    %74 = vector.broadcast %73 : vector<8x1xf32> to vector<8x8xf32>
    %75 = arith.mulf %70, %74 : vector<8x8xf32>
    %cst_31 = arith.constant dense<0.000000e+00> : vector<8x8xf32>
    %76 = tpu.matmul %75, %61, %cst_31 {dimension_numbers = #tpu.dot_dimension_numbers<[1], [0], [0], [1], [0, 0, 1, 1], [], []>} : vector<8x8xf32>, vector<8x8xf32>, vector<8x8xf32> -> vector<8x8xf32>
    %77 = vector.extract_strided_slice %7 {offsets = [16, 0], sizes = [8, 32], strides = [1, 1]} : vector<32x32xf32> to vector<8x32xf32>
    %cst_32 = arith.constant dense<0.000000e+00> : vector<8x32xf32>
    %78 = tpu.matmul %76, %77, %cst_32 {dimension_numbers = #tpu.dot_dimension_numbers<[1], [0], [0], [1], [0, 0, 1, 1], [], []>} : vector<8x8xf32>, vector<8x32xf32>, vector<8x32xf32> -> vector<8x32xf32>
    %79 = arith.addf %58, %78 : vector<8x32xf32>
    %80 = vector.extract_strided_slice %12 {offsets = [0, 24], sizes = [8, 8], strides = [1, 1]} : vector<8x32xf32> to vector<8x8xf32>
    %81 = vector.extract_strided_slice %13 {offsets = [0, 24], sizes = [8, 8], strides = [1, 1]} : vector<8x32xf32> to vector<8x8xf32>
    %82 = vector.extract_strided_slice %14 {offsets = [0, 24], sizes = [8, 8], strides = [1, 1]} : vector<8x32xf32> to vector<8x8xf32>
    %cst_33 = arith.constant dense<0.000000e+00> : vector<8x8xf32>
    %83 = tpu.matmul %80, %81, %cst_33 {dimension_numbers = #tpu.dot_dimension_numbers<[1], [1], [0], [0], [0, 0, 1, 0], [], []>} : vector<8x8xf32>, vector<8x8xf32>, vector<8x8xf32> -> vector<8x8xf32>
    %cst_34 = arith.constant 0.353553385 : f32
    %84 = vector.broadcast %cst_34 : f32 to vector<8x8xf32>
    %85 = arith.mulf %83, %84 : vector<8x8xf32>
    %86 = arith.addf %85, %4 : vector<8x8xf32>
    %cst_35 = arith.constant dense<0xFF800000> : vector<8xf32>
    %87 = vector.multi_reduction <maximumf>, %86, %cst_35 [1] : vector<8x8xf32> to vector<8xf32>
    %88 = vector.shape_cast %87 : vector<8xf32> to vector<8x1xf32>
    %89 = vector.broadcast %88 : vector<8x1xf32> to vector<8x8xf32>
    %90 = arith.subf %86, %89 : vector<8x8xf32>
    %91 = math.exp %90 : vector<8x8xf32>
    %cst_36 = arith.constant dense<0.000000e+00> : vector<8xf32>
    %92 = vector.multi_reduction <add>, %91, %cst_36 [1] : vector<8x8xf32> to vector<8xf32>
    %93 = vector.shape_cast %92 : vector<8xf32> to vector<8x1xf32>
    %94 = tpu.reciprocal %93 {approx = true} : vector<8x1xf32> -> vector<8x1xf32>
    %95 = vector.broadcast %94 : vector<8x1xf32> to vector<8x8xf32>
    %96 = arith.mulf %91, %95 : vector<8x8xf32>
    %cst_37 = arith.constant dense<0.000000e+00> : vector<8x8xf32>
    %97 = tpu.matmul %96, %82, %cst_37 {dimension_numbers = #tpu.dot_dimension_numbers<[1], [0], [0], [1], [0, 0, 1, 1], [], []>} : vector<8x8xf32>, vector<8x8xf32>, vector<8x8xf32> -> vector<8x8xf32>
    %98 = vector.extract_strided_slice %7 {offsets = [24, 0], sizes = [8, 32], strides = [1, 1]} : vector<32x32xf32> to vector<8x32xf32>
    %cst_38 = arith.constant dense<0.000000e+00> : vector<8x32xf32>
    %99 = tpu.matmul %97, %98, %cst_38 {dimension_numbers = #tpu.dot_dimension_numbers<[1], [0], [0], [1], [0, 0, 1, 1], [], []>} : vector<8x8xf32>, vector<8x32xf32>, vector<8x32xf32> -> vector<8x32xf32>
    %100 = arith.addf %79, %99 : vector<8x32xf32>
    %101 = arith.addf %1, %100 : vector<8x32xf32>
    %c0_39 = arith.constant 0 : index
    %c0_40 = arith.constant 0 : index
    %102 = vector.load %arg8[%c0_39, %c0_40] : memref<1x32xf32, #tpu.memory_space<vmem>>, vector<1x32xf32>
    %c0_41 = arith.constant 0 : index
    %c0_42 = arith.constant 0 : index
    %103 = vector.load %arg9[%c0_41, %c0_42] : memref<1x32xf32, #tpu.memory_space<vmem>>, vector<1x32xf32>
    %cst_43 = arith.constant dense<0.000000e+00> : vector<8xf32>
    %104 = vector.multi_reduction <add>, %101, %cst_43 [1] : vector<8x32xf32> to vector<8xf32>
    %105 = vector.shape_cast %104 : vector<8xf32> to vector<8x1xf32>
    %cst_44 = arith.constant 3.200000e+01 : f32
    %106 = vector.broadcast %cst_44 : f32 to vector<8x1xf32>
    %107 = arith.divf %105, %106 : vector<8x1xf32>
    %108 = vector.broadcast %107 : vector<8x1xf32> to vector<8x32xf32>
    %109 = arith.subf %101, %108 : vector<8x32xf32>
    %110 = arith.mulf %109, %109 : vector<8x32xf32>
    %cst_45 = arith.constant dense<0.000000e+00> : vector<8xf32>
    %111 = vector.multi_reduction <add>, %110, %cst_45 [1] : vector<8x32xf32> to vector<8xf32>
    %112 = vector.shape_cast %111 : vector<8xf32> to vector<8x1xf32>
    %cst_46 = arith.constant 3.200000e+01 : f32
    %113 = vector.broadcast %cst_46 : f32 to vector<8x1xf32>
    %114 = arith.divf %112, %113 : vector<8x1xf32>
    %cst_47 = arith.constant 9.99999974E-6 : f32
    %115 = vector.broadcast %cst_47 : f32 to vector<8x1xf32>
    %116 = arith.addf %114, %115 : vector<8x1xf32>
    %117 = math.rsqrt %116 : vector<8x1xf32>
    %118 = vector.broadcast %117 : vector<8x1xf32> to vector<8x32xf32>
    %119 = arith.mulf %109, %118 : vector<8x32xf32>
    %120 = vector.broadcast %102 : vector<1x32xf32> to vector<8x32xf32>
    %121 = arith.mulf %119, %120 : vector<8x32xf32>
    %122 = vector.broadcast %103 : vector<1x32xf32> to vector<8x32xf32>
    %123 = arith.addf %121, %122 : vector<8x32xf32>
    %c0_48 = arith.constant 0 : index
    %c0_49 = arith.constant 0 : index
    %124 = vector.load %arg10[%c0_48, %c0_49] : memref<32x32xf32, #tpu.memory_space<vmem>>, vector<32x32xf32>
    %c0_50 = arith.constant 0 : index
    %c0_51 = arith.constant 0 : index
    %125 = vector.load %arg11[%c0_50, %c0_51] : memref<1x32xf32, #tpu.memory_space<vmem>>, vector<1x32xf32>
    %c0_52 = arith.constant 0 : index
    %c0_53 = arith.constant 0 : index
    %126 = vector.load %arg12[%c0_52, %c0_53] : memref<32x64xf32, #tpu.memory_space<vmem>>, vector<32x64xf32>
    %c0_54 = arith.constant 0 : index
    %c0_55 = arith.constant 0 : index
    %127 = vector.load %arg13[%c0_54, %c0_55] : memref<1x64xf32, #tpu.memory_space<vmem>>, vector<1x64xf32>
    %c0_56 = arith.constant 0 : index
    %c0_57 = arith.constant 0 : index
    %128 = vector.load %arg14[%c0_56, %c0_57] : memref<32x32xf32, #tpu.memory_space<vmem>>, vector<32x32xf32>
    %c0_58 = arith.constant 0 : index
    %c0_59 = arith.constant 0 : index
    %129 = vector.load %arg15[%c0_58, %c0_59] : memref<1x32xf32, #tpu.memory_space<vmem>>, vector<1x32xf32>
    %cst_60 = arith.constant dense<0.000000e+00> : vector<8x32xf32>
    %130 = tpu.matmul %123, %124, %cst_60 {dimension_numbers = #tpu.dot_dimension_numbers<[1], [0], [0], [1], [0, 0, 1, 1], [], []>} : vector<8x32xf32>, vector<32x32xf32>, vector<8x32xf32> -> vector<8x32xf32>
    %131 = vector.broadcast %125 : vector<1x32xf32> to vector<8x32xf32>
    %132 = arith.addf %130, %131 : vector<8x32xf32>
    %cst_61 = arith.constant dense<0.000000e+00> : vector<8x64xf32>
    %133 = tpu.matmul %3, %126, %cst_61 {dimension_numbers = #tpu.dot_dimension_numbers<[1], [0], [0], [1], [0, 0, 1, 1], [], []>} : vector<8x32xf32>, vector<32x64xf32>, vector<8x64xf32> -> vector<8x64xf32>
    %134 = vector.broadcast %127 : vector<1x64xf32> to vector<8x64xf32>
    %135 = arith.addf %133, %134 : vector<8x64xf32>
    %136 = vector.extract_strided_slice %135 {offsets = [0, 0], sizes = [8, 32], strides = [1, 1]} : vector<8x64xf32> to vector<8x32xf32>
    %137 = vector.extract_strided_slice %135 {offsets = [0, 32], sizes = [8, 32], strides = [1, 1]} : vector<8x64xf32> to vector<8x32xf32>
    %138 = vector.shape_cast %129 : vector<1x32xf32> to vector<1x32xf32>
    %139 = vector.broadcast %138 : vector<1x32xf32> to vector<8x32xf32>
    %140 = vector.extract_strided_slice %132 {offsets = [0, 0], sizes = [8, 8], strides = [1, 1]} : vector<8x32xf32> to vector<8x8xf32>
    %141 = vector.extract_strided_slice %136 {offsets = [0, 0], sizes = [8, 8], strides = [1, 1]} : vector<8x32xf32> to vector<8x8xf32>
    %142 = vector.extract_strided_slice %137 {offsets = [0, 0], sizes = [8, 8], strides = [1, 1]} : vector<8x32xf32> to vector<8x8xf32>
    %cst_62 = arith.constant dense<0.000000e+00> : vector<8x8xf32>
    %143 = tpu.matmul %140, %141, %cst_62 {dimension_numbers = #tpu.dot_dimension_numbers<[1], [1], [0], [0], [0, 0, 1, 0], [], []>} : vector<8x8xf32>, vector<8x8xf32>, vector<8x8xf32> -> vector<8x8xf32>
    %cst_63 = arith.constant 0.353553385 : f32
    %144 = vector.broadcast %cst_63 : f32 to vector<8x8xf32>
    %145 = arith.mulf %143, %144 : vector<8x8xf32>
    %cst_64 = arith.constant dense<0xFF800000> : vector<8xf32>
    %146 = vector.multi_reduction <maximumf>, %145, %cst_64 [1] : vector<8x8xf32> to vector<8xf32>
    %147 = vector.shape_cast %146 : vector<8xf32> to vector<8x1xf32>
    %148 = vector.broadcast %147 : vector<8x1xf32> to vector<8x8xf32>
    %149 = arith.subf %145, %148 : vector<8x8xf32>
    %150 = math.exp %149 : vector<8x8xf32>
    %cst_65 = arith.constant dense<0.000000e+00> : vector<8xf32>
    %151 = vector.multi_reduction <add>, %150, %cst_65 [1] : vector<8x8xf32> to vector<8xf32>
    %152 = vector.shape_cast %151 : vector<8xf32> to vector<8x1xf32>
    %153 = tpu.reciprocal %152 {approx = true} : vector<8x1xf32> -> vector<8x1xf32>
    %154 = vector.broadcast %153 : vector<8x1xf32> to vector<8x8xf32>
    %155 = arith.mulf %150, %154 : vector<8x8xf32>
    %cst_66 = arith.constant dense<0.000000e+00> : vector<8x8xf32>
    %156 = tpu.matmul %155, %142, %cst_66 {dimension_numbers = #tpu.dot_dimension_numbers<[1], [0], [0], [1], [0, 0, 1, 1], [], []>} : vector<8x8xf32>, vector<8x8xf32>, vector<8x8xf32> -> vector<8x8xf32>
    %157 = vector.extract_strided_slice %128 {offsets = [0, 0], sizes = [8, 32], strides = [1, 1]} : vector<32x32xf32> to vector<8x32xf32>
    %cst_67 = arith.constant dense<0.000000e+00> : vector<8x32xf32>
    %158 = tpu.matmul %156, %157, %cst_67 {dimension_numbers = #tpu.dot_dimension_numbers<[1], [0], [0], [1], [0, 0, 1, 1], [], []>} : vector<8x8xf32>, vector<8x32xf32>, vector<8x32xf32> -> vector<8x32xf32>
    %159 = arith.addf %139, %158 : vector<8x32xf32>
    %160 = vector.extract_strided_slice %132 {offsets = [0, 8], sizes = [8, 8], strides = [1, 1]} : vector<8x32xf32> to vector<8x8xf32>
    %161 = vector.extract_strided_slice %136 {offsets = [0, 8], sizes = [8, 8], strides = [1, 1]} : vector<8x32xf32> to vector<8x8xf32>
    %162 = vector.extract_strided_slice %137 {offsets = [0, 8], sizes = [8, 8], strides = [1, 1]} : vector<8x32xf32> to vector<8x8xf32>
    %cst_68 = arith.constant dense<0.000000e+00> : vector<8x8xf32>
    %163 = tpu.matmul %160, %161, %cst_68 {dimension_numbers = #tpu.dot_dimension_numbers<[1], [1], [0], [0], [0, 0, 1, 0], [], []>} : vector<8x8xf32>, vector<8x8xf32>, vector<8x8xf32> -> vector<8x8xf32>
    %cst_69 = arith.constant 0.353553385 : f32
    %164 = vector.broadcast %cst_69 : f32 to vector<8x8xf32>
    %165 = arith.mulf %163, %164 : vector<8x8xf32>
    %cst_70 = arith.constant dense<0xFF800000> : vector<8xf32>
    %166 = vector.multi_reduction <maximumf>, %165, %cst_70 [1] : vector<8x8xf32> to vector<8xf32>
    %167 = vector.shape_cast %166 : vector<8xf32> to vector<8x1xf32>
    %168 = vector.broadcast %167 : vector<8x1xf32> to vector<8x8xf32>
    %169 = arith.subf %165, %168 : vector<8x8xf32>
    %170 = math.exp %169 : vector<8x8xf32>
    %cst_71 = arith.constant dense<0.000000e+00> : vector<8xf32>
    %171 = vector.multi_reduction <add>, %170, %cst_71 [1] : vector<8x8xf32> to vector<8xf32>
    %172 = vector.shape_cast %171 : vector<8xf32> to vector<8x1xf32>
    %173 = tpu.reciprocal %172 {approx = true} : vector<8x1xf32> -> vector<8x1xf32>
    %174 = vector.broadcast %173 : vector<8x1xf32> to vector<8x8xf32>
    %175 = arith.mulf %170, %174 : vector<8x8xf32>
    %cst_72 = arith.constant dense<0.000000e+00> : vector<8x8xf32>
    %176 = tpu.matmul %175, %162, %cst_72 {dimension_numbers = #tpu.dot_dimension_numbers<[1], [0], [0], [1], [0, 0, 1, 1], [], []>} : vector<8x8xf32>, vector<8x8xf32>, vector<8x8xf32> -> vector<8x8xf32>
    %177 = vector.extract_strided_slice %128 {offsets = [8, 0], sizes = [8, 32], strides = [1, 1]} : vector<32x32xf32> to vector<8x32xf32>
    %cst_73 = arith.constant dense<0.000000e+00> : vector<8x32xf32>
    %178 = tpu.matmul %176, %177, %cst_73 {dimension_numbers = #tpu.dot_dimension_numbers<[1], [0], [0], [1], [0, 0, 1, 1], [], []>} : vector<8x8xf32>, vector<8x32xf32>, vector<8x32xf32> -> vector<8x32xf32>
    %179 = arith.addf %159, %178 : vector<8x32xf32>
    %180 = vector.extract_strided_slice %132 {offsets = [0, 16], sizes = [8, 8], strides = [1, 1]} : vector<8x32xf32> to vector<8x8xf32>
    %181 = vector.extract_strided_slice %136 {offsets = [0, 16], sizes = [8, 8], strides = [1, 1]} : vector<8x32xf32> to vector<8x8xf32>
    %182 = vector.extract_strided_slice %137 {offsets = [0, 16], sizes = [8, 8], strides = [1, 1]} : vector<8x32xf32> to vector<8x8xf32>
    %cst_74 = arith.constant dense<0.000000e+00> : vector<8x8xf32>
    %183 = tpu.matmul %180, %181, %cst_74 {dimension_numbers = #tpu.dot_dimension_numbers<[1], [1], [0], [0], [0, 0, 1, 0], [], []>} : vector<8x8xf32>, vector<8x8xf32>, vector<8x8xf32> -> vector<8x8xf32>
    %cst_75 = arith.constant 0.353553385 : f32
    %184 = vector.broadcast %cst_75 : f32 to vector<8x8xf32>
    %185 = arith.mulf %183, %184 : vector<8x8xf32>
    %cst_76 = arith.constant dense<0xFF800000> : vector<8xf32>
    %186 = vector.multi_reduction <maximumf>, %185, %cst_76 [1] : vector<8x8xf32> to vector<8xf32>
    %187 = vector.shape_cast %186 : vector<8xf32> to vector<8x1xf32>
    %188 = vector.broadcast %187 : vector<8x1xf32> to vector<8x8xf32>
    %189 = arith.subf %185, %188 : vector<8x8xf32>
    %190 = math.exp %189 : vector<8x8xf32>
    %cst_77 = arith.constant dense<0.000000e+00> : vector<8xf32>
    %191 = vector.multi_reduction <add>, %190, %cst_77 [1] : vector<8x8xf32> to vector<8xf32>
    %192 = vector.shape_cast %191 : vector<8xf32> to vector<8x1xf32>
    %193 = tpu.reciprocal %192 {approx = true} : vector<8x1xf32> -> vector<8x1xf32>
    %194 = vector.broadcast %193 : vector<8x1xf32> to vector<8x8xf32>
    %195 = arith.mulf %190, %194 : vector<8x8xf32>
    %cst_78 = arith.constant dense<0.000000e+00> : vector<8x8xf32>
    %196 = tpu.matmul %195, %182, %cst_78 {dimension_numbers = #tpu.dot_dimension_numbers<[1], [0], [0], [1], [0, 0, 1, 1], [], []>} : vector<8x8xf32>, vector<8x8xf32>, vector<8x8xf32> -> vector<8x8xf32>
    %197 = vector.extract_strided_slice %128 {offsets = [16, 0], sizes = [8, 32], strides = [1, 1]} : vector<32x32xf32> to vector<8x32xf32>
    %cst_79 = arith.constant dense<0.000000e+00> : vector<8x32xf32>
    %198 = tpu.matmul %196, %197, %cst_79 {dimension_numbers = #tpu.dot_dimension_numbers<[1], [0], [0], [1], [0, 0, 1, 1], [], []>} : vector<8x8xf32>, vector<8x32xf32>, vector<8x32xf32> -> vector<8x32xf32>
    %199 = arith.addf %179, %198 : vector<8x32xf32>
    %200 = vector.extract_strided_slice %132 {offsets = [0, 24], sizes = [8, 8], strides = [1, 1]} : vector<8x32xf32> to vector<8x8xf32>
    %201 = vector.extract_strided_slice %136 {offsets = [0, 24], sizes = [8, 8], strides = [1, 1]} : vector<8x32xf32> to vector<8x8xf32>
    %202 = vector.extract_strided_slice %137 {offsets = [0, 24], sizes = [8, 8], strides = [1, 1]} : vector<8x32xf32> to vector<8x8xf32>
    %cst_80 = arith.constant dense<0.000000e+00> : vector<8x8xf32>
    %203 = tpu.matmul %200, %201, %cst_80 {dimension_numbers = #tpu.dot_dimension_numbers<[1], [1], [0], [0], [0, 0, 1, 0], [], []>} : vector<8x8xf32>, vector<8x8xf32>, vector<8x8xf32> -> vector<8x8xf32>
    %cst_81 = arith.constant 0.353553385 : f32
    %204 = vector.broadcast %cst_81 : f32 to vector<8x8xf32>
    %205 = arith.mulf %203, %204 : vector<8x8xf32>
    %cst_82 = arith.constant dense<0xFF800000> : vector<8xf32>
    %206 = vector.multi_reduction <maximumf>, %205, %cst_82 [1] : vector<8x8xf32> to vector<8xf32>
    %207 = vector.shape_cast %206 : vector<8xf32> to vector<8x1xf32>
    %208 = vector.broadcast %207 : vector<8x1xf32> to vector<8x8xf32>
    %209 = arith.subf %205, %208 : vector<8x8xf32>
    %210 = math.exp %209 : vector<8x8xf32>
    %cst_83 = arith.constant dense<0.000000e+00> : vector<8xf32>
    %211 = vector.multi_reduction <add>, %210, %cst_83 [1] : vector<8x8xf32> to vector<8xf32>
    %212 = vector.shape_cast %211 : vector<8xf32> to vector<8x1xf32>
    %213 = tpu.reciprocal %212 {approx = true} : vector<8x1xf32> -> vector<8x1xf32>
    %214 = vector.broadcast %213 : vector<8x1xf32> to vector<8x8xf32>
    %215 = arith.mulf %210, %214 : vector<8x8xf32>
    %cst_84 = arith.constant dense<0.000000e+00> : vector<8x8xf32>
    %216 = tpu.matmul %215, %202, %cst_84 {dimension_numbers = #tpu.dot_dimension_numbers<[1], [0], [0], [1], [0, 0, 1, 1], [], []>} : vector<8x8xf32>, vector<8x8xf32>, vector<8x8xf32> -> vector<8x8xf32>
    %217 = vector.extract_strided_slice %128 {offsets = [24, 0], sizes = [8, 32], strides = [1, 1]} : vector<32x32xf32> to vector<8x32xf32>
    %cst_85 = arith.constant dense<0.000000e+00> : vector<8x32xf32>
    %218 = tpu.matmul %216, %217, %cst_85 {dimension_numbers = #tpu.dot_dimension_numbers<[1], [0], [0], [1], [0, 0, 1, 1], [], []>} : vector<8x8xf32>, vector<8x32xf32>, vector<8x32xf32> -> vector<8x32xf32>
    %219 = arith.addf %199, %218 : vector<8x32xf32>
    %220 = arith.addf %123, %219 : vector<8x32xf32>
    %c0_86 = arith.constant 0 : index
    %c0_87 = arith.constant 0 : index
    %221 = vector.load %arg16[%c0_86, %c0_87] : memref<1x32xf32, #tpu.memory_space<vmem>>, vector<1x32xf32>
    %c0_88 = arith.constant 0 : index
    %c0_89 = arith.constant 0 : index
    %222 = vector.load %arg17[%c0_88, %c0_89] : memref<1x32xf32, #tpu.memory_space<vmem>>, vector<1x32xf32>
    %cst_90 = arith.constant dense<0.000000e+00> : vector<8xf32>
    %223 = vector.multi_reduction <add>, %220, %cst_90 [1] : vector<8x32xf32> to vector<8xf32>
    %224 = vector.shape_cast %223 : vector<8xf32> to vector<8x1xf32>
    %cst_91 = arith.constant 3.200000e+01 : f32
    %225 = vector.broadcast %cst_91 : f32 to vector<8x1xf32>
    %226 = arith.divf %224, %225 : vector<8x1xf32>
    %227 = vector.broadcast %226 : vector<8x1xf32> to vector<8x32xf32>
    %228 = arith.subf %220, %227 : vector<8x32xf32>
    %229 = arith.mulf %228, %228 : vector<8x32xf32>
    %cst_92 = arith.constant dense<0.000000e+00> : vector<8xf32>
    %230 = vector.multi_reduction <add>, %229, %cst_92 [1] : vector<8x32xf32> to vector<8xf32>
    %231 = vector.shape_cast %230 : vector<8xf32> to vector<8x1xf32>
    %cst_93 = arith.constant 3.200000e+01 : f32
    %232 = vector.broadcast %cst_93 : f32 to vector<8x1xf32>
    %233 = arith.divf %231, %232 : vector<8x1xf32>
    %cst_94 = arith.constant 9.99999974E-6 : f32
    %234 = vector.broadcast %cst_94 : f32 to vector<8x1xf32>
    %235 = arith.addf %233, %234 : vector<8x1xf32>
    %236 = math.rsqrt %235 : vector<8x1xf32>
    %237 = vector.broadcast %236 : vector<8x1xf32> to vector<8x32xf32>
    %238 = arith.mulf %228, %237 : vector<8x32xf32>
    %239 = vector.broadcast %221 : vector<1x32xf32> to vector<8x32xf32>
    %240 = arith.mulf %238, %239 : vector<8x32xf32>
    %241 = vector.broadcast %222 : vector<1x32xf32> to vector<8x32xf32>
    %242 = arith.addf %240, %241 : vector<8x32xf32>
    %c0_95 = arith.constant 0 : index
    %c0_96 = arith.constant 0 : index
    %243 = vector.load %arg18[%c0_95, %c0_96] : memref<32x64xf32, #tpu.memory_space<vmem>>, vector<32x64xf32>
    %c0_97 = arith.constant 0 : index
    %c0_98 = arith.constant 0 : index
    %244 = vector.load %arg19[%c0_97, %c0_98] : memref<1x64xf32, #tpu.memory_space<vmem>>, vector<1x64xf32>
    %c0_99 = arith.constant 0 : index
    %c0_100 = arith.constant 0 : index
    %245 = vector.load %arg20[%c0_99, %c0_100] : memref<64x32xf32, #tpu.memory_space<vmem>>, vector<64x32xf32>
    %c0_101 = arith.constant 0 : index
    %c0_102 = arith.constant 0 : index
    %246 = vector.load %arg21[%c0_101, %c0_102] : memref<1x32xf32, #tpu.memory_space<vmem>>, vector<1x32xf32>
    %cst_103 = arith.constant dense<0.000000e+00> : vector<8x64xf32>
    %247 = tpu.matmul %242, %243, %cst_103 {dimension_numbers = #tpu.dot_dimension_numbers<[1], [0], [0], [1], [0, 0, 1, 1], [], []>} : vector<8x32xf32>, vector<32x64xf32>, vector<8x64xf32> -> vector<8x64xf32>
    %248 = vector.broadcast %244 : vector<1x64xf32> to vector<8x64xf32>
    %249 = arith.addf %247, %248 : vector<8x64xf32>
    %cst_104 = arith.constant 0.000000e+00 : f32
    %250 = vector.broadcast %cst_104 : f32 to vector<8x64xf32>
    %251 = arith.maximumf %249, %250 : vector<8x64xf32>
    %cst_105 = arith.constant dense<0.000000e+00> : vector<8x32xf32>
    %252 = tpu.matmul %251, %245, %cst_105 {dimension_numbers = #tpu.dot_dimension_numbers<[1], [0], [0], [1], [0, 0, 1, 1], [], []>} : vector<8x64xf32>, vector<64x32xf32>, vector<8x32xf32> -> vector<8x32xf32>
    %253 = vector.broadcast %246 : vector<1x32xf32> to vector<8x32xf32>
    %254 = arith.addf %252, %253 : vector<8x32xf32>
    %255 = arith.addf %242, %254 : vector<8x32xf32>
    %c0_106 = arith.constant 0 : index
    %c0_107 = arith.constant 0 : index
    %256 = vector.load %arg22[%c0_106, %c0_107] : memref<1x32xf32, #tpu.memory_space<vmem>>, vector<1x32xf32>
    %c0_108 = arith.constant 0 : index
    %c0_109 = arith.constant 0 : index
    %257 = vector.load %arg23[%c0_108, %c0_109] : memref<1x32xf32, #tpu.memory_space<vmem>>, vector<1x32xf32>
    %cst_110 = arith.constant dense<0.000000e+00> : vector<8xf32>
    %258 = vector.multi_reduction <add>, %255, %cst_110 [1] : vector<8x32xf32> to vector<8xf32>
    %259 = vector.shape_cast %258 : vector<8xf32> to vector<8x1xf32>
    %cst_111 = arith.constant 3.200000e+01 : f32
    %260 = vector.broadcast %cst_111 : f32 to vector<8x1xf32>
    %261 = arith.divf %259, %260 : vector<8x1xf32>
    %262 = vector.broadcast %261 : vector<8x1xf32> to vector<8x32xf32>
    %263 = arith.subf %255, %262 : vector<8x32xf32>
    %264 = arith.mulf %263, %263 : vector<8x32xf32>
    %cst_112 = arith.constant dense<0.000000e+00> : vector<8xf32>
    %265 = vector.multi_reduction <add>, %264, %cst_112 [1] : vector<8x32xf32> to vector<8xf32>
    %266 = vector.shape_cast %265 : vector<8xf32> to vector<8x1xf32>
    %cst_113 = arith.constant 3.200000e+01 : f32
    %267 = vector.broadcast %cst_113 : f32 to vector<8x1xf32>
    %268 = arith.divf %266, %267 : vector<8x1xf32>
    %cst_114 = arith.constant 9.99999974E-6 : f32
    %269 = vector.broadcast %cst_114 : f32 to vector<8x1xf32>
    %270 = arith.addf %268, %269 : vector<8x1xf32>
    %271 = math.rsqrt %270 : vector<8x1xf32>
    %272 = vector.broadcast %271 : vector<8x1xf32> to vector<8x32xf32>
    %273 = arith.mulf %263, %272 : vector<8x32xf32>
    %274 = vector.broadcast %256 : vector<1x32xf32> to vector<8x32xf32>
    %275 = arith.mulf %273, %274 : vector<8x32xf32>
    %276 = vector.broadcast %257 : vector<1x32xf32> to vector<8x32xf32>
    %277 = arith.addf %275, %276 : vector<8x32xf32>
    %c0_115 = arith.constant 0 : index
    %c0_116 = arith.constant 0 : index
    %c0_117 = arith.constant 0 : index
    %278 = vector.load %arg24[%c0_115, %c0_116, %c0_117] : memref<1x8x32xf32, #tpu.memory_space<vmem>>, vector<1x8x32xf32>
    %279 = vector.shape_cast %278 : vector<1x8x32xf32> to vector<8x32xf32>
    %280 = vector.shape_cast %277 : vector<8x32xf32> to vector<1x8x32xf32>
    tpu.vector_store %arg24[%c0_115, %c0_116, %c0_117], %280 {strides = array<i32>} : memref<1x8x32xf32, #tpu.memory_space<vmem>>, vector<1x8x32xf32>,
    return
  }
  func.func @transform_0(%arg0: i32) -> (i32, i32, i32) {
    %c0_i32 = arith.constant 0 : i32
    %c0_i32_0 = arith.constant 0 : i32
    %c0_i32_1 = arith.constant 0 : i32
    return %arg0, %c0_i32, %c0_i32_0 : i32, i32, i32
  }
  func.func @transform_1(%arg0: i32) -> (i32, i32, i32) {
    %c0_i32 = arith.constant 0 : i32
    %c0_i32_0 = arith.constant 0 : i32
    %c0_i32_1 = arith.constant 0 : i32
    return %arg0, %c0_i32, %c0_i32_0 : i32, i32, i32
  }
  func.func @transform_2(%arg0: i32) -> (i32, i32) {
    %c0_i32 = arith.constant 0 : i32
    %c0_i32_0 = arith.constant 0 : i32
    %c0_i32_1 = arith.constant 0 : i32
    return %c0_i32, %c0_i32_0 : i32, i32
  }
  func.func @transform_3(%arg0: i32) -> (i32, i32) {
    %c0_i32 = arith.constant 0 : i32
    %c0_i32_0 = arith.constant 0 : i32
    %c0_i32_1 = arith.constant 0 : i32
    return %c0_i32, %c0_i32_0 : i32, i32
  }
  func.func @transform_4(%arg0: i32) -> (i32, i32) {
    %c0_i32 = arith.constant 0 : i32
    %c0_i32_0 = arith.constant 0 : i32
    %c0_i32_1 = arith.constant 0 : i32
    return %c0_i32, %c0_i32_0 : i32, i32
  }
  func.func @transform_5(%arg0: i32) -> (i32, i32) {
    %c0_i32 = arith.constant 0 : i32
    %c0_i32_0 = arith.constant 0 : i32
    %c0_i32_1 = arith.constant 0 : i32
    return %c0_i32, %c0_i32_0 : i32, i32
  }
  func.func @transform_6(%arg0: i32) -> (i32, i32) {
    %c0_i32 = arith.constant 0 : i32
    %c0_i32_0 = arith.constant 0 : i32
    %c0_i32_1 = arith.constant 0 : i32
    return %c0_i32, %c0_i32_0 : i32, i32
  }
  func.func @transform_7(%arg0: i32) -> (i32, i32) {
    %c0_i32 = arith.constant 0 : i32
    %c0_i32_0 = arith.constant 0 : i32
    %c0_i32_1 = arith.constant 0 : i32
    return %c0_i32, %c0_i32_0 : i32, i32
  }
  func.func @transform_8(%arg0: i32) -> (i32, i32) {
    %c0_i32 = arith.constant 0 : i32
    %c0_i32_0 = arith.constant 0 : i32
    %c0_i32_1 = arith.constant 0 : i32
    return %c0_i32, %c0_i32_0 : i32, i32
  }
  func.func @transform_9(%arg0: i32) -> (i32, i32) {
    %c0_i32 = arith.constant 0 : i32
    %c0_i32_0 = arith.constant 0 : i32
    %c0_i32_1 = arith.constant 0 : i32
    return %c0_i32, %c0_i32_0 : i32, i32
  }
  func.func @transform_10(%arg0: i32) -> (i32, i32) {
    %c0_i32 = arith.constant 0 : i32
    %c0_i32_0 = arith.constant 0 : i32
    %c0_i32_1 = arith.constant 0 : i32
    return %c0_i32, %c0_i32_0 : i32, i32
  }
  func.func @transform_11(%arg0: i32) -> (i32, i32) {
    %c0_i32 = arith.constant 0 : i32
    %c0_i32_0 = arith.constant 0 : i32
    %c0_i32_1 = arith.constant 0 : i32
    return %c0_i32, %c0_i32_0 : i32, i32
  }
  func.func @transform_12(%arg0: i32) -> (i32, i32) {
    %c0_i32 = arith.constant 0 : i32
    %c0_i32_0 = arith.constant 0 : i32
    %c0_i32_1 = arith.constant 0 : i32
    return %c0_i32, %c0_i32_0 : i32, i32
  }
  func.func @transform_13(%arg0: i32) -> (i32, i32) {
    %c0_i32 = arith.constant 0 : i32
    %c0_i32_0 = arith.constant 0 : i32
    %c0_i32_1 = arith.constant 0 : i32
    return %c0_i32, %c0_i32_0 : i32, i32
  }
  func.func @transform_14(%arg0: i32) -> (i32, i32) {
    %c0_i32 = arith.constant 0 : i32
    %c0_i32_0 = arith.constant 0 : i32
    %c0_i32_1 = arith.constant 0 : i32
    return %c0_i32, %c0_i32_0 : i32, i32
  }
  func.func @transform_15(%arg0: i32) -> (i32, i32) {
    %c0_i32 = arith.constant 0 : i32
    %c0_i32_0 = arith.constant 0 : i32
    %c0_i32_1 = arith.constant 0 : i32
    return %c0_i32, %c0_i32_0 : i32, i32
  }
  func.func @transform_16(%arg0: i32) -> (i32, i32) {
    %c0_i32 = arith.constant 0 : i32
    %c0_i32_0 = arith.constant 0 : i32
    %c0_i32_1 = arith.constant 0 : i32
    return %c0_i32, %c0_i32_0 : i32, i32
  }
  func.func @transform_17(%arg0: i32) -> (i32, i32) {
    %c0_i32 = arith.constant 0 : i32
    %c0_i32_0 = arith.constant 0 : i32
    %c0_i32_1 = arith.constant 0 : i32
    return %c0_i32, %c0_i32_0 : i32, i32
  }
  func.func @transform_18(%arg0: i32) -> (i32, i32) {
    %c0_i32 = arith.constant 0 : i32
    %c0_i32_0 = arith.constant 0 : i32
    %c0_i32_1 = arith.constant 0 : i32
    return %c0_i32, %c0_i32_0 : i32, i32
  }
  func.func @transform_19(%arg0: i32) -> (i32, i32) {
    %c0_i32 = arith.constant 0 : i32
    %c0_i32_0 = arith.constant 0 : i32
    %c0_i32_1 = arith.constant 0 : i32
    return %c0_i32, %c0_i32_0 : i32, i32
  }
  func.func @transform_20(%arg0: i32) -> (i32, i32) {
    %c0_i32 = arith.constant 0 : i32
    %c0_i32_0 = arith.constant 0 : i32
    %c0_i32_1 = arith.constant 0 : i32
    return %c0_i32, %c0_i32_0 : i32, i32
  }
  func.func @transform_21(%arg0: i32) -> (i32, i32) {
    %c0_i32 = arith.constant 0 : i32
    %c0_i32_0 = arith.constant 0 : i32
    %c0_i32_1 = arith.constant 0 : i32
    return %c0_i32, %c0_i32_0 : i32, i32
  }
  func.func @transform_22(%arg0: i32) -> (i32, i32) {
    %c0_i32 = arith.constant 0 : i32
    %c0_i32_0 = arith.constant 0 : i32
    %c0_i32_1 = arith.constant 0 : i32
    return %c0_i32, %c0_i32_0 : i32, i32
  }
  func.func @transform_23(%arg0: i32) -> (i32, i32, i32) {
    %c0_i32 = arith.constant 0 : i32
    %c0_i32_0 = arith.constant 0 : i32
    %c0_i32_1 = arith.constant 0 : i32
    return %arg0, %c0_i32, %c0_i32_0 : i32, i32, i32
  }
}

</mosaic_0001>

<bundles_post_ra>
// kernel: chord_melody_transformer_v3_forward.9
= control target key start
LH: loop header
LB: loop body
LE: loop exit
PB: predicated region body
PF: predicated region fallthrough
CT: control target
= control target key end

     0   :  { %s333_s12 = smov 0   ;;  %s377_s0 = inlined_call_operand.vmem [shape: f32[2,8,32], index: 0, kind: input, shape index: {}]   ;;  %s378_s1 = inlined_call_operand.vmem [shape: f32[32,256], index: 1, kind: input, shape index: {}]   ;;  %s379_s2 = inlined_call_operand.vmem [shape: f32[1,256], index: 2, kind: input, shape index: {}]   ;;  %s380_s3 = inlined_call_operand.vmem [shape: f32[2,8,256], index: 3, kind: output, shape index: {}]  }
   0x1 LB: > { %s284_s13 = sadd.s32 4294967295, %s311_s12   ;;  %p288_p0 = scmp.ge.s32.totalorder %s311_s12, 1  ;;  %s311_s12 = sphi %s333_s12, %s13_s12  }
   0x2   : > { %p136_p1 = scmp.lt.s32.totalorder %s311_s12, 3 }
   0x4   : > { %p137_p2 = pnand %p288_p0, %p136_p1 }
   0x5   : > { %p159_p3 = scmp.lt.s32.totalorder (!%p137_p2), %s284_s13, 1 }
   0x6   : > { %140 = sbr.rel (%p137_p2) target bundleno = 149 (0x95), region = 32 }
   0xb   : > { %v175_v0 = vld [vmem:[%s378_s1 + $0x30] sm:$0xff]  ;;  %v176_v1 = vld [vmem:[%s378_s1 + $0x38] sm:$0xff]  ;;  %v173_v2 = vld [vmem:[%s378_s1 + $0x20] sm:$0xff]  ;;  %s382_s13 = smov (!%p159_p3, %s284_s13), 1  ;;  %vm183_vm0 = vcmask 261120  }
   0xc   : > { %199 = vmatpush.msra.mxu0 %v175_v0  ;;  %219 = vmatpush.msra.mxu1 %v176_v1  ;;  %v174_v3 = vld [vmem:[%s378_s1 + $0x28] sm:$0xff]  ;;  %v171_v4 = vld [vmem:[%s378_s1 + $0x10] sm:$0xff]  ;;  %v172_v5 = vld [vmem:[%s378_s1 + $0x18] sm:$0xff]  ;;  %s289_s30 = sshll.u32 %s382_s13, 3  ;;  %s296_s9 = sshll.u32 %s382_s13, 4 }
   0xd   : > { %v169_v6 = vld [vmem:[%s378_s1] sm:$0xff]  ;;  %v170_v7 = vld [vmem:[%s378_s1 + $0x8] sm:$0xff]  ;;  %s162_s6 = scalar_lea.vmem %s377_s0, %s289_s30  ;;  %s167_s14 = scalar_lea.vmem %s380_s3, %s296_s9 }
   0xe   : > { %200 = vmatpush.msra.mxu0 %v173_v2  ;;  %220 = vmatpush.msra.mxu1 %v174_v3  ;;  %v168_v8 = vld [vmem:[%s162_s6] sm:$0xff] }
   0xf   : > { %v177_v9 = vld [vmem:[%s379_s2] sm:$0x3] }
  0x10   : > { %201 = vmatpush.msra.mxu0 %v171_v4  ;;  %221 = vmatpush.msra.mxu1 %v172_v5  ;;  %v179_v10 = vperm.slane %v177_v9, 0  ;;  %v180_v11 = vperm.slane %v177_v9, 1 }
  0x12   : > { %202 = vmatpush.msra.mxu0 %v169_v6  ;;  %222 = vmatpush.msra.mxu1 %v170_v7 }
  0x13   : > { %292 = vmatmul.msk.f32.vlgmr.msra.gmra.mxu0 %vm183_vm0, %v168_v8  ;;  %293 = vmatmul.msk.f32.vlgmr.msra.gmra.mxu1 %vm183_vm0, %v168_v8 }
  0x90   : > { %v204_v12 = vpop.f32.mrf.mxu0  ;;  %v224_v13 = vpop.f32.mrf.mxu1 }
  0x91   : > { %v205_v14 = vadd.f32 %v204_v12, %v179_v10  ;;  %v225_v15 = vadd.f32 %v224_v13, %v180_v11 }
  0x93   : > { %227 = vst [vmem:[%s167_s14] sm:$0xff] %v205_v14 }
  0x94   : > { %228 = vst [vmem:[%s167_s14 + $0x8] sm:$0xff] %v225_v15 }
  0x95 PF: > { %s13_s12 = sadd.s32 1, %s311_s12  }
  0x96   : > { %p10_p4 = scmp.ge.s32.totalorder %s13_s12, 4  }
  0x98   :  { %12 = sbr.rel (!%p10_p4) target bundleno = 1 (0x1), region = 62 }

// kernel: chord_melody_transformer_v3_forward.5
= control target key start
LH: loop header
LB: loop body
LE: loop exit
PB: predicated region body
PF: predicated region fallthrough
CT: control target
= control target key end

     0   :  { %s1200_s25 = smov 0   ;;  %s1363_s0 = inlined_call_operand.vmem [shape: f32[2,8,32], index: 0, kind: input, shape index: {}]   ;;  %s1364_s1 = inlined_call_operand.vmem [shape: f32[32,96], index: 1, kind: input, shape index: {}]   ;;  %s1365_s2 = inlined_call_operand.vmem [shape: f32[1,96], index: 2, kind: input, shape index: {}]   ;;  %s1366_s3 = inlined_call_operand.vmem [shape: f32[32,32], index: 3, kind: input, shape index: {}]   ;;  %s1367_s4 = inlined_call_operand.vmem [shape: f32[1,32], index: 4, kind: input, shape index: {}]   ;;  %s1368_s5 = inlined_call_operand.vmem [shape: f32[1,32], index: 5, kind: input, shape index: {}]   ;;  %s1369_s6 = inlined_call_operand.vmem [shape: f32[1,32], index: 6, kind: input, shape index: {}]   ;;  %s1370_s7 = inlined_call_operand.vmem [shape: f32[32,64], index: 7, kind: input, shape index: {}]   ;;  %s1371_s8 = inlined_call_operand.vmem [shape: f32[1,64], index: 8, kind: input, shape index: {}]   ;;  %s1372_s9 = inlined_call_operand.vmem [shape: f32[64,32], index: 9, kind: input, shape index: {}]   ;;  %s1373_s10 = inlined_call_operand.vmem [shape: f32[1,32], index: 10, kind: input, shape index: {}]   ;;  %s1374_s11 = inlined_call_operand.vmem [shape: f32[1,32], index: 11, kind: input, shape index: {}]   ;;  %s1375_s12 = inlined_call_operand.vmem [shape: f32[1,32], index: 12, kind: input, shape index: {}]   ;;  %s1376_s13 = inlined_call_operand.vmem [shape: f32[2,8,32], index: 13, kind: output, shape index: {}]  }
   0x1 LB: > { %s1032_s26 = sadd.s32 4294967295, %s1116_s25   ;;  %p1036_p0 = scmp.ge.s32.totalorder %s1116_s25, 1  ;;  %s1116_s25 = sphi %s1200_s25, %s23_s25  }
   0x2   : > { %p386_p1 = scmp.lt.s32.totalorder %s1116_s25, 3 }
   0x4   : > { %p387_p2 = pnand %p1036_p0, %p386_p1 }
   0x5   : > { %p428_p3 = scmp.lt.s32.totalorder (!%p387_p2), %s1032_s26, 1  ;;  %s1118_s24 = smov (!%p387_p2), 88  }
   0x6   : > { %390 = sbr.rel (%p387_p2) target bundleno = 2646 (0xa56), region = 72  ;;  %s1119_s27 = smov (!%p387_p2), 96  }
   0x7   : > { %s1120_s28 = smov (!%p387_p2), 120   ;;  %s1121_s29 = smov (!%p387_p2), 56  }
   0x8   : > { %s1122_s30 = smov (!%p387_p2), 112   ;;  %s1123_s14 = smov (!%p387_p2), 104  }
   0x9   : > { %s1124_s17 = smov (!%p387_p2), 64   ;;  %s1125_s19 = smov (!%p387_p2), 80  }
   0xa   : > { %s1126_s20 = smov (!%p387_p2), 72   ;;  %s1127_s23 = smov (!%p387_p2), 48  }
   0xb   : > { %v440_v0 = vld [vmem:[%s1364_s1 + $0x18] sm:$0xff]  ;;  %v439_v1 = vld [vmem:[%s1364_s1 + $0x10] sm:$0xff]  ;;  %v438_v2 = vld [vmem:[%s1364_s1 + $0x8] sm:$0xff]  ;;  %s1378_s26 = smov (!%p428_p3, %s1032_s26), 1  ;;  %vm450_vm0 = vcmask 261120   ;;  %vm480_vm1 = vcmask 64512  }
   0xc   : > { %466 = vmatpush.msra.mxu0 %v440_v0  ;;  %v437_v3 = vld [vmem:[%s1364_s1] sm:$0xff]  ;;  %s1037_s18 = sshll.u32 %s1378_s26, 3  ;;  %v443_v36 = vld [vmem:[%s1366_s3 + $0x8] sm:$0xff]  ;;  %vm921_vm6 = vcmask 523264  }
   0xd   : > { %s431_s21 = scalar_lea.vmem %s1363_s0, %s1037_s18  ;;  %v1080_v5 = vld [vmem:[%s1365_s2] ss:$0 sm:$0xff]  ;;  %651 = vmatpush.msra.mxu1 %v443_v36  ;;  %v887_v36 = vld [vmem:[%s1372_s9 + $0x28] sm:$0xff] }
   0xe   : > { %467 = vmatpush.msra.mxu0 %v439_v1  ;;  %v1228_v4 = vld [vmem:[%s431_s21] sm:$0xff]  ;;  %v444_v1 = vld [vmem:[%s1366_s3 + $0x10] sm:$0xff] }
   0xf   : > { %v442_v12 = vld [vmem:[%s1366_s3] sm:$0xff] }
  0x10   : > { %468 = vmatpush.msra.mxu0 %v438_v2  ;;  %561 = vmatpush.msra.mxu3 %v442_v12 }
  0x12   : > { %469 = vmatpush.msra.mxu0 %v437_v3 }
  0x13   : > { %1039 = vmatmul.msk.f32.vlgmr.msra.gmra.mxu0 %vm450_vm0, %v1228_v4 }
  0x90   : > { %v471_v6 = vpop.f32.mrf.mxu0 }
  0x91   : > { %v1235_v7 = vadd.f32 %v1080_v5, %v471_v6 }
  0x93   : > { %569 = vrot.lane.b32.xlu2 %v1235_v7, %s1118_s24  ;;  %478 = vrot.lane.b32.xlu0 %v1235_v7, %s1119_s27  ;;  %s1128_s24 = smov 40  }
  0x9b   : > { %567 = vrot.lane.b32.xlu2 %v1235_v7, %s1120_s28 }
  0xed   : > { %v570_v21 = vpop.permute.xlu2 %569 }
  0xf5   : > { %v568_v24 = vpop.permute.xlu2 %567 }
 0x105   : > { %v479_v8 = vpop.permute.xlu0 %478 }
 0x106   : > { %1040 = vmatpush.xpose.msk.msrb.mxu0 %vm480_vm1, %v479_v8 }
 0x109   : > { %1041 = vmatmul.msk.f32.vlgmr.msrb.gmra.mxu0 %vm480_vm1, %v1235_v7 }
 0x186   : > { %v502_v9 = vpop.f32.mrf.mxu0 }
 0x187   : > { %v505_v10 = vmul.f32 0.35355338, %v502_v9 }
 0x189   : > { %v506_v11 = vsel %vm480_vm1, %v505_v10, -inf }
 0x18a   : > { %507 = vmax.xlane.f32.xlu0 %v506_v11 }
 0x19e   : > { %607 = vrot.lane.b32.xlu0 %v1235_v7, %s1121_s29  ;;  %s435_s29 = scalar_lea.vmem %s1376_s13, %s1037_s18 }
 0x1a6   : > { %657 = vrot.lane.b32.xlu0 %v1235_v7, %s1122_s30 }
 0x1ae   : > { %747 = vrot.lane.b32.xlu0 %v1235_v7, %s1123_s14 }
 0x1fd   : > { %v508_v13 = vpop.xlane.xlu0 %507 }
 0x1fe   : > { %v509_v14 = vsub.f32 %v505_v10, %v508_v13  ;;  %v1081_v10 = vld [vmem:[%s1367_s4] ss:$0 sm:$0xff] }
 0x200   : > { %v510_v15 = vmul.f32 1.442695, %v509_v14 }
 0x202   : > { %1088 = vpow2.f32 %v510_v15 }
 0x208   : > { %v1089_v16 = vpop.eup %1088 }
 0x209   : > { %v512_v17 = vsel %vm480_vm1, %v1089_v16, 0.0 }
 0x20a   : > { %513 = vadd.xlane.f32.xlu1 %v512_v17 }
 0x210   : > { %v608_v18 = vpop.permute.xlu0 %607 }
 0x211   : > { %628 = vmatpush.msrb.mxu3 %v608_v18 }
 0x218   : > { %v658_v34 = vpop.permute.xlu0 %657 }
 0x220   : > { %v748_v51 = vpop.permute.xlu0 %747 }
 0x223   : > { %517 = vrot.lane.b32.xlu1 %v1235_v7, %s1124_s17 }
 0x27d   : > { %v514_v19 = vpop.xlane.xlu1 %513 }
 0x27e   : > { %1090 = vrcp.f32 %v514_v19  ;;  %v1129_v19 = vmov 32.0  }
 0x284   : > { %v1091_v20 = vpop.eup %1090 }
 0x285   : > { %v516_v23 = vmul.f32 %v1091_v20, %v1089_v16 }
 0x295   : > { %v518_v22 = vpop.permute.xlu1 %517 }
 0x296   : > { %538 = vmatpush.msra.mxu2 %v518_v22 }
 0x297   : > { %1042 = vmatmul.msk.f32.vlgmr.msra.gmra.mxu2 %vm480_vm1, %v516_v23 }
 0x298   : > { %1044 = vmatpush.xpose.msk.msrb.mxu2 %vm480_vm1, %v570_v21 }
 0x29f   : > { %1045 = vmatmul.msk.f32.vlgmr.msrb.gmra.mxu2 %vm480_vm1, %v568_v24 }
 0x31a   : > { %v540_v25 = vpop.f32.mrf.mxu2 }
 0x31b   : > { %1043 = vmatmul.msk.f32.vlgmr.msra.gmra.mxu3 %vm480_vm1, %v540_v25 }
 0x31c   : > { %741 = vmatpush.msra.mxu3 %v444_v1 }
 0x322   : > { %v592_v26 = vpop.f32.mrf.mxu2 }
 0x323   : > { %v595_v27 = vmul.f32 0.35355338, %v592_v26 }
 0x325   : > { %v596_v28 = vsel %vm480_vm1, %v595_v27, -inf }
 0x326   : > { %597 = vmax.xlane.f32.xlu2 %v596_v28 }
 0x33e   : > { %659 = vrot.lane.b32.xlu2 %v1235_v7, %s1125_s19 }
 0x399   : > { %v598_v29 = vpop.xlane.xlu2 %597 }
 0x39a   : > { %v599_v30 = vsub.f32 %v595_v27, %v598_v29 }
 0x39c   : > { %v600_v31 = vmul.f32 1.442695, %v599_v30  ;;  %v880_v30 = vld [vmem:[%s1370_s7 + $0x18] sm:$0xff] }
 0x39e   : > { %1092 = vpow2.f32 %v600_v31  ;;  %v563_v47 = vpop.f32.mrf.mxu3  ;;  %v879_v31 = vld [vmem:[%s1370_s7 + $0x10] sm:$0xff] }
 0x39f   : > { %v566_v11 = vadd.f32 %v1081_v10, %v563_v47 }
 0x3a1   : > { %v660_v32 = vpop.permute.xlu2 %659 }
 0x3a2   : > { %1048 = vmatpush.xpose.msk.msra.mxu0 %vm480_vm1, %v660_v32  ;;  %v878_v32 = vld [vmem:[%s1370_s7 + $0x8] sm:$0xff] }
 0x3a4   : > { %v1093_v33 = vpop.eup %1092 }
 0x3a5   : > { %1049 = vmatmul.msk.f32.vlgmr.msra.gmra.mxu0 %vm480_vm1, %v658_v34  ;;  %v602_v35 = vsel %vm480_vm1, %v1093_v33, 0.0  ;;  %v889_v34 = vld [vmem:[%s1372_s9 + $0x38] sm:$0xff] }
 0x3a6   : > { %603 = vadd.xlane.f32.xlu1 %v602_v35  ;;  %v888_v35 = vld [vmem:[%s1372_s9 + $0x30] sm:$0xff] }
 0x3bf   : > { %749 = vrot.lane.b32.xlu1 %v1235_v7, %s1126_s20 }
 0x419   : > { %v604_v37 = vpop.xlane.xlu1 %603 }
 0x41a   : > { %1094 = vrcp.f32 %v604_v37 }
 0x420   : > { %v1095_v38 = vpop.eup %1094 }
 0x421   : > { %v606_v39 = vmul.f32 %v1095_v38, %v1093_v33  ;;  %v877_v33 = vld [vmem:[%s1370_s7] sm:$0xff] }
 0x422   : > { %v682_v40 = vpop.f32.mrf.mxu0 }
 0x423   : > { %v685_v41 = vmul.f32 0.35355338, %v682_v40  ;;  %1046 = vmatmul.msk.f32.vlgmr.msrb.gmra.mxu3 %vm480_vm1, %v606_v39  ;;  %v886_v39 = vld [vmem:[%s1372_s9 + $0x20] sm:$0xff] }
 0x424   : > { %909 = vmatpush.msrb.mxu3 %v880_v30 }
 0x425   : > { %v686_v42 = vsel %vm480_vm1, %v685_v41, -inf }
 0x426   : > { %687 = vmax.xlane.f32.xlu2 %v686_v42  ;;  %910 = vmatpush.msrb.mxu3 %v879_v31 }
 0x428   : > { %911 = vmatpush.msrb.mxu3 %v878_v32 }
 0x42a   : > { %912 = vmatpush.msrb.mxu3 %v877_v33 }
 0x431   : > { %v750_v43 = vpop.permute.xlu1 %749 }
 0x432   : > { %1052 = vmatpush.xpose.msk.msrb.mxu1 %vm480_vm1, %v750_v43 }
 0x499   : > { %v688_v44 = vpop.xlane.xlu2 %687 }
 0x49a   : > { %v689_v45 = vsub.f32 %v685_v41, %v688_v44  ;;  %v885_v41 = vld [vmem:[%s1372_s9 + $0x18] sm:$0xff] }
 0x49c   : > { %v690_v46 = vmul.f32 1.442695, %v689_v45 }
 0x49e   : > { %1096 = vpow2.f32 %v690_v46 }
 0x4a4   : > { %v1097_v48 = vpop.eup %1096 }
 0x4a5   : > { %v692_v49 = vsel %vm480_vm1, %v1097_v48, 0.0 }
 0x4a6   : > { %v630_v50 = vpop.f32.mrf.mxu3  ;;  %693 = vadd.xlane.f32.xlu1 %v692_v49 }
 0x4a7   : > { %1047 = vmatmul.msk.f32.vlgmr.msra.gmra.mxu1 %vm480_vm1, %v630_v50 }
 0x4a8   : > { %933 = vmatpush.msra.mxu1 %v889_v34 }
 0x4aa   : > { %934 = vmatpush.msra.mxu1 %v888_v35 }
 0x4ac   : > { %935 = vmatpush.msra.mxu1 %v887_v36 }
 0x4ae   : > { %936 = vmatpush.msra.mxu1 %v886_v39 }
 0x4af   : > { %1053 = vmatmul.msk.f32.vlgmr.msrb.gmra.mxu1 %vm480_vm1, %v748_v51  ;;  %v1083_v51 = vld [vmem:[%s1369_s6] ss:$0 sm:$0xff] }
 0x4b0   : > { %937 = vmatpush.msra.mxu1 %v885_v41 }
 0x519   : > { %v694_v59 = vpop.xlane.xlu1 %693 }
 0x524   : > { %v653_v52 = vpop.f32.mrf.mxu1 }
 0x525   : > { %v656_v13 = vadd.f32 %v653_v52, %v566_v11 }
 0x52c   : > { %v772_v53 = vpop.f32.mrf.mxu1 }
 0x52d   : > { %v775_v54 = vmul.f32 0.35355338, %v772_v53 }
 0x52f   : > { %v776_v55 = vsel %vm480_vm1, %v775_v54, -inf }
 0x530   : > { %777 = vmax.xlane.f32.xlu0 %v776_v55  ;;  %v883_v55 = vld [vmem:[%s1372_s9 + $0x8] sm:$0xff] }
 0x544   : > { %697 = vrot.lane.b32.xlu0 %v1235_v7, %s1127_s23 }
 0x5a3   : > { %v778_v56 = vpop.xlane.xlu0 %777 }
 0x5a4   : > { %v779_v57 = vsub.f32 %v775_v54, %v778_v56  ;;  %v884_v54 = vld [vmem:[%s1372_s9 + $0x10] sm:$0xff]  ;;  %v882_v56 = vld [vmem:[%s1372_s9] sm:$0xff] }
 0x5a5   : > { %938 = vmatpush.msra.mxu1 %v884_v54 }
 0x5a6   : > { %v780_v58 = vmul.f32 1.442695, %v779_v57  ;;  %v1084_v57 = vld [vmem:[%s1371_s8] ss:$0 sm:$0xff] }
 0x5a7   : > { %939 = vmatpush.msra.mxu1 %v883_v55 }
 0x5a8   : > { %1098 = vpow2.f32 %v780_v58 }
 0x5a9   : > { %1100 = vrcp.f32 %v694_v59  ;;  %940 = vmatpush.msra.mxu1 %v882_v56 }
 0x5ae   : > { %v1099_v60 = vpop.eup %1098 }
 0x5af   : > { %v782_v61 = vsel %vm480_vm1, %v1099_v60, 0.0  ;;  %v1101_v62 = vpop.eup %1100 }
 0x5b0   : > { %783 = vadd.xlane.f32.xlu2 %v782_v61  ;;  %v696_v63 = vmul.f32 %v1101_v62, %v1097_v48  ;;  %v1082_v48 = vld [vmem:[%s1368_s5] ss:$0 sm:$0xff] }
 0x5b1   : > { %v1085_v61 = vld [vmem:[%s1373_s10] ss:$0 sm:$0xff] }
 0x5b6   : > { %v698_v0 = vpop.permute.xlu0 %697 }
 0x5b7   : > { %718 = vmatpush.msra.mxu2 %v698_v0 }
 0x5b8   : > { %1050 = vmatmul.msk.f32.vlgmr.msra.gmra.mxu2 %vm480_vm1, %v696_v63 }
 0x5c8   : > { %787 = vrot.lane.b32.xlu2 %v1235_v7, %s1128_s24  ;;  %v445_v7 = vld [vmem:[%s1366_s3 + $0x18] sm:$0xff] }
 0x5c9   : > { %831 = vmatpush.msrb.mxu2 %v445_v7 }
 0x623   : > { %v784_v2 = vpop.xlane.xlu2 %783 }
 0x624   : > { %1102 = vrcp.f32 %v784_v2 }
 0x625   : > { %1104 = vrcp.f32 %v1129_v19  ;;  %v1087_v19 = vld [vmem:[%s1375_s12] ss:$0 sm:$0xff] }
 0x62a   : > { %v1103_v3 = vpop.eup %1102 }
 0x62b   : > { %v786_v5 = vmul.f32 %v1103_v3, %v1099_v60  ;;  %v788_v6 = vpop.permute.xlu2 %787  ;;  %v1105_v20 = vpop.eup %1104 }
 0x62c   : > { %808 = vmatpush.msrb.mxu0 %v788_v6  ;;  %v844_v21 = vmul.f32 32.0, %v1105_v20  ;;  %vm848_vm2 = vweird.f32 %v1105_v20 }
 0x62d   : > { %1054 = vmatmul.msk.f32.vlgmr.msrb.gmra.mxu0 %vm480_vm1, %v786_v5 }
 0x62e   : > { %v845_v22 = vsub.f32 1.0, %v844_v21 }
 0x630   : > { %v846_v23 = vmul.f32 %v1105_v20, %v845_v22 }
 0x632   : > { %v847_v24 = vadd.f32 %v1105_v20, %v846_v23 }
 0x634   : > { %v1290_v25 = vsel %vm848_vm2, %v1105_v20, %v847_v24 }
 0x63b   : > { %v720_v8 = vpop.f32.mrf.mxu2 }
 0x63c   : > { %1051 = vmatmul.msk.f32.vlgmr.msra.gmra.mxu3 %vm480_vm1, %v720_v8 }
 0x6aa   : > { %v810_v9 = vpop.f32.mrf.mxu0 }
 0x6ab   : > { %1055 = vmatmul.msk.f32.vlgmr.msrb.gmra.mxu2 %vm480_vm1, %v810_v9 }
 0x6bf   : > { %v743_v12 = vpop.f32.mrf.mxu3 }
 0x6c0   : > { %v746_v14 = vadd.f32 %v743_v12, %v656_v13 }
 0x72e   : > { %v833_v15 = vpop.f32.mrf.mxu2 }
 0x72f   : > { %v836_v16 = vadd.f32 %v833_v15, %v746_v14 }
 0x731   : > { %v837_v17 = vadd.f32 %v836_v16, %v1228_v4 }
 0x733   : > { %v840_v18 = vsel %vm450_vm0, %v837_v17, 0.0 }
 0x734   : > { %841 = vadd.xlane.f32.xlu1 %v840_v18 }
 0x7a7   : > { %v842_v26 = vpop.xlane.xlu1 %841 }
 0x7a8   : > { %v850_v27 = vmul.f32 %v1290_v25, %v842_v26 }
 0x7aa   : > { %v851_v28 = vsub.f32 %v837_v17, %v850_v27  ;;  %v1086_v17 = vld [vmem:[%s1374_s11] ss:$0 sm:$0xff] }
 0x7ac   : > { %v852_v29 = vmul.f32 %v851_v28, %v851_v28 }
 0x7ae   : > { %v853_v4 = vsel %vm450_vm0, %v852_v29, 0.0 }
 0x7af   : > { %854 = vadd.xlane.f32.xlu0 %v853_v4 }
 0x822   : > { %v855_v37 = vpop.xlane.xlu0 %854 }
 0x823   : > { %v856_v38 = vmul.f32 %v855_v37, %v1290_v25 }
 0x825   : > { %v857_v40 = vadd.f32 1e-05, %v856_v38 }
 0x827   : > { %1106 = vrsqrt.f32 %v857_v40  ;;  %vm864_vm4 = vweird.f32 %v857_v40 }
 0x82d   : > { %v1107_v42 = vpop.eup %1106 }
 0x82e   : > { %v859_v43 = vmul.f32 %v1107_v42, %v857_v40  ;;  %vm865_vm3 = vweird.f32 %v1107_v42 }
 0x82f   : > { %vm866_vm5 = vmor %vm864_vm4, %vm865_vm3 }
 0x830   : > { %v860_v44 = vmul.f32 %v1107_v42, %v859_v43 }
 0x832   : > { %v861_v45 = vmul.f32 0.5, %v860_v44 }
 0x834   : > { %v862_v46 = vsub.f32 1.5, %v861_v45 }
 0x836   : > { %v863_v47 = vmul.f32 %v1107_v42, %v862_v46 }
 0x838   : > { %v867_v49 = vsel %vm866_vm5, %v1107_v42, %v863_v47 }
 0x839   : > { %v868_v50 = vmul.f32 %v867_v49, %v851_v28 }
 0x83b   : > { %v872_v52 = vmul.f32 %v1082_v48, %v868_v50 }
 0x83d   : > { %v876_v53 = vadd.f32 %v1083_v51, %v872_v52 }
 0x83f   : > { %1056 = vmatmul.msk.f32.vlgmr.msrb.gmra.mxu3 %vm450_vm0, %v876_v53 }
 0x8c2   : > { %v914_v58 = vpop.f32.mrf.mxu3 }
 0x8c3   : > { %v915_v59 = vadd.f32 %v1084_v57, %v914_v58 }
 0x8c5   : > { %v917_v60 = vmax.f32 %v915_v59, 0.0 }
 0x8c7   : > { %1057 = vmatmul.msk.f32.vlgmr.msra.gmra.mxu1 %vm921_vm6, %v917_v60 }
 0x944   : > { %v942_v62 = vpop.f32.mrf.mxu1 }
 0x945   : > { %v943_v63 = vadd.f32 %v1085_v61, %v942_v62 }
 0x947   : > { %v945_v0 = vadd.f32 %v943_v63, %v876_v53 }
 0x949   : > { %v948_v1 = vsel %vm450_vm0, %v945_v0, 0.0 }
 0x94a   : > { %949 = vadd.xlane.f32.xlu1 %v948_v1 }
 0x9bd   : > { %v950_v2 = vpop.xlane.xlu1 %949 }
 0x9be   : > { %v951_v3 = vmul.f32 %v950_v2, %v1290_v25 }
 0x9c0   : > { %v952_v5 = vsub.f32 %v945_v0, %v951_v3 }
 0x9c2   : > { %v953_v6 = vmul.f32 %v952_v5, %v952_v5 }
 0x9c4   : > { %v954_v8 = vsel %vm450_vm0, %v953_v6, 0.0 }
 0x9c5   : > { %955 = vadd.xlane.f32.xlu2 %v954_v8 }
 0xa38   : > { %v956_v7 = vpop.xlane.xlu2 %955 }
 0xa39   : > { %v957_v9 = vmul.f32 %v956_v7, %v1290_v25 }
 0xa3b   : > { %v958_v10 = vadd.f32 1e-05, %v957_v9 }
 0xa3d   : > { %1108 = vrsqrt.f32 %v958_v10  ;;  %vm965_vm8 = vweird.f32 %v958_v10 }
 0xa43   : > { %v1109_v11 = vpop.eup %1108 }
 0xa44   : > { %v960_v12 = vmul.f32 %v1109_v11, %v958_v10  ;;  %vm966_vm7 = vweird.f32 %v1109_v11 }
 0xa45   : > { %vm967_vm9 = vmor %vm965_vm8, %vm966_vm7 }
 0xa46   : > { %v961_v13 = vmul.f32 %v1109_v11, %v960_v12 }
 0xa48   : > { %v962_v14 = vmul.f32 0.5, %v961_v13 }
 0xa4a   : > { %v963_v15 = vsub.f32 1.5, %v962_v14 }
 0xa4c   : > { %v964_v16 = vmul.f32 %v1109_v11, %v963_v15 }
 0xa4e   : > { %v968_v18 = vsel %vm967_vm9, %v1109_v11, %v964_v16 }
 0xa4f   : > { %v969_v20 = vmul.f32 %v968_v18, %v952_v5 }
 0xa51   : > { %v973_v21 = vmul.f32 %v1086_v17, %v969_v20 }
 0xa53   : > { %v977_v22 = vadd.f32 %v1087_v19, %v973_v21 }
 0xa55   : > { %978 = vst.msk [vmem:[%s435_s29] sm:$0xff] %vm450_vm0, %v977_v22 }
 0xa56 PF: > { %s23_s25 = sadd.s32 1, %s1116_s25  }
 0xa57   : > { %p20_p4 = scmp.ge.s32.totalorder %s23_s25, 4  }
 0xa59   :  { %22 = sbr.rel (!%p20_p4) target bundleno = 1 (0x1), region = 102 }

// kernel: chord_melody_transformer_v3_forward.7
= control target key start
LH: loop header
LB: loop body
LE: loop exit
PB: predicated region body
PF: predicated region fallthrough
CT: control target
= control target key end

     0   :  { %s3173_s0 = inlined_call_operand.vmem [shape: f32[2,8,32], index: 0, kind: input, shape index: {}]   ;;  %s3174_s1 = inlined_call_operand.vmem [shape: f32[2,8,32], index: 1, kind: input, shape index: {}]   ;;  %s3175_s2 = inlined_call_operand.vmem [shape: f32[8,8], index: 2, kind: input, shape index: {}]   ;;  %s3176_s3 = inlined_call_operand.vmem [shape: f32[32,96], index: 3, kind: input, shape index: {}]   ;;  %s3177_s4 = inlined_call_operand.vmem [shape: f32[1,96], index: 4, kind: input, shape index: {}]   ;;  %s3178_s5 = inlined_call_operand.vmem [shape: f32[32,32], index: 5, kind: input, shape index: {}]   ;;  %s3179_s6 = inlined_call_operand.vmem [shape: f32[1,32], index: 6, kind: input, shape index: {}]   ;;  %s3180_s7 = inlined_call_operand.hbm [shape: f32[1,32], index: 7, kind: input, shape index: {}]   ;;  %s3181_s8 = inlined_call_operand.hbm [shape: f32[1,32], index: 8, kind: input, shape index: {}]   ;;  %s3182_s9 = inlined_call_operand.vmem [shape: f32[32,32], index: 9, kind: input, shape index: {}]   ;;  %s3183_s10 = inlined_call_operand.hbm [shape: f32[1,32], index: 10, kind: input, shape index: {}]   ;;  %s3184_s11 = inlined_call_operand.vmem [shape: f32[32,64], index: 11, kind: input, shape index: {}]   ;;  %s3185_s12 = inlined_call_operand.hbm [shape: f32[1,64], index: 12, kind: input, shape index: {}]   ;;  %s3186_s13 = inlined_call_operand.vmem [shape: f32[32,32], index: 13, kind: input, shape index: {}]   ;;  %s3187_s14 = inlined_call_operand.hbm [shape: f32[1,32], index: 14, kind: input, shape index: {}]   ;;  %s3188_s15 = inlined_call_operand.hbm [shape: f32[1,32], index: 15, kind: input, shape index: {}]   ;;  %s3189_s16 = inlined_call_operand.hbm [shape: f32[1,32], index: 16, kind: input, shape index: {}]   ;;  %s3190_s17 = inlined_call_operand.vmem [shape: f32[32,64], index: 17, kind: input, shape index: {}]   ;;  %s3191_s18 = inlined_call_operand.hbm [shape: f32[1,64], index: 18, kind: input, shape index: {}]   ;;  %s3192_s19 = inlined_call_operand.vmem [shape: f32[64,32], index: 19, kind: input, shape index: {}]   ;;  %s3193_s20 = inlined_call_operand.hbm [shape: f32[1,32], index: 20, kind: input, shape index: {}]   ;;  %s3194_s21 = inlined_call_operand.hbm [shape: f32[1,32], index: 21, kind: input, shape index: {}]   ;;  %s3195_s22 = inlined_call_operand.hbm [shape: f32[1,32], index: 22, kind: input, shape index: {}]   ;;  %s3196_s23 = inlined_call_operand.vmem [shape: f32[2,8,32], index: 23, kind: output, shape index: {}]  }
   0x1   :  { %3206 = sst [smem:[#allocation25_spill]] %s3173_s0 }
   0x2   :  { %3207 = sst [smem:[#allocation26_spill]] %s3174_s1 }
   0x3   :  { %3208 = sst [smem:[#allocation27_spill]] %s3175_s2 }
   0x4   :  { %3209 = sst [smem:[#allocation28_spill]] %s3176_s3 }
   0x5   :  { %3210 = sst [smem:[#allocation29_spill]] %s3177_s4 }
   0x6   :  { %3211 = sst [smem:[#allocation30_spill]] %s3178_s5 }
   0x7   :  { %3212 = sst [smem:[#allocation31_spill]] %s3179_s6 }
   0x8   :  { %3213 = sst [smem:[#allocation32_spill]] %s3180_s7 }
   0x9   :  { %3214 = sst [smem:[#allocation33_spill]] %s3181_s8 }
   0xa   :  { %3215 = sst [smem:[#allocation34_spill]] %s3185_s12 }
   0xb   :  { %3216 = sst [smem:[#allocation35_spill]] %s3188_s15 }
   0xc   :  { %28 = vsyncpa [#allocation3], 0 }
   0xd   :  { %29 = vsyncpa [#allocation5], 0 }
   0xe   :  { %30 = vsyncpa [#allocation8], 0 }
   0xf   :  { %31 = vsyncpa [#allocation11], 0 }
  0x10   :  { %32 = vsyncpa [#allocation14], 0 }
  0x11   :  { %33 = vsyncpa [#allocation17], 0  ;;  %s2823_s4 = smov 0  }
  0x12 LB: > { %s3217_s8 = sld [smem:[#allocation33_spill]]  ;;  %s2832_s5 = sadd.s32 4294967295, %s2678_s4   ;;  %s2678_s4 = sphi %s2823_s4, %s39_s4  }
  0x13   : > { %p2067_p0 = scmp.ge.s32.totalorder %s2678_s4, 1  ;;  %p563_p1 = scmp.lt.s32.totalorder %s2678_s4, 3 }
  0x14   : > { %p2212_p2 = scmp.eq.s32.totalorder %s2832_s5, 0  ;;  %s2680_s26 = smov [#allocation4]  }
  0x15   : > { %p2837_p3 = pnand %p2067_p0, %p563_p1  ;;  %s604_s2 = sshll.u32 %s2680_s26, 4  ;;  %s605_s2 = int_to_ptr.vmem [resolvable:$true] %s604_s2 }
  0x16   : > { %s3219_s12 = sld [smem:[#allocation34_spill]]  ;;  %s2681_s30 = smov [#allocation7]  }
  0x17   : > { %p2178_p4 = pneg %p2837_p3  ;;  %s3220_s15 = sld [smem:[#allocation35_spill]] }
  0x18   : > { %s602_s25 = sshll.u32 %s3217_s8, 4  ;;  %s634_s24 = sshll.u32 %s2681_s30, 4  ;;  %s603_s25 = int_to_ptr.hbm [resolvable:$true] %s602_s25  ;;  %s635_s24 = int_to_ptr.vmem [resolvable:$true] %s634_s24 }
  0x19   : > { %p2851_p5 = pnand %p2212_p2, %p2178_p4  ;;  %s2682_s26 = smov [#allocation10]  }
  0x1a   : > { %s661_s6 = sshll.u32 %s2682_s26, 4  ;;  %s686_s29 = sshll.u32 %s3191_s18, 4  ;;  %s662_s6 = int_to_ptr.vmem [resolvable:$true] %s661_s6  ;;  %s687_s29 = int_to_ptr.hbm [resolvable:$true] %s686_s29 }
  0x1b   : > { %2184 = dma.hbm_to_vmem [thread:$0]  (!%p2851_p5), %s603_s25, 16, %s605_s2, [#allocation5]  }
  0x1c   : > { %s632_s7 = sshll.u32 %s3219_s12, 4  ;;  %s713_s12 = sshll.u32 %s3194_s21, 4  ;;  %s633_s7 = int_to_ptr.hbm [resolvable:$true] %s632_s7  ;;  %s714_s12 = int_to_ptr.hbm [resolvable:$true] %s713_s12 }
  0x1d   : > { %s659_s3 = sshll.u32 %s3220_s15, 4  ;;  %s2683_s15 = smov [#allocation13]   ;;  %s660_s3 = int_to_ptr.hbm [resolvable:$true] %s659_s3 }
  0x1e   : > { %2190 = dma.hbm_to_vmem [thread:$0]  (!%p2851_p5), %s633_s7, 16, %s635_s24, [#allocation8]  }
  0x1f   : > { %2196 = dma.hbm_to_vmem [thread:$0]  (!%p2851_p5), %s660_s3, 16, %s662_s6, [#allocation11]  }
  0x20   : > { %s688_s25 = sshll.u32 %s2683_s15, 4  ;;  %s2684_s2 = smov [#allocation16]   ;;  %s689_s25 = int_to_ptr.vmem [resolvable:$true] %s688_s25 }
  0x21   : > { %2202 = dma.hbm_to_vmem [thread:$0]  (!%p2851_p5), %s687_s29, 16, %s689_s25, [#allocation14]  }
  0x22   : > { %s715_s7 = sshll.u32 %s2684_s2, 4  ;;  %s3222_s27 = sld [smem:[#allocation32_spill]]  ;;  %s716_s7 = int_to_ptr.vmem [resolvable:$true] %s715_s7 }
  0x23   : > { %2208 = dma.hbm_to_vmem [thread:$0]  (!%p2851_p5), %s714_s12, 16, %s716_s7, [#allocation17]  }
  0x24   : > { %s617_s6 = sshll.u32 %s3183_s10, 4  ;;  %s2685_s15 = smov [#allocation2]   ;;  %s618_s6 = int_to_ptr.hbm [resolvable:$true] %s617_s6 }
  0x25   : > { %s592_s30 = sshll.u32 %s2685_s15, 4  ;;  %s2686_s29 = smov [#allocation6]   ;;  %s593_s30 = int_to_ptr.vmem [resolvable:$true] %s592_s30 }
  0x26   : > { %s619_s25 = sshll.u32 %s2686_s29, 4  ;;  %s647_s26 = sshll.u32 %s3187_s14, 4  ;;  %s620_s25 = int_to_ptr.vmem [resolvable:$true] %s619_s25  ;;  %s648_s26 = int_to_ptr.hbm [resolvable:$true] %s647_s26 }
  0x27   : > { %2187 = dma.hbm_to_vmem [thread:$0]  (!%p2851_p5), %s618_s6, 16, %s620_s25, [#allocation5]  }
  0x28   : > { %s590_s28 = sshll.u32 %s3222_s27, 4  ;;  %s671_s27 = sshll.u32 %s3189_s16, 4  ;;  %s591_s28 = int_to_ptr.hbm [resolvable:$true] %s590_s28  ;;  %s672_s27 = int_to_ptr.hbm [resolvable:$true] %s671_s27 }
  0x29   : > { %2181 = dma.hbm_to_vmem [thread:$0]  (!%p2851_p5), %s591_s28, 16, %s593_s30, [#allocation3]  }
  0x2a   : > { %s2687_s8 = smov [#allocation9]   ;;  %s2688_s28 = smov [#allocation12]  }
  0x2b   : > { %s649_s3 = sshll.u32 %s2687_s8, 4  ;;  %s673_s15 = sshll.u32 %s2688_s28, 4  ;;  %s650_s3 = int_to_ptr.vmem [resolvable:$true] %s649_s3  ;;  %s674_s15 = int_to_ptr.vmem [resolvable:$true] %s673_s15 }
  0x2c   : > { %2193 = dma.hbm_to_vmem [thread:$0]  (!%p2851_p5), %s648_s26, 16, %s650_s3, [#allocation8]  }
  0x2d   : > { %s701_s2 = sshll.u32 %s3193_s20, 4  ;;  %s725_s24 = sshll.u32 %s3195_s22, 4  ;;  %s702_s2 = int_to_ptr.hbm [resolvable:$true] %s701_s2  ;;  %s726_s24 = int_to_ptr.hbm [resolvable:$true] %s725_s24 }
  0x2e   : > { %2199 = dma.hbm_to_vmem [thread:$0]  (!%p2851_p5), %s672_s27, 16, %s674_s15, [#allocation11]  }
  0x2f   : > { %s2689_s12 = smov [#allocation15]   ;;  %s2690_s26 = smov [#allocation18]  }
  0x30   : > { %s703_s7 = sshll.u32 %s2689_s12, 4  ;;  %s727_s8 = sshll.u32 %s2690_s26, 4  ;;  %s704_s7 = int_to_ptr.vmem [resolvable:$true] %s703_s7  ;;  %s728_s8 = int_to_ptr.vmem [resolvable:$true] %s727_s8 }
  0x31   : > { %2205 = dma.hbm_to_vmem [thread:$0]  (!%p2851_p5), %s702_s2, 16, %s704_s7, [#allocation14]  }
  0x32   : > { %2211 = dma.hbm_to_vmem [thread:$0]  (!%p2851_p5), %s726_s24, 16, %s728_s8, [#allocation17]  }
  0x33   : > { %754 = sbr.rel (%p2837_p3) target bundleno = 4528 (0x11b0), region = 112 }
  0x38   : > { %2653 = dma.done.wait (%p2212_p2), [#allocation3], 16  }
  0x39   : > { %2655 = vsyncadd (%p2212_p2), [#allocation3], 4294967280 }
  0x3a   : > { %2657 = dma.done.wait (%p2212_p2), [#allocation5], 32  }
  0x3b   : > { %2659 = vsyncadd (%p2212_p2), [#allocation5], 4294967264 }
  0x3c   : > { %2661 = dma.done.wait (%p2212_p2), [#allocation8], 32  }
  0x3d   : > { %2663 = vsyncadd (%p2212_p2), [#allocation8], 4294967264 }
  0x3e   : > { %2665 = dma.done.wait (%p2212_p2), [#allocation11], 32  }
  0x3f   : > { %2667 = vsyncadd (%p2212_p2), [#allocation11], 4294967264 }
  0x40   : > { %2669 = dma.done.wait (%p2212_p2), [#allocation14], 32  }
  0x41   : > { %2671 = vsyncadd (%p2212_p2), [#allocation14], 4294967264 }
  0x42   : > { %2673 = dma.done.wait (%p2212_p2), [#allocation17], 32  }
  0x43   : > { %2675 = vsyncadd (%p2212_p2), [#allocation17], 4294967264  ;;  %p871_p6 = scmp.lt.s32.totalorder %s2832_s5, 1  ;;  %s3223_s3 = sld [smem:[#allocation28_spill]]  ;;  %vm899_vm0 = vcmask 261120   ;;  %vm929_vm1 = vcmask 64512  }
  0x44   : > { %s3224_s2 = sld [smem:[#allocation25_spill]]  ;;  %s3201_s15 = smov 88   ;;  %vm1835_vm9 = vcmask 523264  }
  0x45   : > { %s3236_s5 = smov (!%p871_p6, %s2832_s5), 1  ;;  %s3225_s8 = sld [smem:[#allocation30_spill]] }
  0x46   : > { %s2929_s1 = sshll.u32 %s3236_s5, 3  ;;  %s3226_s28 = sld [smem:[#allocation29_spill]] }
  0x47   : > { %s2692_s30 = smov 96   ;;  %s2693_s29 = smov 120  }
  0x48   : > { %s3227_s25 = sld [smem:[#allocation27_spill]]  ;;  %s2694_s24 = smov 56  }
  0x49   : > { %v889_v0 = vld [vmem:[%s3223_s3 + $0x18] sm:$0xff]  ;;  %v888_v1 = vld [vmem:[%s3223_s3 + $0x10] sm:$0xff]  ;;  %v887_v2 = vld [vmem:[%s3223_s3 + $0x8] sm:$0xff]  ;;  %s3204_s5 = smov 112   ;;  %s3202_s12 = smov 104  }
  0x4a   : > { %s874_s6 = scalar_lea.vmem %s3224_s2, %s2929_s1  ;;  %915 = vmatpush.msra.mxu0 %v889_v0  ;;  %v886_v3 = vld [vmem:[%s3223_s3] sm:$0xff]  ;;  %s2697_s7 = smov 64  }
  0x4b   : > { %v2947_v4 = vld [vmem:[%s874_s6] sm:$0xff]  ;;  %s3199_s26 = smov 80   ;;  %s3200_s0 = smov 72   ;;  %v892_v40 = vld [vmem:[%s3225_s8 + $0x8] sm:$0xff] }
  0x4c   : > { %916 = vmatpush.msra.mxu0 %v888_v1  ;;  %v891_v5 = vld [vmem:[%s3225_s8] sm:$0xff]  ;;  %s3231_s2 = smov 104  }
  0x4d   : > { %1011 = vmatpush.msra.mxu3 %v891_v5  ;;  %v2265_v6 = vld [vmem:[%s3226_s28] ss:$0 sm:$0xff] }
  0x4e   : > { %917 = vmatpush.msra.mxu0 %v887_v2  ;;  %v2972_v12 = vld [vmem:[%s3227_s25] sm:$0xff]  ;;  %s3228_s25 = sld [smem:[#allocation31_spill]] }
  0x50   : > { %918 = vmatpush.msra.mxu0 %v886_v3 }
  0x51   : > { %2095 = vmatmul.msk.f32.vlgmr.msra.gmra.mxu0 %vm899_vm0, %v2947_v4 }
  0x54   : > { %v2266_v56 = vld [vmem:[%s3228_s25] ss:$0 sm:$0xff]  ;;  %s3232_s25 = smov 88  }
  0xce   : > { %v920_v7 = vpop.f32.mrf.mxu0 }
  0xcf   : > { %v2957_v8 = vadd.f32 %v2265_v6, %v920_v7 }
  0xd1   : > { %1019 = vrot.lane.b32.xlu2 %v2957_v8, %s3201_s15  ;;  %927 = vrot.lane.b32.xlu0 %v2957_v8, %s2692_s30 }
  0xd9   : > { %1017 = vrot.lane.b32.xlu2 %v2957_v8, %s2693_s29 }
 0x12b   : > { %v1020_v9 = vpop.permute.xlu2 %1019 }
 0x12c   : > { %2100 = vmatpush.xpose.msk.msrb.mxu3 %vm929_vm1, %v1020_v9 }
 0x133   : > { %v1018_v27 = vpop.permute.xlu2 %1017 }
 0x143   : > { %v928_v10 = vpop.permute.xlu0 %927 }
 0x144   : > { %2096 = vmatpush.xpose.msk.msra.mxu1 %vm929_vm1, %v928_v10 }
 0x147   : > { %2097 = vmatmul.msk.f32.vlgmr.msra.gmra.mxu1 %vm929_vm1, %v2957_v8 }
 0x148   : > { %1102 = vmatpush.msrb.mxu1 %v892_v40  ;;  %v1333_v40 = vld [vmem:[%s3182_s9 + $0x18] sm:$0xff] }
 0x1c4   : > { %v951_v11 = vpop.f32.mrf.mxu1 }
 0x1c5   : > { %v954_v13 = vmul.f32 0.35355338, %v951_v11  ;;  %v893_v11 = vld [vmem:[%s3225_s8 + $0x10] sm:$0xff] }
 0x1c7   : > { %v955_v14 = vadd.f32 %v954_v13, %v2972_v12 }
 0x1c9   : > { %v956_v15 = vsel %vm929_vm1, %v955_v14, -inf }
 0x1ca   : > { %957 = vmax.xlane.f32.xlu0 %v956_v15 }
 0x1de   : > { %1058 = vrot.lane.b32.xlu0 %v2957_v8, %s2694_s24  ;;  %s2700_s24 = smov 48  }
 0x1e6   : > { %1108 = vrot.lane.b32.xlu0 %v2957_v8, %s3204_s5 }
 0x1ee   : > { %1199 = vrot.lane.b32.xlu0 %v2957_v8, %s3202_s12 }
 0x23d   : > { %v958_v16 = vpop.xlane.xlu0 %957 }
 0x23e   : > { %v959_v17 = vsub.f32 %v955_v14, %v958_v16 }
 0x240   : > { %v960_v18 = vmul.f32 1.442695, %v959_v17 }
 0x242   : > { %2278 = vpow2.f32 %v960_v18 }
 0x248   : > { %v2279_v19 = vpop.eup %2278 }
 0x249   : > { %v962_v20 = vsel %vm929_vm1, %v2279_v19, 0.0 }
 0x24a   : > { %963 = vadd.xlane.f32.xlu1 %v962_v20 }
 0x250   : > { %v1059_v26 = vpop.permute.xlu0 %1058 }
 0x258   : > { %v1109_v38 = vpop.permute.xlu0 %1108 }
 0x260   : > { %v1200_v55 = vpop.permute.xlu0 %1199 }
 0x263   : > { %967 = vrot.lane.b32.xlu1 %v2957_v8, %s2697_s7  ;;  %s2701_s7 = smov 40  }
 0x2bd   : > { %v964_v21 = vpop.xlane.xlu1 %963 }
 0x2be   : > { %2280 = vrcp.f32 %v964_v21 }
 0x2c4   : > { %v2281_v22 = vpop.eup %2280 }
 0x2c5   : > { %v966_v24 = vmul.f32 %v2281_v22, %v2279_v19 }
 0x2d5   : > { %v968_v23 = vpop.permute.xlu1 %967 }
 0x2d6   : > { %988 = vmatpush.msra.mxu2 %v968_v23 }
 0x2d7   : > { %2098 = vmatmul.msk.f32.vlgmr.msra.gmra.mxu2 %vm929_vm1, %v966_v24  ;;  %v2702_v24 = vmov 32.0  }
 0x35a   : > { %v990_v25 = vpop.f32.mrf.mxu2 }
 0x35b   : > { %2099 = vmatmul.msk.f32.vlgmr.msra.gmra.mxu3 %vm929_vm1, %v990_v25 }
 0x35c   : > { %1079 = vmatpush.msra.mxu3 %v1059_v26 }
 0x363   : > { %2101 = vmatmul.msk.f32.vlgmr.msrb.gmra.mxu3 %vm929_vm1, %v1018_v27 }
 0x364   : > { %1193 = vmatpush.msrb.mxu3 %v893_v11  ;;  %v1340_v11 = vld [vmem:[%s3186_s13] sm:$0xff] }
 0x3de   : > { %v1013_v28 = vpop.f32.mrf.mxu3 }
 0x3df   : > { %v1016_v57 = vadd.f32 %v2266_v56, %v1013_v28  ;;  %v2268_v56 = vld [vmem:[#allocation4] ss:$0 sm:$0xff] }
 0x3e6   : > { %v1042_v29 = vpop.f32.mrf.mxu3 }
 0x3e7   : > { %v1045_v30 = vmul.f32 0.35355338, %v1042_v29 }
 0x3e9   : > { %v1046_v31 = vadd.f32 %v1045_v30, %v2972_v12 }
 0x3eb   : > { %v1047_v32 = vsel %vm929_vm1, %v1046_v31, -inf }
 0x3ec   : > { %1048 = vmax.xlane.f32.xlu2 %v1047_v32 }
 0x404   : > { %1110 = vrot.lane.b32.xlu2 %v2957_v8, %s3199_s26 }
 0x45f   : > { %v1049_v33 = vpop.xlane.xlu2 %1048 }
 0x460   : > { %v1050_v34 = vsub.f32 %v1046_v31, %v1049_v33 }
 0x462   : > { %v1051_v35 = vmul.f32 1.442695, %v1050_v34 }
 0x464   : > { %2282 = vpow2.f32 %v1051_v35  ;;  %v1338_v35 = vld [vmem:[%s3184_s11 + $0x18] sm:$0xff] }
 0x467   : > { %v1111_v36 = vpop.permute.xlu2 %1110 }
 0x468   : > { %2104 = vmatpush.xpose.msk.msrb.mxu0 %vm929_vm1, %v1111_v36  ;;  %v1337_v36 = vld [vmem:[%s3184_s11 + $0x10] sm:$0xff] }
 0x46a   : > { %v2283_v37 = vpop.eup %2282 }
 0x46b   : > { %2105 = vmatmul.msk.f32.vlgmr.msrb.gmra.mxu0 %vm929_vm1, %v1109_v38  ;;  %v1053_v39 = vsel %vm929_vm1, %v2283_v37, 0.0  ;;  %v1335_v38 = vld [vmem:[%s3184_s11] sm:$0xff] }
 0x46c   : > { %1054 = vadd.xlane.f32.xlu1 %v1053_v39 }
 0x485   : > { %1201 = vrot.lane.b32.xlu1 %v2957_v8, %s3200_s0  ;;  %s3229_s0 = sld [smem:[#allocation26_spill]] }
 0x48b   : > { %s878_s15 = scalar_lea.vmem %s3229_s0, %s2929_s1  ;;  %s882_s0 = scalar_lea.vmem %s3196_s23, %s2929_s1 }
 0x48c   : > { %v884_v39 = vld [vmem:[%s878_s15] sm:$0xff]  ;;  %s3230_s15 = smov 112  }
 0x4df   : > { %v1055_v41 = vpop.xlane.xlu1 %1054 }
 0x4e0   : > { %2284 = vrcp.f32 %v1055_v41  ;;  %v1332_v41 = vld [vmem:[%s3182_s9 + $0x10] sm:$0xff] }
 0x4e6   : > { %v2285_v42 = vpop.eup %2284 }
 0x4e7   : > { %v1057_v43 = vmul.f32 %v2285_v42, %v2283_v37  ;;  %v1336_v37 = vld [vmem:[%s3184_s11 + $0x8] sm:$0xff] }
 0x4e8   : > { %v1133_v44 = vpop.f32.mrf.mxu0  ;;  %v1331_v42 = vld [vmem:[%s3182_s9 + $0x8] sm:$0xff] }
 0x4e9   : > { %v1136_v45 = vmul.f32 0.35355338, %v1133_v44  ;;  %2102 = vmatmul.msk.f32.vlgmr.msra.gmra.mxu3 %vm929_vm1, %v1057_v43  ;;  %v1330_v43 = vld [vmem:[%s3182_s9] sm:$0xff] }
 0x4ea   : > { %1363 = vmatpush.msra.mxu3 %v1333_v40  ;;  %v2271_v40 = vld [vmem:[#allocation9] ss:$0 sm:$0xff] }
 0x4eb   : > { %v1137_v46 = vadd.f32 %v1136_v45, %v2972_v12 }
 0x4ec   : > { %1364 = vmatpush.msra.mxu3 %v1332_v41 }
 0x4ed   : > { %v1138_v47 = vsel %vm929_vm1, %v1137_v46, -inf }
 0x4ee   : > { %1139 = vmax.xlane.f32.xlu2 %v1138_v47  ;;  %1365 = vmatpush.msra.mxu3 %v1331_v42 }
 0x4f0   : > { %1366 = vmatpush.msra.mxu3 %v1330_v43 }
 0x4f7   : > { %v1202_v48 = vpop.permute.xlu1 %1201 }
 0x4f8   : > { %2108 = vmatpush.xpose.msk.msra.mxu1 %vm929_vm1, %v1202_v48 }
 0x561   : > { %v1140_v49 = vpop.xlane.xlu2 %1139 }
 0x562   : > { %v1141_v50 = vsub.f32 %v1137_v46, %v1140_v49 }
 0x564   : > { %v1142_v51 = vmul.f32 1.442695, %v1141_v50 }
 0x566   : > { %2286 = vpow2.f32 %v1142_v51 }
 0x56c   : > { %v2287_v52 = vpop.eup %2286  ;;  %v1081_v53 = vpop.f32.mrf.mxu3 }
 0x56d   : > { %2103 = vmatmul.msk.f32.vlgmr.msrb.gmra.mxu1 %vm929_vm1, %v1081_v53  ;;  %v1144_v54 = vsel %vm929_vm1, %v2287_v52, 0.0  ;;  %v2267_v53 = vld [vmem:[#allocation2] ss:$0 sm:$0xff] }
 0x56e   : > { %1145 = vadd.xlane.f32.xlu1 %v1144_v54  ;;  %1389 = vmatpush.msrb.mxu1 %v1338_v35 }
 0x570   : > { %1390 = vmatpush.msrb.mxu1 %v1337_v36 }
 0x572   : > { %1391 = vmatpush.msrb.mxu1 %v1336_v37 }
 0x574   : > { %1392 = vmatpush.msrb.mxu1 %v1335_v38 }
 0x575   : > { %2109 = vmatmul.msk.f32.vlgmr.msra.gmra.mxu1 %vm929_vm1, %v1200_v55 }
 0x57d   : > { %2113 = vmatmul.msk.f32.vlgmr.msrb.gmra.mxu1 %vm899_vm0, %v884_v39 }
 0x5e1   : > { %v1146_v3 = vpop.xlane.xlu1 %1145 }
 0x5ea   : > { %v1104_v58 = vpop.f32.mrf.mxu1 }
 0x5eb   : > { %v1107_v59 = vadd.f32 %v1104_v58, %v1016_v57 }
 0x5f2   : > { %v1224_v60 = vpop.f32.mrf.mxu1 }
 0x5f3   : > { %v1227_v61 = vmul.f32 0.35355338, %v1224_v60 }
 0x5f5   : > { %v1228_v62 = vadd.f32 %v1227_v61, %v2972_v12 }
 0x5f7   : > { %v1229_v63 = vsel %vm929_vm1, %v1228_v62, -inf }
 0x5f8   : > { %1230 = vmax.xlane.f32.xlu0 %v1229_v63 }
 0x5fa   : > { %v1394_v60 = vpop.f32.mrf.mxu1 }
 0x60c   : > { %1149 = vrot.lane.b32.xlu0 %v2957_v8, %s2700_s24  ;;  %s3233_s24 = smov 72  }
 0x66b   : > { %v1231_v0 = vpop.xlane.xlu0 %1230 }
 0x66c   : > { %v1232_v1 = vsub.f32 %v1228_v62, %v1231_v0  ;;  %v2270_v62 = vld [vmem:[#allocation6] ss:$0 sm:$0xff] }
 0x66e   : > { %v1233_v2 = vmul.f32 1.442695, %v1232_v1 }
 0x670   : > { %2288 = vpow2.f32 %v1233_v2 }
 0x671   : > { %2290 = vrcp.f32 %v1146_v3 }
 0x676   : > { %v2289_v5 = vpop.eup %2288 }
 0x677   : > { %v1235_v6 = vsel %vm929_vm1, %v2289_v5, 0.0  ;;  %v2291_v7 = vpop.eup %2290 }
 0x678   : > { %1236 = vadd.xlane.f32.xlu2 %v1235_v6  ;;  %v1148_v10 = vmul.f32 %v2291_v7, %v2287_v52 }
 0x67e   : > { %v1150_v9 = vpop.permute.xlu0 %1149 }
 0x67f   : > { %1170 = vmatpush.msrb.mxu2 %v1150_v9 }
 0x680   : > { %2106 = vmatmul.msk.f32.vlgmr.msrb.gmra.mxu2 %vm929_vm1, %v1148_v10 }
 0x690   : > { %1240 = vrot.lane.b32.xlu2 %v2957_v8, %s2701_s7  ;;  %v894_v8 = vld [vmem:[%s3225_s8 + $0x18] sm:$0xff]  ;;  %s3234_s7 = smov 80  }
 0x691   : > { %1284 = vmatpush.msra.mxu2 %v894_v8 }
 0x6eb   : > { %v1237_v12 = vpop.xlane.xlu2 %1236 }
 0x6ec   : > { %2292 = vrcp.f32 %v1237_v12 }
 0x6ed   : > { %2294 = vrcp.f32 %v2702_v24 }
 0x6f2   : > { %v2293_v13 = vpop.eup %2292 }
 0x6f3   : > { %v1239_v14 = vmul.f32 %v2293_v13, %v2289_v5  ;;  %v1241_v15 = vpop.permute.xlu2 %1240  ;;  %v2295_v25 = vpop.eup %2294 }
 0x6f4   : > { %1261 = vmatpush.msra.mxu0 %v1241_v15  ;;  %v1297_v26 = vmul.f32 32.0, %v2295_v25  ;;  %vm1301_vm2 = vweird.f32 %v2295_v25 }
 0x6f5   : > { %2110 = vmatmul.msk.f32.vlgmr.msra.gmra.mxu0 %vm929_vm1, %v1239_v14 }
 0x6f6   : > { %v1298_v27 = vsub.f32 1.0, %v1297_v26 }
 0x6f8   : > { %v1299_v28 = vmul.f32 %v2295_v25, %v1298_v27 }
 0x6fa   : > { %v1300_v29 = vadd.f32 %v2295_v25, %v1299_v28 }
 0x6fc   : > { %v3025_v30 = vsel %vm1301_vm2, %v2295_v25, %v1300_v29 }
 0x703   : > { %v1172_v16 = vpop.f32.mrf.mxu2 }
 0x704   : > { %2107 = vmatmul.msk.f32.vlgmr.msrb.gmra.mxu3 %vm929_vm1, %v1172_v16 }
 0x705   : > { %1482 = vmatpush.msrb.mxu3 %v1340_v11 }
 0x772   : > { %v1263_v17 = vpop.f32.mrf.mxu0 }
 0x773   : > { %2111 = vmatmul.msk.f32.vlgmr.msra.gmra.mxu2 %vm929_vm1, %v1263_v17 }
 0x787   : > { %v1195_v18 = vpop.f32.mrf.mxu3 }
 0x788   : > { %v1198_v19 = vadd.f32 %v1195_v18, %v1107_v59  ;;  %v2269_v59 = vld [vmem:[#allocation7] ss:$0 sm:$0xff] }
 0x789   : > { %v3063_v61 = vadd.f32 %v2269_v59, %v1394_v60 }
 0x78b   : > { %2114 = vmatpush.xpose.msk.msrb.mxu0 %vm929_vm1, %v3063_v61 }
 0x7f6   : > { %v1286_v20 = vpop.f32.mrf.mxu2 }
 0x7f7   : > { %v1289_v21 = vadd.f32 %v1286_v20, %v1198_v19 }
 0x7f9   : > { %v1290_v22 = vadd.f32 %v1289_v21, %v2947_v4 }
 0x7fb   : > { %v1293_v23 = vsel %vm899_vm0, %v1290_v22, 0.0 }
 0x7fc   : > { %1294 = vadd.xlane.f32.xlu1 %v1293_v23  ;;  %v1341_v23 = vld [vmem:[%s3186_s13 + $0x8] sm:$0xff] }
 0x815   : > { %1490 = vrot.lane.b32.xlu1 %v3063_v61, %s2693_s29 }
 0x86f   : > { %v1295_v31 = vpop.xlane.xlu1 %1294 }
 0x870   : > { %v1303_v32 = vmul.f32 %v3025_v30, %v1295_v31 }
 0x872   : > { %v1304_v33 = vsub.f32 %v1290_v22, %v1303_v32 }
 0x874   : > { %v1305_v34 = vmul.f32 %v1304_v33, %v1304_v33 }
 0x876   : > { %v1306_v4 = vsel %vm899_vm0, %v1305_v34, 0.0 }
 0x877   : > { %1307 = vadd.xlane.f32.xlu0 %v1306_v4 }
 0x887   : > { %v1491_v1 = vpop.permute.xlu1 %1490 }
 0x888   : > { %2118 = vmatpush.xpose.msk.msra.mxu1 %vm929_vm1, %v1491_v1 }
 0x8ea   : > { %v1308_v44 = vpop.xlane.xlu0 %1307 }
 0x8eb   : > { %v1309_v45 = vmul.f32 %v1308_v44, %v3025_v30 }
 0x8ed   : > { %v1310_v46 = vadd.f32 1e-05, %v1309_v45 }
 0x8ef   : > { %2296 = vrsqrt.f32 %v1310_v46  ;;  %vm1317_vm4 = vweird.f32 %v1310_v46 }
 0x8f5   : > { %v2297_v47 = vpop.eup %2296 }
 0x8f6   : > { %v1312_v48 = vmul.f32 %v2297_v47, %v1310_v46  ;;  %vm1318_vm3 = vweird.f32 %v2297_v47 }
 0x8f7   : > { %vm1319_vm5 = vmor %vm1317_vm4, %vm1318_vm3 }
 0x8f8   : > { %v1313_v49 = vmul.f32 %v2297_v47, %v1312_v48 }
 0x8fa   : > { %v1314_v50 = vmul.f32 0.5, %v1313_v49 }
 0x8fc   : > { %v1315_v51 = vsub.f32 1.5, %v1314_v50 }
 0x8fe   : > { %v1316_v52 = vmul.f32 %v2297_v47, %v1315_v51 }
 0x900   : > { %v1320_v54 = vsel %vm1319_vm5, %v2297_v47, %v1316_v52 }
 0x901   : > { %v1321_v55 = vmul.f32 %v1320_v54, %v1304_v33 }
 0x903   : > { %v1325_v57 = vmul.f32 %v2267_v53, %v1321_v55 }
 0x905   : > { %v3059_v58 = vadd.f32 %v2268_v56, %v1325_v57 }
 0x907   : > { %2112 = vmatmul.msk.f32.vlgmr.msra.gmra.mxu3 %vm899_vm0, %v3059_v58 }
 0x98a   : > { %v1368_v63 = vpop.f32.mrf.mxu3 }
 0x98b   : > { %v1369_v0 = vadd.f32 %v2270_v62, %v1368_v63 }
 0x98d   : > { %1488 = vrot.lane.b32.xlu2 %v1369_v0, %s2693_s29  ;;  %2115 = vmatmul.msk.f32.vlgmr.msrb.gmra.mxu0 %vm929_vm1, %v1369_v0 }
 0x9e7   : > { %v1489_v2 = vpop.permute.xlu2 %1488 }
 0x9e8   : > { %2119 = vmatmul.msk.f32.vlgmr.msra.gmra.mxu1 %vm929_vm1, %v1489_v2 }
 0xa0a   : > { %v1423_v3 = vpop.f32.mrf.mxu0 }
 0xa0b   : > { %v1426_v5 = vmul.f32 0.35355338, %v1423_v3  ;;  %v1343_v3 = vld [vmem:[%s3186_s13 + $0x18] sm:$0xff] }
 0xa0d   : > { %v1427_v6 = vsel %vm929_vm1, %v1426_v5, -inf }
 0xa0e   : > { %1428 = vmax.xlane.f32.xlu2 %v1427_v6 }
 0xa26   : > { %1438 = vrot.lane.b32.xlu2 %v3063_v61, %s2692_s30 }
 0xa2e   : > { %1580 = vrot.lane.b32.xlu2 %v3063_v61, %s3230_s15 }
 0xa65   : > { %v1513_v7 = vpop.f32.mrf.mxu1 }
 0xa66   : > { %v1516_v9 = vmul.f32 0.35355338, %v1513_v7 }
 0xa68   : > { %v1517_v10 = vsel %vm929_vm1, %v1516_v9, -inf }
 0xa69   : > { %1518 = vmax.xlane.f32.xlu1 %v1517_v10 }
 0xa81   : > { %v1429_v12 = vpop.xlane.xlu2 %1428 }
 0xa82   : > { %v1430_v13 = vsub.f32 %v1426_v5, %v1429_v12  ;;  %1670 = vrot.lane.b32.xlu1 %v3063_v61, %s3231_s2 }
 0xa84   : > { %v1431_v14 = vmul.f32 1.442695, %v1430_v13 }
 0xa86   : > { %2298 = vpow2.f32 %v1431_v14 }
 0xa89   : > { %v1439_v15 = vpop.permute.xlu2 %1438 }
 0xa8a   : > { %1459 = vmatpush.msrb.mxu2 %v1439_v15 }
 0xa8c   : > { %v2299_v16 = vpop.eup %2298  ;;  %1572 = vmatpush.msra.mxu2 %v1341_v23  ;;  %v1801_v23 = vld [vmem:[%s3192_s19 + $0x28] sm:$0xff] }
 0xa8d   : > { %v1433_v8 = vsel %vm929_vm1, %v2299_v16, 0.0 }
 0xa8e   : > { %1434 = vadd.xlane.f32.xlu0 %v1433_v8 }
 0xa91   : > { %v1581_v17 = vpop.permute.xlu2 %1580 }
 0xa92   : > { %2122 = vmatpush.xpose.msk.msra.mxu3 %vm929_vm1, %v1581_v17 }
 0xadc   : > { %v1519_v18 = vpop.xlane.xlu1 %1518 }
 0xadd   : > { %v1520_v19 = vsub.f32 %v1516_v9, %v1519_v18  ;;  %v1794_v18 = vld [vmem:[%s3190_s17 + $0x18] sm:$0xff] }
 0xadf   : > { %v1521_v20 = vmul.f32 1.442695, %v1520_v19  ;;  %v1792_v19 = vld [vmem:[%s3190_s17 + $0x8] sm:$0xff] }
 0xae1   : > { %2300 = vpow2.f32 %v1521_v20  ;;  %v1791_v20 = vld [vmem:[%s3190_s17] sm:$0xff] }
 0xae7   : > { %v2301_v21 = vpop.eup %2300 }
 0xae8   : > { %v1523_v22 = vsel %vm929_vm1, %v2301_v21, 0.0 }
 0xae9   : > { %1524 = vadd.xlane.f32.xlu0 %v1523_v22  ;;  %v1802_v22 = vld [vmem:[%s3192_s19 + $0x30] sm:$0xff] }
 0xaf4   : > { %v1671_v27 = vpop.permute.xlu1 %1670 }
 0xafd   : > { %1528 = vrot.lane.b32.xlu0 %v3063_v61, %s3232_s25 }
 0xb01   : > { %v1435_v24 = vpop.xlane.xlu0 %1434 }
 0xb02   : > { %2302 = vrcp.f32 %v1435_v24 }
 0xb05   : > { %1668 = vrot.lane.b32.xlu0 %v1369_v0, %s3231_s2 }
 0xb08   : > { %v2303_v25 = vpop.eup %2302 }
 0xb09   : > { %v1437_v26 = vmul.f32 %v2303_v25, %v2299_v16 }
 0xb0b   : > { %2116 = vmatmul.msk.f32.vlgmr.msrb.gmra.mxu2 %vm929_vm1, %v1437_v26  ;;  %v1800_v26 = vld [vmem:[%s3192_s19 + $0x20] sm:$0xff] }
 0xb0c   : > { %2126 = vmatpush.xpose.msk.msrb.mxu2 %vm929_vm1, %v1671_v27 }
 0xb0d   : > { %1578 = vrot.lane.b32.xlu0 %v1369_v0, %s3230_s15 }
 0xb5c   : > { %v1525_v28 = vpop.xlane.xlu0 %1524 }
 0xb5d   : > { %2304 = vrcp.f32 %v1525_v28  ;;  %v1799_v28 = vld [vmem:[%s3192_s19 + $0x18] sm:$0xff] }
 0xb63   : > { %v2305_v29 = vpop.eup %2304 }
 0xb64   : > { %v1527_v31 = vmul.f32 %v2305_v29, %v2301_v21  ;;  %v1803_v21 = vld [vmem:[%s3192_s19 + $0x38] sm:$0xff] }
 0xb6f   : > { %v1529_v32 = vpop.permute.xlu0 %1528 }
 0xb70   : > { %1549 = vmatpush.msra.mxu0 %v1529_v32 }
 0xb71   : > { %2120 = vmatmul.msk.f32.vlgmr.msra.gmra.mxu0 %vm929_vm1, %v1527_v31 }
 0xb77   : > { %v1669_v33 = vpop.permute.xlu0 %1668 }
 0xb7f   : > { %v1579_v4 = vpop.permute.xlu0 %1578 }
 0xb8e   : > { %v1461_v34 = vpop.f32.mrf.mxu2 }
 0xb8f   : > { %2117 = vmatmul.msk.f32.vlgmr.msrb.gmra.mxu3 %vm929_vm1, %v1461_v34 }
 0xb97   : > { %2123 = vmatmul.msk.f32.vlgmr.msra.gmra.mxu3 %vm929_vm1, %v1579_v4 }
 0xbee   : > { %v1551_v35 = vpop.f32.mrf.mxu0 }
 0xbef   : > { %2121 = vmatmul.msk.f32.vlgmr.msra.gmra.mxu2 %vm929_vm1, %v1551_v35  ;;  %v2272_v35 = vld [vmem:[#allocation10] ss:$0 sm:$0xff] }
 0xbf0   : > { %1847 = vmatpush.msra.mxu2 %v1803_v21 }
 0xbf2   : > { %1848 = vmatpush.msra.mxu2 %v1802_v22 }
 0xbf4   : > { %1849 = vmatpush.msra.mxu2 %v1801_v23 }
 0xbf6   : > { %1850 = vmatpush.msra.mxu2 %v1800_v26 }
 0xbf7   : > { %2127 = vmatmul.msk.f32.vlgmr.msrb.gmra.mxu2 %vm929_vm1, %v1669_v33 }
 0xbf8   : > { %1851 = vmatpush.msra.mxu2 %v1799_v28 }
 0xc12   : > { %v1484_v36 = vpop.f32.mrf.mxu3 }
 0xc13   : > { %v1487_v41 = vadd.f32 %v2271_v40, %v1484_v36 }
 0xc1a   : > { %v1603_v37 = vpop.f32.mrf.mxu3 }
 0xc1b   : > { %v1606_v38 = vmul.f32 0.35355338, %v1603_v37 }
 0xc1d   : > { %v1607_v39 = vsel %vm929_vm1, %v1606_v38, -inf }
 0xc1e   : > { %1608 = vmax.xlane.f32.xlu0 %v1607_v39 }
 0xc32   : > { %1708 = vrot.lane.b32.xlu0 %v3063_v61, %s3233_s24 }
 0xc72   : > { %v1574_v42 = vpop.f32.mrf.mxu2 }
 0xc73   : > { %v1577_v43 = vadd.f32 %v1574_v42, %v1487_v41  ;;  %v1798_v41 = vld [vmem:[%s3192_s19 + $0x10] sm:$0xff]  ;;  %v1797_v42 = vld [vmem:[%s3192_s19 + $0x8] sm:$0xff] }
 0xc74   : > { %1852 = vmatpush.msra.mxu2 %v1798_v41 }
 0xc76   : > { %1853 = vmatpush.msra.mxu2 %v1797_v42 }
 0xc7a   : > { %v1693_v44 = vpop.f32.mrf.mxu2 }
 0xc7b   : > { %v1696_v45 = vmul.f32 0.35355338, %v1693_v44  ;;  %v2274_v44 = vld [vmem:[#allocation13] ss:$0 sm:$0xff] }
 0xc7d   : > { %v1697_v46 = vsel %vm929_vm1, %v1696_v45, -inf }
 0xc7e   : > { %1698 = vmax.xlane.f32.xlu2 %v1697_v46 }
 0xc91   : > { %v1609_v47 = vpop.xlane.xlu0 %1608 }
 0xc92   : > { %v1610_v48 = vsub.f32 %v1606_v38, %v1609_v47  ;;  %v2273_v38 = vld [vmem:[#allocation12] ss:$0 sm:$0xff] }
 0xc94   : > { %v1611_v49 = vmul.f32 1.442695, %v1610_v48  ;;  %v2275_v48 = vld [vmem:[#allocation15] ss:$0 sm:$0xff] }
 0xc96   : > { %2306 = vpow2.f32 %v1611_v49 }
 0xc9c   : > { %v2307_v50 = vpop.eup %2306 }
 0xc9d   : > { %v1613_v51 = vsel %vm929_vm1, %v2307_v50, 0.0 }
 0xc9e   : > { %1614 = vadd.xlane.f32.xlu2 %v1613_v51 }
 0xca4   : > { %v1709_v52 = vpop.permute.xlu0 %1708 }
 0xca5   : > { %1729 = vmatpush.msrb.mxu3 %v1709_v52 }
 0xcf1   : > { %v1699_v53 = vpop.xlane.xlu2 %1698 }
 0xcf2   : > { %v1700_v54 = vsub.f32 %v1696_v45, %v1699_v53 }
 0xcf4   : > { %v1701_v55 = vmul.f32 1.442695, %v1700_v54 }
 0xcf6   : > { %2308 = vpow2.f32 %v1701_v55 }
 0xcfc   : > { %v2309_v56 = vpop.eup %2308 }
 0xcfd   : > { %v1703_v57 = vsel %vm929_vm1, %v2309_v56, 0.0 }
 0xcfe   : > { %1704 = vadd.xlane.f32.xlu1 %v1703_v57 }
 0xd11   : > { %v1615_v63 = vpop.xlane.xlu2 %1614 }
 0xd17   : > { %1618 = vrot.lane.b32.xlu1 %v3063_v61, %s3234_s7  ;;  %v1342_v61 = vld [vmem:[%s3186_s13 + $0x10] sm:$0xff] }
 0xd18   : > { %1662 = vmatpush.msrb.mxu0 %v1342_v61 }
 0xd1a   : > { %1823 = vmatpush.msra.mxu0 %v1794_v18 }
 0xd71   : > { %v1705_v59 = vpop.xlane.xlu1 %1704 }
 0xd72   : > { %2310 = vrcp.f32 %v1705_v59 }
 0xd73   : > { %2312 = vrcp.f32 %v1615_v63 }
 0xd78   : > { %v2311_v60 = vpop.eup %2310 }
 0xd79   : > { %v1707_v62 = vmul.f32 %v2311_v60, %v2309_v56  ;;  %v2313_v0 = vpop.eup %2312 }
 0xd7a   : > { %v1617_v1 = vmul.f32 %v2313_v0, %v2307_v50 }
 0xd7b   : > { %2128 = vmatmul.msk.f32.vlgmr.msrb.gmra.mxu3 %vm929_vm1, %v1707_v62 }
 0xd89   : > { %v1619_v2 = vpop.permute.xlu1 %1618 }
 0xd8a   : > { %1639 = vmatpush.msrb.mxu1 %v1619_v2 }
 0xd8b   : > { %2124 = vmatmul.msk.f32.vlgmr.msrb.gmra.mxu1 %vm929_vm1, %v1617_v1 }
 0xd8c   : > { %1752 = vmatpush.msra.mxu1 %v1343_v3 }
 0xdfe   : > { %v1731_v5 = vpop.f32.mrf.mxu3 }
 0xdff   : > { %2129 = vmatmul.msk.f32.vlgmr.msra.gmra.mxu1 %vm929_vm1, %v1731_v5  ;;  %v2276_v5 = vld [vmem:[#allocation16] ss:$0 sm:$0xff] }
 0xe08   : > { %v1641_v6 = vpop.f32.mrf.mxu1 }
 0xe09   : > { %2125 = vmatmul.msk.f32.vlgmr.msrb.gmra.mxu0 %vm929_vm1, %v1641_v6 }
 0xe7c   : > { %v1754_v10 = vpop.f32.mrf.mxu1 }
 0xe86   : > { %v1664_v7 = vpop.f32.mrf.mxu0 }
 0xe87   : > { %v1667_v9 = vadd.f32 %v1664_v7, %v1577_v43  ;;  %v1796_v43 = vld [vmem:[%s3192_s19] sm:$0xff]  ;;  %v2277_v7 = vld [vmem:[#allocation18] ss:$0 sm:$0xff] }
 0xe88   : > { %1854 = vmatpush.msra.mxu2 %v1796_v43 }
 0xe89   : > { %v1757_v11 = vadd.f32 %v1754_v10, %v1667_v9 }
 0xe8b   : > { %v1758_v12 = vadd.f32 %v1757_v11, %v3059_v58  ;;  %v1793_v58 = vld [vmem:[%s3190_s17 + $0x10] sm:$0xff] }
 0xe8c   : > { %1824 = vmatpush.msra.mxu0 %v1793_v58 }
 0xe8d   : > { %v1761_v13 = vsel %vm899_vm0, %v1758_v12, 0.0 }
 0xe8e   : > { %1762 = vadd.xlane.f32.xlu2 %v1761_v13  ;;  %1825 = vmatpush.msra.mxu0 %v1792_v19 }
 0xe90   : > { %1826 = vmatpush.msra.mxu0 %v1791_v20 }
 0xf01   : > { %v1763_v14 = vpop.xlane.xlu2 %1762 }
 0xf02   : > { %v1764_v15 = vmul.f32 %v1763_v14, %v3025_v30 }
 0xf04   : > { %v1765_v16 = vsub.f32 %v1758_v12, %v1764_v15 }
 0xf06   : > { %v1766_v8 = vmul.f32 %v1765_v16, %v1765_v16 }
 0xf08   : > { %v1767_v17 = vsel %vm899_vm0, %v1766_v8, 0.0 }
 0xf09   : > { %1768 = vadd.xlane.f32.xlu2 %v1767_v17 }
 0xf7c   : > { %v1769_v24 = vpop.xlane.xlu2 %1768 }
 0xf7d   : > { %v1770_v25 = vmul.f32 %v1769_v24, %v3025_v30 }
 0xf7f   : > { %v1771_v27 = vadd.f32 1e-05, %v1770_v25 }
 0xf81   : > { %2314 = vrsqrt.f32 %v1771_v27  ;;  %vm1778_vm7 = vweird.f32 %v1771_v27 }
 0xf87   : > { %v2315_v29 = vpop.eup %2314 }
 0xf88   : > { %v1773_v31 = vmul.f32 %v2315_v29, %v1771_v27  ;;  %vm1779_vm6 = vweird.f32 %v2315_v29 }
 0xf89   : > { %vm1780_vm8 = vmor %vm1778_vm7, %vm1779_vm6 }
 0xf8a   : > { %v1774_v32 = vmul.f32 %v2315_v29, %v1773_v31 }
 0xf8c   : > { %v1775_v33 = vmul.f32 0.5, %v1774_v32 }
 0xf8e   : > { %v1776_v34 = vsub.f32 1.5, %v1775_v33 }
 0xf90   : > { %v1777_v4 = vmul.f32 %v2315_v29, %v1776_v34 }
 0xf92   : > { %v1781_v36 = vsel %vm1780_vm8, %v2315_v29, %v1777_v4 }
 0xf93   : > { %v1782_v37 = vmul.f32 %v1781_v36, %v1765_v16 }
 0xf95   : > { %v1786_v39 = vmul.f32 %v2272_v35, %v1782_v37 }
 0xf97   : > { %v1790_v40 = vadd.f32 %v2273_v38, %v1786_v39 }
 0xf99   : > { %2130 = vmatmul.msk.f32.vlgmr.msra.gmra.mxu0 %vm899_vm0, %v1790_v40 }
0x1016   : > { %v1828_v45 = vpop.f32.mrf.mxu0 }
0x1017   : > { %v1829_v46 = vadd.f32 %v2274_v44, %v1828_v45 }
0x1019   : > { %v1831_v47 = vmax.f32 %v1829_v46, 0.0 }
0x101b   : > { %2131 = vmatmul.msk.f32.vlgmr.msra.gmra.mxu2 %vm1835_vm9, %v1831_v47 }
0x109e   : > { %v1856_v49 = vpop.f32.mrf.mxu2 }
0x109f   : > { %v1857_v50 = vadd.f32 %v2275_v48, %v1856_v49 }
0x10a1   : > { %v1859_v51 = vadd.f32 %v1857_v50, %v1790_v40 }
0x10a3   : > { %v1862_v52 = vsel %vm899_vm0, %v1859_v51, 0.0 }
0x10a4   : > { %1863 = vadd.xlane.f32.xlu2 %v1862_v52 }
0x1117   : > { %v1864_v53 = vpop.xlane.xlu2 %1863 }
0x1118   : > { %v1865_v54 = vmul.f32 %v1864_v53, %v3025_v30 }
0x111a   : > { %v1866_v55 = vsub.f32 %v1859_v51, %v1865_v54 }
0x111c   : > { %v1867_v56 = vmul.f32 %v1866_v55, %v1866_v55 }
0x111e   : > { %v1868_v57 = vsel %vm899_vm0, %v1867_v56, 0.0 }
0x111f   : > { %1869 = vadd.xlane.f32.xlu0 %v1868_v57 }
0x1192   : > { %v1870_v59 = vpop.xlane.xlu0 %1869 }
0x1193   : > { %v1871_v60 = vmul.f32 %v1870_v59, %v3025_v30 }
0x1195   : > { %v1872_v62 = vadd.f32 1e-05, %v1871_v60 }
0x1197   : > { %2316 = vrsqrt.f32 %v1872_v62  ;;  %vm1879_vm11 = vweird.f32 %v1872_v62 }
0x119d   : > { %v2317_v63 = vpop.eup %2316 }
0x119e   : > { %v1874_v0 = vmul.f32 %v2317_v63, %v1872_v62  ;;  %vm1880_vm10 = vweird.f32 %v2317_v63 }
0x119f   : > { %vm1881_vm12 = vmor %vm1879_vm11, %vm1880_vm10 }
0x11a0   : > { %v1875_v1 = vmul.f32 %v2317_v63, %v1874_v0 }
0x11a2   : > { %v1876_v2 = vmul.f32 0.5, %v1875_v1 }
0x11a4   : > { %v1877_v3 = vsub.f32 1.5, %v1876_v2 }
0x11a6   : > { %v1878_v61 = vmul.f32 %v2317_v63, %v1877_v3 }
0x11a8   : > { %v1882_v6 = vsel %vm1881_vm12, %v2317_v63, %v1878_v61 }
0x11a9   : > { %v1883_v9 = vmul.f32 %v1882_v6, %v1866_v55 }
0x11ab   : > { %v1887_v10 = vmul.f32 %v2276_v5, %v1883_v9 }
0x11ad   : > { %v1891_v30 = vadd.f32 %v2277_v7, %v1887_v10 }
0x11af   : > { %1892 = vst.msk [vmem:[%s882_s0] sm:$0xff] %vm899_vm0, %v1891_v30 }
0x11b0 PF: > { %s39_s4 = sadd.s32 1, %s2678_s4  }
0x11b1   : > { %p36_p7 = scmp.ge.s32.totalorder %s39_s4, 4  }
0x11b3   :  { %38 = sbr.rel (!%p36_p7) target bundleno = 18 (0x12), region = 190 }
0x11b8   :  { %1912 = vsyncpa [#allocation3], 1 }
0x11b9   :  { %1914 = vsyncpa [#allocation3 + $0x1], 1 }
0x11ba   :  { %1915 = vsyncpa [#allocation5], 1 }
0x11bb   :  { %1916 = vsyncpa [#allocation8], 1 }
0x11bc   :  { %1917 = vsyncpa [#allocation11], 1 }
0x11bd   :  { %1918 = vsyncpa [#allocation14], 1 }
0x11be   :  { %1919 = vsyncpa [#allocation17], 1 }

// kernel: chord_melody_transformer_v3_forward.8
= control target key start
LH: loop header
LB: loop body
LE: loop exit
PB: predicated region body
PF: predicated region fallthrough
CT: control target
= control target key end

     0   :  { %s3319_s0 = inlined_call_operand.vmem [shape: f32[2,8,32], index: 0, kind: input, shape index: {}]   ;;  %s3320_s1 = inlined_call_operand.vmem [shape: f32[2,8,32], index: 1, kind: input, shape index: {}]   ;;  %s3321_s2 = inlined_call_operand.vmem [shape: f32[8,8], index: 2, kind: input, shape index: {}]   ;;  %s3322_s3 = inlined_call_operand.vmem [shape: f32[32,96], index: 3, kind: input, shape index: {}]   ;;  %s3323_s4 = inlined_call_operand.hbm [shape: f32[1,96], index: 4, kind: input, shape index: {}]   ;;  %s3324_s5 = inlined_call_operand.vmem [shape: f32[32,32], index: 5, kind: input, shape index: {}]   ;;  %s3325_s6 = inlined_call_operand.hbm [shape: f32[1,32], index: 6, kind: input, shape index: {}]   ;;  %s3326_s7 = inlined_call_operand.hbm [shape: f32[1,32], index: 7, kind: input, shape index: {}]   ;;  %s3327_s8 = inlined_call_operand.hbm [shape: f32[1,32], index: 8, kind: input, shape index: {}]   ;;  %s3328_s9 = inlined_call_operand.vmem [shape: f32[32,32], index: 9, kind: input, shape index: {}]   ;;  %s3329_s10 = inlined_call_operand.hbm [shape: f32[1,32], index: 10, kind: input, shape index: {}]   ;;  %s3330_s11 = inlined_call_operand.vmem [shape: f32[32,64], index: 11, kind: input, shape index: {}]   ;;  %s3331_s12 = inlined_call_operand.hbm [shape: f32[1,64], index: 12, kind: input, shape index: {}]   ;;  %s3332_s13 = inlined_call_operand.vmem [shape: f32[32,32], index: 13, kind: input, shape index: {}]   ;;  %s3333_s14 = inlined_call_operand.hbm [shape: f32[1,32], index: 14, kind: input, shape index: {}]   ;;  %s3334_s15 = inlined_call_operand.hbm [shape: f32[1,32], index: 15, kind: input, shape index: {}]   ;;  %s3335_s16 = inlined_call_operand.hbm [shape: f32[1,32], index: 16, kind: input, shape index: {}]   ;;  %s3336_s17 = inlined_call_operand.vmem [shape: f32[32,64], index: 17, kind: input, shape index: {}]   ;;  %s3337_s18 = inlined_call_operand.hbm [shape: f32[1,64], index: 18, kind: input, shape index: {}]   ;;  %s3338_s19 = inlined_call_operand.vmem [shape: f32[64,32], index: 19, kind: input, shape index: {}]   ;;  %s3339_s20 = inlined_call_operand.hbm [shape: f32[1,32], index: 20, kind: input, shape index: {}]   ;;  %s3340_s21 = inlined_call_operand.hbm [shape: f32[1,32], index: 21, kind: input, shape index: {}]   ;;  %s3341_s22 = inlined_call_operand.hbm [shape: f32[1,32], index: 22, kind: input, shape index: {}]   ;;  %s3342_s23 = inlined_call_operand.vmem [shape: f32[2,8,32], index: 23, kind: output, shape index: {}]  }
   0x1   :  { %3351 = sst [smem:[#allocation30_spill]] %s3319_s0 }
   0x2   :  { %3352 = sst [smem:[#allocation31_spill]] %s3320_s1 }
   0x3   :  { %3353 = sst [smem:[#allocation32_spill]] %s3321_s2 }
   0x4   :  { %3354 = sst [smem:[#allocation33_spill]] %s3322_s3 }
   0x5   :  { %3355 = sst [smem:[#allocation34_spill]] %s3323_s4 }
   0x6   :  { %3356 = sst [smem:[#allocation35_spill]] %s3324_s5 }
   0x7   :  { %3357 = sst [smem:[#allocation36_spill]] %s3325_s6 }
   0x8   :  { %3358 = sst [smem:[#allocation37_spill]] %s3326_s7 }
   0x9   :  { %3359 = sst [smem:[#allocation38_spill]] %s3327_s8 }
   0xa   :  { %3360 = sst [smem:[#allocation39_spill]] %s3331_s12 }
   0xb   :  { %3361 = sst [smem:[#allocation40_spill]] %s3334_s15 }
   0xc   :  { %28 = vsyncpa [#allocation3], 0 }
   0xd   :  { %29 = vsyncpa [#allocation5], 0 }
   0xe   :  { %30 = vsyncpa [#allocation8], 0 }
   0xf   :  { %31 = vsyncpa [#allocation11], 0 }
  0x10   :  { %32 = vsyncpa [#allocation14], 0 }
  0x11   :  { %33 = vsyncpa [#allocation17], 0 }
  0x12   :  { %34 = vsyncpa [#allocation20], 0  ;;  %s2961_s4 = smov 0  }
  0x13 LB: > { %3362 = sst [smem:[#allocation29_spill]] %s2814_s4  ;;  %s2970_s1 = sadd.s32 4294967295, %s2814_s4   ;;  %s2814_s4 = sphi %s2961_s4, %s40_s4  }
  0x14   : > { %s3363_s25 = sld [smem:[#allocation36_spill]]  ;;  %p2115_p0 = scmp.ge.s32.totalorder %s2814_s4, 1 }
  0x15   : > { %p564_p1 = scmp.lt.s32.totalorder %s2814_s4, 3  ;;  %p2278_p2 = scmp.eq.s32.totalorder %s2970_s1, 0 }
  0x16   : > { %s2816_s2 = smov [#allocation4]   ;;  %s3365_s8 = sld [smem:[#allocation38_spill]] }
  0x17   : > { %p2975_p3 = pnand %p2115_p0, %p564_p1  ;;  %s599_s6 = sshll.u32 %s2816_s2, 4  ;;  %s600_s6 = int_to_ptr.vmem [resolvable:$true] %s599_s6 }
  0x18   : > { %s3366_s12 = sld [smem:[#allocation39_spill]]  ;;  %s2817_s24 = smov [#allocation7]  }
  0x19   : > { %p2238_p4 = pneg %p2975_p3  ;;  %s2818_s2 = smov [#allocation10]  }
  0x1a   : > { %s597_s5 = sshll.u32 %s3363_s25, 4  ;;  %s623_s25 = sshll.u32 %s2817_s24, 4  ;;  %s598_s5 = int_to_ptr.hbm [resolvable:$true] %s597_s5  ;;  %s624_s25 = int_to_ptr.vmem [resolvable:$true] %s623_s25 }
  0x1b   : > { %p2989_p5 = pnand %p2278_p2, %p2238_p4  ;;  %s653_s27 = sshll.u32 %s2818_s2, 4  ;;  %s654_s27 = int_to_ptr.vmem [resolvable:$true] %s653_s27 }
  0x1c   : > { %s621_s28 = sshll.u32 %s3365_s8, 4  ;;  %s3368_s15 = sld [smem:[#allocation40_spill]]  ;;  %s622_s28 = int_to_ptr.hbm [resolvable:$true] %s621_s28 }
  0x1d   : > { %2244 = dma.hbm_to_vmem [thread:$0]  (!%p2989_p5), %s598_s5, 16, %s600_s6, [#allocation5]  }
  0x1e   : > { %s651_s0 = sshll.u32 %s3366_s12, 4  ;;  %s705_s12 = sshll.u32 %s3337_s18, 4  ;;  %s652_s0 = int_to_ptr.hbm [resolvable:$true] %s651_s0  ;;  %s706_s12 = int_to_ptr.hbm [resolvable:$true] %s705_s12 }
  0x1f   : > { %2250 = dma.hbm_to_vmem [thread:$0]  (!%p2989_p5), %s622_s28, 16, %s624_s25, [#allocation8]  }
  0x20   : > { %2256 = dma.hbm_to_vmem [thread:$0]  (!%p2989_p5), %s652_s0, 16, %s654_s27, [#allocation11]  }
  0x21   : > { %s2819_s4 = smov [#allocation13]   ;;  %s2820_s6 = smov [#allocation16]  }
  0x22   : > { %s678_s3 = sshll.u32 %s3368_s15, 4  ;;  %s680_s5 = sshll.u32 %s2819_s4, 4  ;;  %s679_s3 = int_to_ptr.hbm [resolvable:$true] %s678_s3  ;;  %s681_s5 = int_to_ptr.vmem [resolvable:$true] %s680_s5 }
  0x23   : > { %2262 = dma.hbm_to_vmem [thread:$0]  (!%p2989_p5), %s679_s3, 16, %s681_s5, [#allocation14]  }
  0x24   : > { %s707_s28 = sshll.u32 %s2820_s6, 4  ;;  %s732_s7 = sshll.u32 %s3340_s21, 4  ;;  %s708_s28 = int_to_ptr.vmem [resolvable:$true] %s707_s28  ;;  %s733_s7 = int_to_ptr.hbm [resolvable:$true] %s732_s7 }
  0x25   : > { %2268 = dma.hbm_to_vmem [thread:$0]  (!%p2989_p5), %s706_s12, 16, %s708_s28, [#allocation17]  }
  0x26   : > { %s3369_s27 = sld [smem:[#allocation34_spill]]  ;;  %s2821_s4 = smov [#allocation19]  }
  0x27   : > { %s734_s24 = sshll.u32 %s2821_s4, 4  ;;  %s2822_s3 = smov [#allocation2]   ;;  %s735_s24 = int_to_ptr.vmem [resolvable:$true] %s734_s24 }
  0x28   : > { %2274 = dma.hbm_to_vmem [thread:$0]  (!%p2989_p5), %s733_s7, 16, %s735_s24, [#allocation20]  }
  0x29   : > { %s584_s5 = sshll.u32 %s2822_s3, 4  ;;  %s3370_s2 = sld [smem:[#allocation37_spill]]  ;;  %s585_s5 = int_to_ptr.vmem [resolvable:$true] %s584_s5 }
  0x2a   : > { %s636_s8 = sshll.u32 %s3329_s10, 4  ;;  %s2823_s0 = smov [#allocation6]   ;;  %s637_s8 = int_to_ptr.hbm [resolvable:$true] %s636_s8 }
  0x2b   : > { %s2824_s7 = smov [#allocation9]   ;;  %s666_s6 = sshll.u32 %s3333_s14, 4  ;;  %s667_s6 = int_to_ptr.hbm [resolvable:$true] %s666_s6 }
  0x2c   : > { %s582_s29 = sshll.u32 %s3369_s27, 4  ;;  %s611_s27 = sshll.u32 %s2823_s0, 4  ;;  %s583_s29 = int_to_ptr.hbm [resolvable:$true] %s582_s29  ;;  %s612_s27 = int_to_ptr.vmem [resolvable:$true] %s611_s27 }
  0x2d   : > { %2241 = dma.hbm_to_vmem [thread:$0]  (!%p2989_p5), %s583_s29, 16, %s585_s5, [#allocation3]  }
  0x2e   : > { %s638_s4 = sshll.u32 %s2824_s7, 4  ;;  %s690_s25 = sshll.u32 %s3335_s16, 4  ;;  %s639_s4 = int_to_ptr.vmem [resolvable:$true] %s638_s4  ;;  %s691_s25 = int_to_ptr.hbm [resolvable:$true] %s690_s25 }
  0x2f   : > { %s609_s15 = sshll.u32 %s3370_s2, 4  ;;  %s2825_s2 = smov [#allocation12]   ;;  %s610_s15 = int_to_ptr.hbm [resolvable:$true] %s609_s15 }
  0x30   : > { %2247 = dma.hbm_to_vmem [thread:$0]  (!%p2989_p5), %s610_s15, 16, %s612_s27, [#allocation5]  }
  0x31   : > { %2253 = dma.hbm_to_vmem [thread:$0]  (!%p2989_p5), %s637_s8, 16, %s639_s4, [#allocation8]  }
  0x32   : > { %s668_s12 = sshll.u32 %s2825_s2, 4  ;;  %s2826_s15 = smov [#allocation15]   ;;  %s669_s12 = int_to_ptr.vmem [resolvable:$true] %s668_s12 }
  0x33   : > { %2259 = dma.hbm_to_vmem [thread:$0]  (!%p2989_p5), %s667_s6, 16, %s669_s12, [#allocation11]  }
  0x34   : > { %s692_s28 = sshll.u32 %s2826_s15, 4  ;;  %s720_s7 = sshll.u32 %s3339_s20, 4  ;;  %s693_s28 = int_to_ptr.vmem [resolvable:$true] %s692_s28  ;;  %s721_s7 = int_to_ptr.hbm [resolvable:$true] %s720_s7 }
  0x35   : > { %2265 = dma.hbm_to_vmem [thread:$0]  (!%p2989_p5), %s691_s25, 16, %s693_s28, [#allocation14]  }
  0x36   : > { %s744_s24 = sshll.u32 %s3341_s22, 4  ;;  %s2827_s3 = smov [#allocation18]   ;;  %s745_s24 = int_to_ptr.hbm [resolvable:$true] %s744_s24 }
  0x37   : > { %s722_s29 = sshll.u32 %s2827_s3, 4  ;;  %s2828_s6 = smov [#allocation21]   ;;  %s723_s29 = int_to_ptr.vmem [resolvable:$true] %s722_s29 }
  0x38   : > { %2271 = dma.hbm_to_vmem [thread:$0]  (!%p2989_p5), %s721_s7, 16, %s723_s29, [#allocation17]  }
  0x39   : > { %s746_s5 = sshll.u32 %s2828_s6, 4  ;;  %773 = sbr.rel (%p2975_p3) target bundleno = 4536 (0x11b8), region = 112  ;;  %s747_s5 = int_to_ptr.vmem [resolvable:$true] %s746_s5 }
  0x3a   : > { %2277 = dma.hbm_to_vmem [thread:$0]  (!%p2989_p5), %s745_s24, 16, %s747_s5, [#allocation20]  }
  0x3e   : > { %2785 = dma.done.wait (%p2278_p2), [#allocation3], 16  }
  0x3f   : > { %2787 = vsyncadd (%p2278_p2), [#allocation3], 4294967280 }
  0x40   : > { %2789 = dma.done.wait (%p2278_p2), [#allocation5], 32  }
  0x41   : > { %2791 = vsyncadd (%p2278_p2), [#allocation5], 4294967264 }
  0x42   : > { %2793 = dma.done.wait (%p2278_p2), [#allocation8], 32  }
  0x43   : > { %2795 = vsyncadd (%p2278_p2), [#allocation8], 4294967264 }
  0x44   : > { %2797 = dma.done.wait (%p2278_p2), [#allocation11], 32  }
  0x45   : > { %2799 = vsyncadd (%p2278_p2), [#allocation11], 4294967264 }
  0x46   : > { %2801 = dma.done.wait (%p2278_p2), [#allocation14], 32  }
  0x47   : > { %2803 = vsyncadd (%p2278_p2), [#allocation14], 4294967264 }
  0x48   : > { %2805 = dma.done.wait (%p2278_p2), [#allocation17], 32  }
  0x49   : > { %2807 = vsyncadd (%p2278_p2), [#allocation17], 4294967264 }
  0x4a   : > { %2809 = dma.done.wait (%p2278_p2), [#allocation20], 32  }
  0x4b   : > { %2811 = vsyncadd (%p2278_p2), [#allocation20], 4294967264  ;;  %p900_p6 = scmp.lt.s32.totalorder %s2970_s1, 1  ;;  %s3371_s2 = sld [smem:[#allocation33_spill]]  ;;  %vm928_vm0 = vcmask 261120   ;;  %vm958_vm1 = vcmask 64512  }
  0x4c   : > { %s3372_s27 = sld [smem:[#allocation30_spill]]  ;;  %v2337_v6 = vld [vmem:[#allocation2] ss:$0 sm:$0xff]  ;;  %s3348_s5 = smov 88   ;;  %v2338_v56 = vld [vmem:[#allocation4] ss:$0 sm:$0xff] }
  0x4d   : > { %s3382_s1 = smov (!%p900_p6, %s2970_s1), 1  ;;  %s3373_s6 = sld [smem:[#allocation35_spill]]  ;;  %vm1864_vm9 = vcmask 523264  }
  0x4e   : > { %s3081_s26 = sshll.u32 %s3382_s1, 3  ;;  %s2830_s30 = smov 96  }
  0x4f   : > { %s2831_s25 = smov 120   ;;  %s3374_s28 = sld [smem:[#allocation32_spill]] }
  0x50   : > { %s2832_s0 = smov 56   ;;  %s2835_s8 = smov 64  }
  0x51   : > { %v918_v0 = vld [vmem:[%s3371_s2 + $0x18] sm:$0xff]  ;;  %v917_v1 = vld [vmem:[%s3371_s2 + $0x10] sm:$0xff]  ;;  %v916_v2 = vld [vmem:[%s3371_s2 + $0x8] sm:$0xff]  ;;  %s3346_s4 = smov 80   ;;  %s3347_s1 = smov 72  }
  0x52   : > { %s903_s7 = scalar_lea.vmem %s3372_s27, %s3081_s26  ;;  %944 = vmatpush.msra.mxu0 %v918_v0  ;;  %v915_v3 = vld [vmem:[%s3371_s2] sm:$0xff]  ;;  %s2833_s27 = smov 112  }
  0x53   : > { %v3099_v4 = vld [vmem:[%s903_s7] sm:$0xff]  ;;  %s3349_s7 = smov 104   ;;  %v921_v40 = vld [vmem:[%s3373_s6 + $0x8] sm:$0xff]  ;;  %s2838_s29 = smov 48  }
  0x54   : > { %945 = vmatpush.msra.mxu0 %v917_v1  ;;  %v920_v5 = vld [vmem:[%s3373_s6] sm:$0xff]  ;;  %s2839_s12 = smov 40   ;;  %s3379_s24 = smov 80  }
  0x55   : > { %1040 = vmatpush.msra.mxu3 %v920_v5  ;;  %v3121_v12 = vld [vmem:[%s3374_s28] sm:$0xff]  ;;  %s3376_s28 = smov 104   ;;  %s911_s3 = scalar_lea.vmem %s3342_s23, %s3081_s26 }
  0x56   : > { %946 = vmatpush.msra.mxu0 %v916_v2 }
  0x58   : > { %947 = vmatpush.msra.mxu0 %v915_v3 }
  0x59   : > { %2147 = vmatmul.msk.f32.vlgmr.msra.gmra.mxu0 %vm928_vm0, %v3099_v4 }
  0xd6   : > { %v949_v7 = vpop.f32.mrf.mxu0 }
  0xd7   : > { %v3106_v8 = vadd.f32 %v2337_v6, %v949_v7 }
  0xd9   : > { %1048 = vrot.lane.b32.xlu2 %v3106_v8, %s3348_s5  ;;  %956 = vrot.lane.b32.xlu0 %v3106_v8, %s2830_s30 }
  0xe1   : > { %1046 = vrot.lane.b32.xlu2 %v3106_v8, %s2831_s25 }
 0x133   : > { %v1049_v9 = vpop.permute.xlu2 %1048 }
 0x134   : > { %2152 = vmatpush.xpose.msk.msrb.mxu3 %vm958_vm1, %v1049_v9 }
 0x13b   : > { %v1047_v27 = vpop.permute.xlu2 %1046 }
 0x14b   : > { %v957_v10 = vpop.permute.xlu0 %956 }
 0x14c   : > { %2148 = vmatpush.xpose.msk.msra.mxu1 %vm958_vm1, %v957_v10 }
 0x14f   : > { %2149 = vmatmul.msk.f32.vlgmr.msra.gmra.mxu1 %vm958_vm1, %v3106_v8 }
 0x150   : > { %1131 = vmatpush.msrb.mxu1 %v921_v40  ;;  %v1362_v40 = vld [vmem:[%s3328_s9 + $0x18] sm:$0xff] }
 0x1cc   : > { %v980_v11 = vpop.f32.mrf.mxu1 }
 0x1cd   : > { %v983_v13 = vmul.f32 0.35355338, %v980_v11  ;;  %v922_v11 = vld [vmem:[%s3373_s6 + $0x10] sm:$0xff] }
 0x1cf   : > { %v984_v14 = vadd.f32 %v983_v13, %v3121_v12 }
 0x1d1   : > { %v985_v15 = vsel %vm958_vm1, %v984_v14, -inf }
 0x1d2   : > { %986 = vmax.xlane.f32.xlu0 %v985_v15 }
 0x1e6   : > { %1087 = vrot.lane.b32.xlu0 %v3106_v8, %s2832_s0 }
 0x1ee   : > { %1137 = vrot.lane.b32.xlu0 %v3106_v8, %s2833_s27 }
 0x1f6   : > { %1228 = vrot.lane.b32.xlu0 %v3106_v8, %s3349_s7 }
 0x245   : > { %v987_v16 = vpop.xlane.xlu0 %986 }
 0x246   : > { %v988_v17 = vsub.f32 %v984_v14, %v987_v16 }
 0x248   : > { %v989_v18 = vmul.f32 1.442695, %v988_v17 }
 0x24a   : > { %2350 = vpow2.f32 %v989_v18 }
 0x250   : > { %v2351_v19 = vpop.eup %2350 }
 0x251   : > { %v991_v20 = vsel %vm958_vm1, %v2351_v19, 0.0 }
 0x252   : > { %992 = vadd.xlane.f32.xlu1 %v991_v20 }
 0x258   : > { %v1088_v26 = vpop.permute.xlu0 %1087 }
 0x260   : > { %v1138_v38 = vpop.permute.xlu0 %1137 }
 0x268   : > { %v1229_v55 = vpop.permute.xlu0 %1228 }
 0x26b   : > { %996 = vrot.lane.b32.xlu1 %v3106_v8, %s2835_s8  ;;  %s3377_s8 = smov 88  }
 0x2c5   : > { %v993_v21 = vpop.xlane.xlu1 %992 }
 0x2c6   : > { %2352 = vrcp.f32 %v993_v21 }
 0x2cc   : > { %v2353_v22 = vpop.eup %2352 }
 0x2cd   : > { %v995_v24 = vmul.f32 %v2353_v22, %v2351_v19 }
 0x2dd   : > { %v997_v23 = vpop.permute.xlu1 %996 }
 0x2de   : > { %1017 = vmatpush.msra.mxu2 %v997_v23 }
 0x2df   : > { %2150 = vmatmul.msk.f32.vlgmr.msra.gmra.mxu2 %vm958_vm1, %v995_v24  ;;  %v2840_v24 = vmov 32.0  }
 0x362   : > { %v1019_v25 = vpop.f32.mrf.mxu2 }
 0x363   : > { %2151 = vmatmul.msk.f32.vlgmr.msra.gmra.mxu3 %vm958_vm1, %v1019_v25 }
 0x364   : > { %1108 = vmatpush.msra.mxu3 %v1088_v26 }
 0x36b   : > { %2153 = vmatmul.msk.f32.vlgmr.msrb.gmra.mxu3 %vm958_vm1, %v1047_v27 }
 0x36c   : > { %1222 = vmatpush.msrb.mxu3 %v922_v11  ;;  %v1369_v11 = vld [vmem:[%s3332_s13] sm:$0xff] }
 0x3e6   : > { %v1042_v28 = vpop.f32.mrf.mxu3 }
 0x3e7   : > { %v1045_v57 = vadd.f32 %v2338_v56, %v1042_v28  ;;  %v2340_v56 = vld [vmem:[#allocation7] ss:$0 sm:$0xff] }
 0x3ee   : > { %v1071_v29 = vpop.f32.mrf.mxu3 }
 0x3ef   : > { %v1074_v30 = vmul.f32 0.35355338, %v1071_v29 }
 0x3f1   : > { %v1075_v31 = vadd.f32 %v1074_v30, %v3121_v12 }
 0x3f3   : > { %v1076_v32 = vsel %vm958_vm1, %v1075_v31, -inf }
 0x3f4   : > { %1077 = vmax.xlane.f32.xlu2 %v1076_v32 }
 0x40c   : > { %1139 = vrot.lane.b32.xlu2 %v3106_v8, %s3346_s4  ;;  %s3375_s4 = sld [smem:[#allocation31_spill]] }
 0x467   : > { %v1078_v33 = vpop.xlane.xlu2 %1077 }
 0x468   : > { %v1079_v34 = vsub.f32 %v1075_v31, %v1078_v33 }
 0x46a   : > { %v1080_v35 = vmul.f32 1.442695, %v1079_v34 }
 0x46c   : > { %2354 = vpow2.f32 %v1080_v35  ;;  %v1367_v35 = vld [vmem:[%s3330_s11 + $0x18] sm:$0xff] }
 0x46f   : > { %v1140_v36 = vpop.permute.xlu2 %1139 }
 0x470   : > { %2156 = vmatpush.xpose.msk.msrb.mxu0 %vm958_vm1, %v1140_v36  ;;  %v1366_v36 = vld [vmem:[%s3330_s11 + $0x10] sm:$0xff] }
 0x472   : > { %v2355_v37 = vpop.eup %2354 }
 0x473   : > { %2157 = vmatmul.msk.f32.vlgmr.msrb.gmra.mxu0 %vm958_vm1, %v1138_v38  ;;  %v1082_v39 = vsel %vm958_vm1, %v2355_v37, 0.0  ;;  %v1364_v38 = vld [vmem:[%s3330_s11] sm:$0xff] }
 0x474   : > { %1083 = vadd.xlane.f32.xlu1 %v1082_v39 }
 0x48d   : > { %1230 = vrot.lane.b32.xlu1 %v3106_v8, %s3347_s1  ;;  %s907_s1 = scalar_lea.vmem %s3375_s4, %s3081_s26 }
 0x48e   : > { %v913_v39 = vld [vmem:[%s907_s1] sm:$0xff] }
 0x4e7   : > { %v1084_v41 = vpop.xlane.xlu1 %1083 }
 0x4e8   : > { %2356 = vrcp.f32 %v1084_v41  ;;  %v1361_v41 = vld [vmem:[%s3328_s9 + $0x10] sm:$0xff] }
 0x4ee   : > { %v2357_v42 = vpop.eup %2356 }
 0x4ef   : > { %v1086_v43 = vmul.f32 %v2357_v42, %v2355_v37  ;;  %v1365_v37 = vld [vmem:[%s3330_s11 + $0x8] sm:$0xff] }
 0x4f0   : > { %v1162_v44 = vpop.f32.mrf.mxu0  ;;  %v1360_v42 = vld [vmem:[%s3328_s9 + $0x8] sm:$0xff] }
 0x4f1   : > { %v1165_v45 = vmul.f32 0.35355338, %v1162_v44  ;;  %2154 = vmatmul.msk.f32.vlgmr.msra.gmra.mxu3 %vm958_vm1, %v1086_v43  ;;  %v1359_v43 = vld [vmem:[%s3328_s9] sm:$0xff] }
 0x4f2   : > { %1392 = vmatpush.msra.mxu3 %v1362_v40  ;;  %v2343_v40 = vld [vmem:[#allocation12] ss:$0 sm:$0xff] }
 0x4f3   : > { %v1166_v46 = vadd.f32 %v1165_v45, %v3121_v12 }
 0x4f4   : > { %1393 = vmatpush.msra.mxu3 %v1361_v41 }
 0x4f5   : > { %v1167_v47 = vsel %vm958_vm1, %v1166_v46, -inf }
 0x4f6   : > { %1168 = vmax.xlane.f32.xlu2 %v1167_v47  ;;  %1394 = vmatpush.msra.mxu3 %v1360_v42 }
 0x4f8   : > { %1395 = vmatpush.msra.mxu3 %v1359_v43 }
 0x4ff   : > { %v1231_v48 = vpop.permute.xlu1 %1230 }
 0x500   : > { %2160 = vmatpush.xpose.msk.msra.mxu1 %vm958_vm1, %v1231_v48 }
 0x569   : > { %v1169_v49 = vpop.xlane.xlu2 %1168 }
 0x56a   : > { %v1170_v50 = vsub.f32 %v1166_v46, %v1169_v49 }
 0x56c   : > { %v1171_v51 = vmul.f32 1.442695, %v1170_v50 }
 0x56e   : > { %2358 = vpow2.f32 %v1171_v51 }
 0x574   : > { %v2359_v52 = vpop.eup %2358  ;;  %v1110_v53 = vpop.f32.mrf.mxu3 }
 0x575   : > { %2155 = vmatmul.msk.f32.vlgmr.msrb.gmra.mxu1 %vm958_vm1, %v1110_v53  ;;  %v1173_v54 = vsel %vm958_vm1, %v2359_v52, 0.0  ;;  %v2339_v53 = vld [vmem:[#allocation6] ss:$0 sm:$0xff] }
 0x576   : > { %1174 = vadd.xlane.f32.xlu1 %v1173_v54  ;;  %1418 = vmatpush.msrb.mxu1 %v1367_v35 }
 0x578   : > { %1419 = vmatpush.msrb.mxu1 %v1366_v36 }
 0x57a   : > { %1420 = vmatpush.msrb.mxu1 %v1365_v37 }
 0x57c   : > { %1421 = vmatpush.msrb.mxu1 %v1364_v38 }
 0x57d   : > { %2161 = vmatmul.msk.f32.vlgmr.msra.gmra.mxu1 %vm958_vm1, %v1229_v55 }
 0x585   : > { %2165 = vmatmul.msk.f32.vlgmr.msrb.gmra.mxu1 %vm928_vm0, %v913_v39 }
 0x5e9   : > { %v1175_v3 = vpop.xlane.xlu1 %1174 }
 0x5f2   : > { %v1133_v58 = vpop.f32.mrf.mxu1 }
 0x5f3   : > { %v1136_v59 = vadd.f32 %v1133_v58, %v1045_v57 }
 0x5fa   : > { %v1253_v60 = vpop.f32.mrf.mxu1 }
 0x5fb   : > { %v1256_v61 = vmul.f32 0.35355338, %v1253_v60 }
 0x5fd   : > { %v1257_v62 = vadd.f32 %v1256_v61, %v3121_v12 }
 0x5ff   : > { %v1258_v63 = vsel %vm958_vm1, %v1257_v62, -inf }
 0x600   : > { %1259 = vmax.xlane.f32.xlu0 %v1258_v63 }
 0x602   : > { %v1423_v60 = vpop.f32.mrf.mxu1 }
 0x614   : > { %1178 = vrot.lane.b32.xlu0 %v3106_v8, %s2838_s29 }
 0x673   : > { %v1260_v0 = vpop.xlane.xlu0 %1259 }
 0x674   : > { %v1261_v1 = vsub.f32 %v1257_v62, %v1260_v0  ;;  %v2342_v62 = vld [vmem:[#allocation9] ss:$0 sm:$0xff] }
 0x676   : > { %v1262_v2 = vmul.f32 1.442695, %v1261_v1 }
 0x678   : > { %2360 = vpow2.f32 %v1262_v2 }
 0x679   : > { %2362 = vrcp.f32 %v1175_v3 }
 0x67e   : > { %v2361_v5 = vpop.eup %2360 }
 0x67f   : > { %v1264_v6 = vsel %vm958_vm1, %v2361_v5, 0.0  ;;  %v2363_v7 = vpop.eup %2362 }
 0x680   : > { %1265 = vadd.xlane.f32.xlu2 %v1264_v6  ;;  %v1177_v10 = vmul.f32 %v2363_v7, %v2359_v52 }
 0x686   : > { %v1179_v9 = vpop.permute.xlu0 %1178 }
 0x687   : > { %1199 = vmatpush.msrb.mxu2 %v1179_v9 }
 0x688   : > { %2158 = vmatmul.msk.f32.vlgmr.msrb.gmra.mxu2 %vm958_vm1, %v1177_v10 }
 0x698   : > { %1269 = vrot.lane.b32.xlu2 %v3106_v8, %s2839_s12  ;;  %v923_v8 = vld [vmem:[%s3373_s6 + $0x18] sm:$0xff] }
 0x699   : > { %1313 = vmatpush.msra.mxu2 %v923_v8 }
 0x6f3   : > { %v1266_v12 = vpop.xlane.xlu2 %1265 }
 0x6f4   : > { %2364 = vrcp.f32 %v1266_v12 }
 0x6f5   : > { %2366 = vrcp.f32 %v2840_v24 }
 0x6fa   : > { %v2365_v13 = vpop.eup %2364 }
 0x6fb   : > { %v1268_v14 = vmul.f32 %v2365_v13, %v2361_v5  ;;  %v1270_v15 = vpop.permute.xlu2 %1269  ;;  %v2367_v25 = vpop.eup %2366 }
 0x6fc   : > { %1290 = vmatpush.msra.mxu0 %v1270_v15  ;;  %v1326_v26 = vmul.f32 32.0, %v2367_v25  ;;  %vm1330_vm2 = vweird.f32 %v2367_v25 }
 0x6fd   : > { %2162 = vmatmul.msk.f32.vlgmr.msra.gmra.mxu0 %vm958_vm1, %v1268_v14 }
 0x6fe   : > { %v1327_v27 = vsub.f32 1.0, %v1326_v26 }
 0x700   : > { %v1328_v28 = vmul.f32 %v2367_v25, %v1327_v27 }
 0x702   : > { %v1329_v29 = vadd.f32 %v2367_v25, %v1328_v28 }
 0x704   : > { %v3171_v30 = vsel %vm1330_vm2, %v2367_v25, %v1329_v29 }
 0x70b   : > { %v1201_v16 = vpop.f32.mrf.mxu2 }
 0x70c   : > { %2159 = vmatmul.msk.f32.vlgmr.msrb.gmra.mxu3 %vm958_vm1, %v1201_v16 }
 0x70d   : > { %1511 = vmatpush.msrb.mxu3 %v1369_v11 }
 0x77a   : > { %v1292_v17 = vpop.f32.mrf.mxu0 }
 0x77b   : > { %2163 = vmatmul.msk.f32.vlgmr.msra.gmra.mxu2 %vm958_vm1, %v1292_v17 }
 0x78f   : > { %v1224_v18 = vpop.f32.mrf.mxu3 }
 0x790   : > { %v1227_v19 = vadd.f32 %v1224_v18, %v1136_v59  ;;  %v2341_v59 = vld [vmem:[#allocation10] ss:$0 sm:$0xff] }
 0x791   : > { %v3209_v61 = vadd.f32 %v2341_v59, %v1423_v60 }
 0x793   : > { %2166 = vmatpush.xpose.msk.msrb.mxu0 %vm958_vm1, %v3209_v61 }
 0x7fe   : > { %v1315_v20 = vpop.f32.mrf.mxu2 }
 0x7ff   : > { %v1318_v21 = vadd.f32 %v1315_v20, %v1227_v19 }
 0x801   : > { %v1319_v22 = vadd.f32 %v1318_v21, %v3099_v4 }
 0x803   : > { %v1322_v23 = vsel %vm928_vm0, %v1319_v22, 0.0 }
 0x804   : > { %1323 = vadd.xlane.f32.xlu1 %v1322_v23  ;;  %v1370_v23 = vld [vmem:[%s3332_s13 + $0x8] sm:$0xff] }
 0x81d   : > { %1519 = vrot.lane.b32.xlu1 %v3209_v61, %s2831_s25 }
 0x877   : > { %v1324_v31 = vpop.xlane.xlu1 %1323 }
 0x878   : > { %v1332_v32 = vmul.f32 %v3171_v30, %v1324_v31 }
 0x87a   : > { %v1333_v33 = vsub.f32 %v1319_v22, %v1332_v32 }
 0x87c   : > { %v1334_v34 = vmul.f32 %v1333_v33, %v1333_v33 }
 0x87e   : > { %v1335_v4 = vsel %vm928_vm0, %v1334_v34, 0.0 }
 0x87f   : > { %1336 = vadd.xlane.f32.xlu0 %v1335_v4 }
 0x88f   : > { %v1520_v1 = vpop.permute.xlu1 %1519 }
 0x890   : > { %2170 = vmatpush.xpose.msk.msra.mxu1 %vm958_vm1, %v1520_v1 }
 0x8f2   : > { %v1337_v44 = vpop.xlane.xlu0 %1336 }
 0x8f3   : > { %v1338_v45 = vmul.f32 %v1337_v44, %v3171_v30 }
 0x8f5   : > { %v1339_v46 = vadd.f32 1e-05, %v1338_v45 }
 0x8f7   : > { %2368 = vrsqrt.f32 %v1339_v46  ;;  %vm1346_vm4 = vweird.f32 %v1339_v46 }
 0x8fd   : > { %v2369_v47 = vpop.eup %2368 }
 0x8fe   : > { %v1341_v48 = vmul.f32 %v2369_v47, %v1339_v46  ;;  %vm1347_vm3 = vweird.f32 %v2369_v47 }
 0x8ff   : > { %vm1348_vm5 = vmor %vm1346_vm4, %vm1347_vm3 }
 0x900   : > { %v1342_v49 = vmul.f32 %v2369_v47, %v1341_v48 }
 0x902   : > { %v1343_v50 = vmul.f32 0.5, %v1342_v49 }
 0x904   : > { %v1344_v51 = vsub.f32 1.5, %v1343_v50 }
 0x906   : > { %v1345_v52 = vmul.f32 %v2369_v47, %v1344_v51 }
 0x908   : > { %v1349_v54 = vsel %vm1348_vm5, %v2369_v47, %v1345_v52 }
 0x909   : > { %v1350_v55 = vmul.f32 %v1349_v54, %v1333_v33 }
 0x90b   : > { %v1354_v57 = vmul.f32 %v2339_v53, %v1350_v55 }
 0x90d   : > { %v3205_v58 = vadd.f32 %v2340_v56, %v1354_v57 }
 0x90f   : > { %2164 = vmatmul.msk.f32.vlgmr.msra.gmra.mxu3 %vm928_vm0, %v3205_v58 }
 0x992   : > { %v1397_v63 = vpop.f32.mrf.mxu3 }
 0x993   : > { %v1398_v0 = vadd.f32 %v2342_v62, %v1397_v63 }
 0x995   : > { %1517 = vrot.lane.b32.xlu2 %v1398_v0, %s2831_s25  ;;  %2167 = vmatmul.msk.f32.vlgmr.msrb.gmra.mxu0 %vm958_vm1, %v1398_v0 }
 0x9ef   : > { %v1518_v2 = vpop.permute.xlu2 %1517 }
 0x9f0   : > { %2171 = vmatmul.msk.f32.vlgmr.msra.gmra.mxu1 %vm958_vm1, %v1518_v2 }
 0xa12   : > { %v1452_v3 = vpop.f32.mrf.mxu0 }
 0xa13   : > { %v1455_v5 = vmul.f32 0.35355338, %v1452_v3  ;;  %v1372_v3 = vld [vmem:[%s3332_s13 + $0x18] sm:$0xff] }
 0xa15   : > { %v1456_v6 = vsel %vm958_vm1, %v1455_v5, -inf }
 0xa16   : > { %1457 = vmax.xlane.f32.xlu2 %v1456_v6 }
 0xa2e   : > { %1467 = vrot.lane.b32.xlu2 %v3209_v61, %s2830_s30 }
 0xa36   : > { %1609 = vrot.lane.b32.xlu2 %v3209_v61, %s2833_s27 }
 0xa6d   : > { %v1542_v7 = vpop.f32.mrf.mxu1 }
 0xa6e   : > { %v1545_v9 = vmul.f32 0.35355338, %v1542_v7 }
 0xa70   : > { %v1546_v10 = vsel %vm958_vm1, %v1545_v9, -inf }
 0xa71   : > { %1547 = vmax.xlane.f32.xlu1 %v1546_v10 }
 0xa89   : > { %v1458_v12 = vpop.xlane.xlu2 %1457 }
 0xa8a   : > { %v1459_v13 = vsub.f32 %v1455_v5, %v1458_v12  ;;  %1699 = vrot.lane.b32.xlu1 %v3209_v61, %s3376_s28 }
 0xa8c   : > { %v1460_v14 = vmul.f32 1.442695, %v1459_v13 }
 0xa8e   : > { %2370 = vpow2.f32 %v1460_v14 }
 0xa91   : > { %v1468_v15 = vpop.permute.xlu2 %1467 }
 0xa92   : > { %1488 = vmatpush.msrb.mxu2 %v1468_v15 }
 0xa94   : > { %v2371_v16 = vpop.eup %2370  ;;  %1601 = vmatpush.msra.mxu2 %v1370_v23  ;;  %v1830_v23 = vld [vmem:[%s3338_s19 + $0x28] sm:$0xff] }
 0xa95   : > { %v1462_v8 = vsel %vm958_vm1, %v2371_v16, 0.0 }
 0xa96   : > { %1463 = vadd.xlane.f32.xlu0 %v1462_v8 }
 0xa99   : > { %v1610_v17 = vpop.permute.xlu2 %1609 }
 0xa9a   : > { %2174 = vmatpush.xpose.msk.msra.mxu3 %vm958_vm1, %v1610_v17 }
 0xae4   : > { %v1548_v18 = vpop.xlane.xlu1 %1547 }
 0xae5   : > { %v1549_v19 = vsub.f32 %v1545_v9, %v1548_v18  ;;  %v1823_v18 = vld [vmem:[%s3336_s17 + $0x18] sm:$0xff] }
 0xae7   : > { %v1550_v20 = vmul.f32 1.442695, %v1549_v19  ;;  %v1821_v19 = vld [vmem:[%s3336_s17 + $0x8] sm:$0xff] }
 0xae9   : > { %2372 = vpow2.f32 %v1550_v20  ;;  %v1820_v20 = vld [vmem:[%s3336_s17] sm:$0xff] }
 0xaef   : > { %v2373_v21 = vpop.eup %2372 }
 0xaf0   : > { %v1552_v22 = vsel %vm958_vm1, %v2373_v21, 0.0 }
 0xaf1   : > { %1553 = vadd.xlane.f32.xlu0 %v1552_v22  ;;  %v1831_v22 = vld [vmem:[%s3338_s19 + $0x30] sm:$0xff] }
 0xafc   : > { %v1700_v27 = vpop.permute.xlu1 %1699 }
 0xb05   : > { %1557 = vrot.lane.b32.xlu0 %v3209_v61, %s3377_s8 }
 0xb09   : > { %v1464_v24 = vpop.xlane.xlu0 %1463 }
 0xb0a   : > { %2374 = vrcp.f32 %v1464_v24 }
 0xb0d   : > { %1697 = vrot.lane.b32.xlu0 %v1398_v0, %s3376_s28 }
 0xb10   : > { %v2375_v25 = vpop.eup %2374 }
 0xb11   : > { %v1466_v26 = vmul.f32 %v2375_v25, %v2371_v16 }
 0xb13   : > { %2168 = vmatmul.msk.f32.vlgmr.msrb.gmra.mxu2 %vm958_vm1, %v1466_v26  ;;  %v1829_v26 = vld [vmem:[%s3338_s19 + $0x20] sm:$0xff] }
 0xb14   : > { %2178 = vmatpush.xpose.msk.msrb.mxu2 %vm958_vm1, %v1700_v27 }
 0xb15   : > { %1607 = vrot.lane.b32.xlu0 %v1398_v0, %s2833_s27  ;;  %s3378_s27 = smov 72  }
 0xb64   : > { %v1554_v28 = vpop.xlane.xlu0 %1553 }
 0xb65   : > { %2376 = vrcp.f32 %v1554_v28  ;;  %v1828_v28 = vld [vmem:[%s3338_s19 + $0x18] sm:$0xff] }
 0xb6b   : > { %v2377_v29 = vpop.eup %2376 }
 0xb6c   : > { %v1556_v31 = vmul.f32 %v2377_v29, %v2373_v21  ;;  %v1832_v21 = vld [vmem:[%s3338_s19 + $0x38] sm:$0xff] }
 0xb77   : > { %v1558_v32 = vpop.permute.xlu0 %1557 }
 0xb78   : > { %1578 = vmatpush.msra.mxu0 %v1558_v32 }
 0xb79   : > { %2172 = vmatmul.msk.f32.vlgmr.msra.gmra.mxu0 %vm958_vm1, %v1556_v31 }
 0xb7f   : > { %v1698_v33 = vpop.permute.xlu0 %1697 }
 0xb87   : > { %v1608_v4 = vpop.permute.xlu0 %1607 }
 0xb96   : > { %v1490_v34 = vpop.f32.mrf.mxu2 }
 0xb97   : > { %2169 = vmatmul.msk.f32.vlgmr.msrb.gmra.mxu3 %vm958_vm1, %v1490_v34 }
 0xb9f   : > { %2175 = vmatmul.msk.f32.vlgmr.msra.gmra.mxu3 %vm958_vm1, %v1608_v4 }
 0xbf6   : > { %v1580_v35 = vpop.f32.mrf.mxu0 }
 0xbf7   : > { %2173 = vmatmul.msk.f32.vlgmr.msra.gmra.mxu2 %vm958_vm1, %v1580_v35  ;;  %v2344_v35 = vld [vmem:[#allocation13] ss:$0 sm:$0xff] }
 0xbf8   : > { %1876 = vmatpush.msra.mxu2 %v1832_v21 }
 0xbfa   : > { %1877 = vmatpush.msra.mxu2 %v1831_v22 }
 0xbfc   : > { %1878 = vmatpush.msra.mxu2 %v1830_v23 }
 0xbfe   : > { %1879 = vmatpush.msra.mxu2 %v1829_v26 }
 0xbff   : > { %2179 = vmatmul.msk.f32.vlgmr.msrb.gmra.mxu2 %vm958_vm1, %v1698_v33 }
 0xc00   : > { %1880 = vmatpush.msra.mxu2 %v1828_v28 }
 0xc1a   : > { %v1513_v36 = vpop.f32.mrf.mxu3 }
 0xc1b   : > { %v1516_v41 = vadd.f32 %v2343_v40, %v1513_v36 }
 0xc22   : > { %v1632_v37 = vpop.f32.mrf.mxu3 }
 0xc23   : > { %v1635_v38 = vmul.f32 0.35355338, %v1632_v37 }
 0xc25   : > { %v1636_v39 = vsel %vm958_vm1, %v1635_v38, -inf }
 0xc26   : > { %1637 = vmax.xlane.f32.xlu0 %v1636_v39 }
 0xc3a   : > { %1737 = vrot.lane.b32.xlu0 %v3209_v61, %s3378_s27 }
 0xc7a   : > { %v1603_v42 = vpop.f32.mrf.mxu2 }
 0xc7b   : > { %v1606_v43 = vadd.f32 %v1603_v42, %v1516_v41  ;;  %v1827_v41 = vld [vmem:[%s3338_s19 + $0x10] sm:$0xff]  ;;  %v1826_v42 = vld [vmem:[%s3338_s19 + $0x8] sm:$0xff] }
 0xc7c   : > { %1881 = vmatpush.msra.mxu2 %v1827_v41 }
 0xc7e   : > { %1882 = vmatpush.msra.mxu2 %v1826_v42 }
 0xc82   : > { %v1722_v44 = vpop.f32.mrf.mxu2 }
 0xc83   : > { %v1725_v45 = vmul.f32 0.35355338, %v1722_v44  ;;  %v2346_v44 = vld [vmem:[#allocation16] ss:$0 sm:$0xff] }
 0xc85   : > { %v1726_v46 = vsel %vm958_vm1, %v1725_v45, -inf }
 0xc86   : > { %1727 = vmax.xlane.f32.xlu2 %v1726_v46 }
 0xc99   : > { %v1638_v47 = vpop.xlane.xlu0 %1637 }
 0xc9a   : > { %v1639_v48 = vsub.f32 %v1635_v38, %v1638_v47  ;;  %v2345_v38 = vld [vmem:[#allocation15] ss:$0 sm:$0xff] }
 0xc9c   : > { %v1640_v49 = vmul.f32 1.442695, %v1639_v48  ;;  %v2347_v48 = vld [vmem:[#allocation18] ss:$0 sm:$0xff] }
 0xc9e   : > { %2378 = vpow2.f32 %v1640_v49 }
 0xca4   : > { %v2379_v50 = vpop.eup %2378 }
 0xca5   : > { %v1642_v51 = vsel %vm958_vm1, %v2379_v50, 0.0 }
 0xca6   : > { %1643 = vadd.xlane.f32.xlu2 %v1642_v51 }
 0xcac   : > { %v1738_v52 = vpop.permute.xlu0 %1737 }
 0xcad   : > { %1758 = vmatpush.msrb.mxu3 %v1738_v52 }
 0xcf9   : > { %v1728_v53 = vpop.xlane.xlu2 %1727 }
 0xcfa   : > { %v1729_v54 = vsub.f32 %v1725_v45, %v1728_v53 }
 0xcfc   : > { %v1730_v55 = vmul.f32 1.442695, %v1729_v54 }
 0xcfe   : > { %2380 = vpow2.f32 %v1730_v55 }
 0xd04   : > { %v2381_v56 = vpop.eup %2380 }
 0xd05   : > { %v1732_v57 = vsel %vm958_vm1, %v2381_v56, 0.0 }
 0xd06   : > { %1733 = vadd.xlane.f32.xlu1 %v1732_v57 }
 0xd19   : > { %v1644_v63 = vpop.xlane.xlu2 %1643 }
 0xd1f   : > { %1647 = vrot.lane.b32.xlu1 %v3209_v61, %s3379_s24  ;;  %v1371_v61 = vld [vmem:[%s3332_s13 + $0x10] sm:$0xff] }
 0xd20   : > { %1691 = vmatpush.msrb.mxu0 %v1371_v61 }
 0xd22   : > { %1852 = vmatpush.msra.mxu0 %v1823_v18 }
 0xd79   : > { %v1734_v59 = vpop.xlane.xlu1 %1733 }
 0xd7a   : > { %2382 = vrcp.f32 %v1734_v59 }
 0xd7b   : > { %2384 = vrcp.f32 %v1644_v63 }
 0xd80   : > { %v2383_v60 = vpop.eup %2382 }
 0xd81   : > { %v1736_v62 = vmul.f32 %v2383_v60, %v2381_v56  ;;  %v2385_v0 = vpop.eup %2384 }
 0xd82   : > { %v1646_v1 = vmul.f32 %v2385_v0, %v2379_v50 }
 0xd83   : > { %2180 = vmatmul.msk.f32.vlgmr.msrb.gmra.mxu3 %vm958_vm1, %v1736_v62 }
 0xd91   : > { %v1648_v2 = vpop.permute.xlu1 %1647 }
 0xd92   : > { %1668 = vmatpush.msrb.mxu1 %v1648_v2 }
 0xd93   : > { %2176 = vmatmul.msk.f32.vlgmr.msrb.gmra.mxu1 %vm958_vm1, %v1646_v1 }
 0xd94   : > { %1781 = vmatpush.msra.mxu1 %v1372_v3 }
 0xe06   : > { %v1760_v5 = vpop.f32.mrf.mxu3 }
 0xe07   : > { %2181 = vmatmul.msk.f32.vlgmr.msra.gmra.mxu1 %vm958_vm1, %v1760_v5  ;;  %v2348_v5 = vld [vmem:[#allocation19] ss:$0 sm:$0xff] }
 0xe10   : > { %v1670_v6 = vpop.f32.mrf.mxu1 }
 0xe11   : > { %2177 = vmatmul.msk.f32.vlgmr.msrb.gmra.mxu0 %vm958_vm1, %v1670_v6 }
 0xe84   : > { %v1783_v10 = vpop.f32.mrf.mxu1 }
 0xe8e   : > { %v1693_v7 = vpop.f32.mrf.mxu0 }
 0xe8f   : > { %v1696_v9 = vadd.f32 %v1693_v7, %v1606_v43  ;;  %v1825_v43 = vld [vmem:[%s3338_s19] sm:$0xff]  ;;  %v2349_v7 = vld [vmem:[#allocation21] ss:$0 sm:$0xff] }
 0xe90   : > { %1883 = vmatpush.msra.mxu2 %v1825_v43 }
 0xe91   : > { %v1786_v11 = vadd.f32 %v1783_v10, %v1696_v9 }
 0xe93   : > { %v1787_v12 = vadd.f32 %v1786_v11, %v3205_v58  ;;  %v1822_v58 = vld [vmem:[%s3336_s17 + $0x10] sm:$0xff] }
 0xe94   : > { %1853 = vmatpush.msra.mxu0 %v1822_v58 }
 0xe95   : > { %v1790_v13 = vsel %vm928_vm0, %v1787_v12, 0.0 }
 0xe96   : > { %1791 = vadd.xlane.f32.xlu2 %v1790_v13  ;;  %1854 = vmatpush.msra.mxu0 %v1821_v19 }
 0xe98   : > { %1855 = vmatpush.msra.mxu0 %v1820_v20 }
 0xf09   : > { %v1792_v14 = vpop.xlane.xlu2 %1791 }
 0xf0a   : > { %v1793_v15 = vmul.f32 %v1792_v14, %v3171_v30 }
 0xf0c   : > { %v1794_v16 = vsub.f32 %v1787_v12, %v1793_v15 }
 0xf0e   : > { %v1795_v8 = vmul.f32 %v1794_v16, %v1794_v16 }
 0xf10   : > { %v1796_v17 = vsel %vm928_vm0, %v1795_v8, 0.0 }
 0xf11   : > { %1797 = vadd.xlane.f32.xlu2 %v1796_v17 }
 0xf84   : > { %v1798_v24 = vpop.xlane.xlu2 %1797 }
 0xf85   : > { %v1799_v25 = vmul.f32 %v1798_v24, %v3171_v30 }
 0xf87   : > { %v1800_v27 = vadd.f32 1e-05, %v1799_v25 }
 0xf89   : > { %2386 = vrsqrt.f32 %v1800_v27  ;;  %vm1807_vm7 = vweird.f32 %v1800_v27 }
 0xf8f   : > { %v2387_v29 = vpop.eup %2386 }
 0xf90   : > { %v1802_v31 = vmul.f32 %v2387_v29, %v1800_v27  ;;  %vm1808_vm6 = vweird.f32 %v2387_v29 }
 0xf91   : > { %vm1809_vm8 = vmor %vm1807_vm7, %vm1808_vm6 }
 0xf92   : > { %v1803_v32 = vmul.f32 %v2387_v29, %v1802_v31 }
 0xf94   : > { %v1804_v33 = vmul.f32 0.5, %v1803_v32 }
 0xf96   : > { %v1805_v34 = vsub.f32 1.5, %v1804_v33 }
 0xf98   : > { %v1806_v4 = vmul.f32 %v2387_v29, %v1805_v34 }
 0xf9a   : > { %v1810_v36 = vsel %vm1809_vm8, %v2387_v29, %v1806_v4 }
 0xf9b   : > { %v1811_v37 = vmul.f32 %v1810_v36, %v1794_v16 }
 0xf9d   : > { %v1815_v39 = vmul.f32 %v2344_v35, %v1811_v37 }
 0xf9f   : > { %v1819_v40 = vadd.f32 %v2345_v38, %v1815_v39 }
 0xfa1   : > { %2182 = vmatmul.msk.f32.vlgmr.msra.gmra.mxu0 %vm928_vm0, %v1819_v40 }
0x101e   : > { %v1857_v45 = vpop.f32.mrf.mxu0 }
0x101f   : > { %v1858_v46 = vadd.f32 %v2346_v44, %v1857_v45 }
0x1021   : > { %v1860_v47 = vmax.f32 %v1858_v46, 0.0 }
0x1023   : > { %2183 = vmatmul.msk.f32.vlgmr.msra.gmra.mxu2 %vm1864_vm9, %v1860_v47 }
0x10a6   : > { %v1885_v49 = vpop.f32.mrf.mxu2 }
0x10a7   : > { %v1886_v50 = vadd.f32 %v2347_v48, %v1885_v49 }
0x10a9   : > { %v1888_v51 = vadd.f32 %v1886_v50, %v1819_v40 }
0x10ab   : > { %v1891_v52 = vsel %vm928_vm0, %v1888_v51, 0.0 }
0x10ac   : > { %1892 = vadd.xlane.f32.xlu2 %v1891_v52 }
0x111f   : > { %v1893_v53 = vpop.xlane.xlu2 %1892 }
0x1120   : > { %v1894_v54 = vmul.f32 %v1893_v53, %v3171_v30 }
0x1122   : > { %v1895_v55 = vsub.f32 %v1888_v51, %v1894_v54 }
0x1124   : > { %v1896_v56 = vmul.f32 %v1895_v55, %v1895_v55 }
0x1126   : > { %v1897_v57 = vsel %vm928_vm0, %v1896_v56, 0.0 }
0x1127   : > { %1898 = vadd.xlane.f32.xlu0 %v1897_v57 }
0x119a   : > { %v1899_v59 = vpop.xlane.xlu0 %1898 }
0x119b   : > { %v1900_v60 = vmul.f32 %v1899_v59, %v3171_v30 }
0x119d   : > { %v1901_v62 = vadd.f32 1e-05, %v1900_v60 }
0x119f   : > { %2388 = vrsqrt.f32 %v1901_v62  ;;  %vm1908_vm11 = vweird.f32 %v1901_v62 }
0x11a5   : > { %v2389_v63 = vpop.eup %2388 }
0x11a6   : > { %v1903_v0 = vmul.f32 %v2389_v63, %v1901_v62  ;;  %vm1909_vm10 = vweird.f32 %v2389_v63 }
0x11a7   : > { %vm1910_vm12 = vmor %vm1908_vm11, %vm1909_vm10 }
0x11a8   : > { %v1904_v1 = vmul.f32 %v2389_v63, %v1903_v0 }
0x11aa   : > { %v1905_v2 = vmul.f32 0.5, %v1904_v1 }
0x11ac   : > { %v1906_v3 = vsub.f32 1.5, %v1905_v2 }
0x11ae   : > { %v1907_v61 = vmul.f32 %v2389_v63, %v1906_v3 }
0x11b0   : > { %v1911_v6 = vsel %vm1910_vm12, %v2389_v63, %v1907_v61 }
0x11b1   : > { %v1912_v9 = vmul.f32 %v1911_v6, %v1895_v55 }
0x11b3   : > { %v1916_v10 = vmul.f32 %v2348_v5, %v1912_v9 }
0x11b5   : > { %v1920_v30 = vadd.f32 %v2349_v7, %v1916_v10 }
0x11b7   : > { %1921 = vst.msk [vmem:[%s911_s3] sm:$0xff] %vm928_vm0, %v1920_v30 }
0x11b8 PF: > { %s3380_s29 = sld [smem:[#allocation29_spill]] }
0x11be   : > { %s40_s4 = sadd.s32 1, %s3380_s29  }
0x11bf   : > { %p37_p7 = scmp.ge.s32.totalorder %s40_s4, 4  }
0x11c1   :  { %39 = sbr.rel (!%p37_p7) target bundleno = 19 (0x13), region = 198 }
0x11c6   :  { %1941 = vsyncpa [#allocation3], 1 }
0x11c7   :  { %1943 = vsyncpa [#allocation3 + $0x1], 1 }
0x11c8   :  { %1944 = vsyncpa [#allocation5], 1 }
0x11c9   :  { %1945 = vsyncpa [#allocation8], 1 }
0x11ca   :  { %1946 = vsyncpa [#allocation11], 1 }
0x11cb   :  { %1947 = vsyncpa [#allocation14], 1 }
0x11cc   :  { %1948 = vsyncpa [#allocation17], 1 }
0x11cd   :  { %1949 = vsyncpa [#allocation20], 1 }

</bundles_post_ra>
